<compile_context>
chip_gen: v6e
topology: v6e:2x2x1
jax: 0.10.0
libtpu: 0.0.40
codegen_flags: <defaults>
</compile_context>

<pallas_src>
import jax
import jax.numpy as jnp
from jax.experimental import pallas as pl
from jax.experimental.pallas import tpu as pltpu

# ---------------- model dimensions (small, consistent with the module) ----------
B, T = 2, 8                # batch, sequence length
STATE_DIM = 6              # state_insize
ACT_DIM = 2                # action_insize
LIDAR_DIM = 24             # obs key #1 feature dim
IMU_DIM = 12               # obs key #2 feature dim
LATENT = 8                 # encoder latent size (shared across keys, needed for PoE)
ENC_HID = 16               # encoder MLP hidden
DEC_HID = 16               # decoder MLP hidden
ACT_HID = 16               # act_encoder_hidden_size[:-1]
ACT_EMB = 16               # act_encoder_hidden_size[-1]  (GRU input size)
H = 32                     # rnn_hidden_size
MLP_ENC_HID = 32           # mlp_encoder_hidden_size
MLP_DEC_HID = 32           # mlp_decoder_hidden_size
NUM_LAYERS = 2             # rnn_layers

DEC_H_CAT = MLP_DEC_HID + 2 * DEC_HID            # 64 (merged decoder hidden width)
OUT_CAT = STATE_DIM + LIDAR_DIM + IMU_DIM        # 42 (state | lidar | imu columns)
OUT_PAD = 128                                    # lane-dense padded output width
PB = 8                                           # padded rows per time step (sublane tile)
TPB = T * PB                                     # 64 staged rows (rows t*PB..t*PB+B-1 are real)


# ----------------------- packed-parameter slab layout ----------------------------
PACKED_ENTRIES = [
    ("el_w1", (LIDAR_DIM, ENC_HID)), ("el_b1", (1, ENC_HID)),
    ("el_w2", (ENC_HID, 2 * LATENT)), ("el_b2", (1, 2 * LATENT)),
    ("ei_w1", (IMU_DIM, ENC_HID)), ("ei_b1", (1, ENC_HID)),
    ("ei_w2", (ENC_HID, 2 * LATENT)), ("ei_b2", (1, 2 * LATENT)),
    ("m_w1s", (STATE_DIM, MLP_ENC_HID)), ("m_w1l", (LATENT, MLP_ENC_HID)),
    ("m_b1", (1, MLP_ENC_HID)), ("m_w2", (MLP_ENC_HID, H)), ("m_b2", (1, H)),
    ("a_w1", (ACT_DIM, ACT_HID)), ("a_b1", (1, ACT_HID)),
    ("a_w2", (ACT_HID, ACT_EMB)), ("a_b2", (1, ACT_EMB)),
    # GRU layer 0 (gates kept merged r|z|n; single (·,3H) matmul each)
    ("g0_wih", (ACT_EMB, 3 * H)), ("g0_bih", (1, 3 * H)),
    ("g0_whh", (H, 3 * H)), ("g0_bhh", (1, 3 * H)),
    # GRU layer 1
    ("g1_wih", (H, 3 * H)), ("g1_bih", (1, 3 * H)),
    ("g1_whh", (H, 3 * H)), ("g1_bhh", (1, 3 * H)),
    # merged decoders: hidden layers concatenated, heads block-diagonal, lane-padded
    ("dec_w1", (H, DEC_H_CAT)), ("dec_b1", (1, DEC_H_CAT)),
    ("dec_w2", (DEC_H_CAT, OUT_PAD)), ("dec_b2", (1, OUT_PAD)),
]


def _layout(entries):
    layout, off = {}, 0
    for name, (r, c) in entries:
        layout[name] = (off, r, c)       # 8-row aligned start -> cheap static slices
        off += -(-r // 8) * 8
    return layout, off


PARAM_LAYOUT, SLAB_ROWS = _layout(PACKED_ENTRIES)   # SLAB_ROWS = 464 -> 232 KiB f32 slab


# ------------------------------- Pallas kernel ----------------------------------
def world_model_kernel(state_ref, lidar_ref, imu_ref, act_ref, eps_ref, p_ref,
                       out_ref, h0_scr, h1_scr):
    f32 = jnp.float32

    def getp(name):
        off, r, c = PARAM_LAYOUT[name]
        return p_ref[off:off + r, 0:c]           # static, sublane-aligned slice

    def dot(x, w):
        return jnp.dot(x, w, preferred_element_type=f32)

    def lin(x, w, b):
        return dot(x, w) + b

    def mlp2(x, w1, b1, w2, b2):
        return lin(jnp.tanh(lin(x, getp(w1), getp(b1))), getp(w2), getp(b2))

    def sig(x):                                   # sigmoid via one EUP tanh
        return 0.5 * jnp.tanh(0.5 * x) + 0.5

    # zero the staging buffers (padding rows feed unused matmul rows only)
    h0_scr[...] = jnp.zeros_like(h0_scr)
    h1_scr[...] = jnp.zeros_like(h1_scr)

    # ---- encode_observation (rsample=True, normalize_obs=False) ----
    enc_l = mlp2(lidar_ref[...], "el_w1", "el_b1", "el_w2", "el_b2")   # (B, 2*LATENT)
    enc_i = mlp2(imu_ref[...],   "ei_w1", "ei_b1", "ei_w2", "ei_b2")   # (B, 2*LATENT)
    loc_l, inv_l = enc_l[:, :LATENT], jnp.exp(-enc_l[:, LATENT:])      # 1/scale = exp(-log_std)
    loc_i, inv_i = enc_i[:, :LATENT], jnp.exp(-enc_i[:, LATENT:])

    # product-of-experts + rsample (matches torch source: precision = 1/scale)
    recip = inv_l + inv_i
    poe_scale = 1.0 / recip                        # exact reciprocal (feeds whole recurrence)
    poe_mean = (loc_l * inv_l + loc_i * inv_i) * poe_scale
    latents = poe_mean + poe_scale * eps_ref[...]

    # h0 = self.mlp(cat([state, latents], -1)); concat folded into split weights
    h_pre = (dot(state_ref[...], getp("m_w1s")) + dot(latents, getp("m_w1l"))
             + getp("m_b1"))
    h0 = lin(jnp.tanh(h_pre), getp("m_w2"), getp("m_b2"))              # (B, H)

    # ---- hoisted: act_mlp + GRU layer-0 input projection over all staged rows ----
    act_emb = mlp2(act_ref[...], "a_w1", "a_b1", "a_w2", "a_b2")       # (TPB, ACT_EMB)
    gi0 = dot(act_emb, getp("g0_wih")) + getp("g0_bih")                # (TPB, 3H), bih folded in

    # ---- pass 1: GRU layer 0 recurrence (one (H,3H) matmul per step) ----
    w0hh = getp("g0_whh")                                              # (H, 3H)
    b0hh = getp("g0_bhh")                                              # (1, 3H)
    h = h0
    for t in range(T):                      # unrolled: T=8, keeps scheduler visibility
        row = t * PB                        # sublane-aligned staging offset
        gi = gi0[row:row + B, :]                                       # (B, 3H)
        gh = dot(h, w0hh) + b0hh                                       # (B, 3H)
        r = sig(gi[:, 0:H] + gh[:, 0:H])
        z = sig(gi[:, H:2 * H] + gh[:, H:2 * H])
        n = jnp.tanh(gi[:, 2 * H:3 * H] + r * gh[:, 2 * H:3 * H])
        h = (1.0 - z) * n + z * h
        h0_scr[row:row + B, :] = h

    # ---- batched layer-1 input projection over the staged layer-0 outputs ----
    gi1 = dot(h0_scr[...], getp("g1_wih")) + getp("g1_bih")            # (TPB, 3H)

    # ---- pass 2: GRU layer 1 recurrence ----
    w1hh = getp("g1_whh")
    b1hh = getp("g1_bhh")
    h = h0
    for t in range(T):
        row = t * PB
        gi = gi1[row:row + B, :]
        gh = dot(h, w1hh) + b1hh
        r = sig(gi[:, 0:H] + gh[:, 0:H])
        z = sig(gi[:, H:2 * H] + gh[:, H:2 * H])
        n = jnp.tanh(gi[:, 2 * H:3 * H] + r * gh[:, 2 * H:3 * H])
        h = (1.0 - z) * n + z * h
        h1_scr[row:row + B, :] = h

    # ---- deferred decoders on the whole staged block:
    #      one merged hidden matmul + one block-diagonal (lane-padded) head matmul ----
    out_all = h1_scr[...]                                              # (TPB, H)
    dec_h = jnp.tanh(lin(out_all, getp("dec_w1"), getp("dec_b1")))     # (TPB, 64)
    out_ref[...] = lin(dec_h, getp("dec_w2"), getp("dec_b2"))          # (TPB, 128) lane-dense store


# ------------------------------- raw parameters ----------------------------------
PARAM_SHAPES = [
    (LIDAR_DIM, ENC_HID), (1, ENC_HID), (ENC_HID, 2 * LATENT), (1, 2 * LATENT),   # enc lidar
    (IMU_DIM, ENC_HID), (1, ENC_HID), (ENC_HID, 2 * LATENT), (1, 2 * LATENT),     # enc imu
    (STATE_DIM, MLP_ENC_HID), (LATENT, MLP_ENC_HID), (1, MLP_ENC_HID),            # h0 mlp (split W1)
    (MLP_ENC_HID, H), (1, H),
    (ACT_DIM, ACT_HID), (1, ACT_HID), (ACT_HID, ACT_EMB), (1, ACT_EMB),           # act_mlp
    (ACT_EMB, 3 * H), (H, 3 * H), (1, 3 * H), (1, 3 * H),                         # GRU layer 0
    (H, 3 * H), (H, 3 * H), (1, 3 * H), (1, 3 * H),                               # GRU layer 1
    (H, MLP_DEC_HID), (1, MLP_DEC_HID), (MLP_DEC_HID, STATE_DIM), (1, STATE_DIM), # state decoder
    (H, DEC_HID), (1, DEC_HID), (DEC_HID, LIDAR_DIM), (1, LIDAR_DIM),             # dec lidar
    (H, DEC_HID), (1, DEC_HID), (DEC_HID, IMU_DIM), (1, IMU_DIM),                 # dec imu
]


def make_params(key):
    keys = jax.random.split(key, len(PARAM_SHAPES))
    return [0.3 * jax.random.normal(k, s, jnp.float32)
            for k, s in zip(keys, PARAM_SHAPES)]


def pack_params(params):
    """Pack the 38 module parameters into one (SLAB_ROWS, 128) f32 slab.

    GRU weights/biases stay in their natural merged r|z|n layout (one (·,3H)
    matmul per projection); the three decoder first layers are concatenated
    along output columns and the three heads are placed block-diagonally into
    a lane-padded (64, 128) matrix so decoding is two matmuls and one dense
    128-lane store.
    """
    (el_w1, el_b1, el_w2, el_b2,
     ei_w1, ei_b1, ei_w2, ei_b2,
     m_w1s, m_w1l, m_b1, m_w2, m_b2,
     a_w1, a_b1, a_w2, a_b2,
     g0_wih, g0_whh, g0_bih, g0_bhh,
     g1_wih, g1_whh, g1_bih, g1_bhh,
     s_w1, s_b1, s_w2, s_b2,
     dl_w1, dl_b1, dl_w2, dl_b2,
     di_w1, di_b1, di_w2, di_b2) = params

    dec_w1 = jnp.concatenate([s_w1, dl_w1, di_w1], axis=1)             # (H, 64)
    dec_b1 = jnp.concatenate([s_b1, dl_b1, di_b1], axis=1)             # (1, 64)
    dec_w2 = jnp.zeros((DEC_H_CAT, OUT_PAD), jnp.float32)
    dec_w2 = dec_w2.at[0:MLP_DEC_HID, 0:STATE_DIM].set(s_w2)
    dec_w2 = dec_w2.at[MLP_DEC_HID:MLP_DEC_HID + DEC_HID,
                       STATE_DIM:STATE_DIM + LIDAR_DIM].set(dl_w2)
    dec_w2 = dec_w2.at[MLP_DEC_HID + DEC_HID:DEC_H_CAT,
                       STATE_DIM + LIDAR_DIM:OUT_CAT].set(di_w2)
    dec_b2 = jnp.zeros((1, OUT_PAD), jnp.float32)
    dec_b2 = dec_b2.at[:, 0:OUT_CAT].set(jnp.concatenate([s_b2, dl_b2, di_b2], axis=1))

    vals = dict(
        el_w1=el_w1, el_b1=el_b1, el_w2=el_w2, el_b2=el_b2,
        ei_w1=ei_w1, ei_b1=ei_b1, ei_w2=ei_w2, ei_b2=ei_b2,
        m_w1s=m_w1s, m_w1l=m_w1l, m_b1=m_b1, m_w2=m_w2, m_b2=m_b2,
        a_w1=a_w1, a_b1=a_b1, a_w2=a_w2, a_b2=a_b2,
        g0_wih=g0_wih, g0_bih=g0_bih, g0_whh=g0_whh, g0_bhh=g0_bhh,
        g1_wih=g1_wih, g1_bih=g1_bih, g1_whh=g1_whh, g1_bhh=g1_bhh,
        dec_w1=dec_w1, dec_b1=dec_b1, dec_w2=dec_w2, dec_b2=dec_b2,
    )
    slab = jnp.zeros((SLAB_ROWS, 128), jnp.float32)
    for name, (off, r, c) in PARAM_LAYOUT.items():
        slab = slab.at[off:off + r, 0:c].set(vals[name])
    return slab


# ------------------------------- wrapper -----------------------------------------
def world_model_forward(obs, act, eps, param_slab):
    """obs: dict of (B, feat); act: (B, T, ACT_DIM); eps: (B, LATENT)."""
    # time-major, sublane-padded staging layout: real rows are t*PB .. t*PB+B-1
    act_tb = jnp.transpose(act, (1, 0, 2))                              # (T, B, A)
    act_pad = jnp.zeros((T, PB, ACT_DIM), jnp.float32).at[:, :B, :].set(act_tb)
    act_pad = act_pad.reshape(TPB, ACT_DIM)

    inputs = [obs['state'], obs['lidar'], obs['imu'], act_pad, eps, param_slab]
    out_shape = jax.ShapeDtypeStruct((TPB, OUT_PAD), jnp.float32)

    def full_spec(shape):
        n = len(shape)
        return pl.BlockSpec(shape, lambda i, n=n: (0,) * n)

    out_flat = pl.pallas_call(
        world_model_kernel,
        out_shape=out_shape,
        grid=(1,),
        in_specs=[full_spec(x.shape) for x in inputs],
        out_specs=full_spec((TPB, OUT_PAD)),
        scratch_shapes=[pltpu.VMEM((TPB, H), jnp.float32),   # staged layer-0 outputs
                        pltpu.VMEM((TPB, H), jnp.float32)],  # staged layer-1 outputs
        compiler_params=pltpu.CompilerParams(
            dimension_semantics=("arbitrary",),
            vmem_limit_bytes=32 * 1024 * 1024,
        ),
    )(*inputs)

    out_tb = out_flat.reshape(T, PB, OUT_PAD)[:, :B, :OUT_CAT]          # (T, B, 42)
    out_btf = jnp.transpose(out_tb, (1, 0, 2))                          # (B, T, 42)
    return {
        'state': out_btf[..., 0:STATE_DIM],
        'lidar': out_btf[..., STATE_DIM:STATE_DIM + LIDAR_DIM],
        'imu':   out_btf[..., STATE_DIM + LIDAR_DIM:OUT_CAT],
    }


# --------------------------- pure-JAX reference ----------------------------------
def reference_forward(obs, act, eps, params):
    (el_w1, el_b1, el_w2, el_b2,
     ei_w1, ei_b1, ei_w2, ei_b2,
     m_w1s, m_w1l, m_b1, m_w2, m_b2,
     a_w1, a_b1, a_w2, a_b2,
     g0_wih, g0_whh, g0_bih, g0_bhh,
     g1_wih, g1_whh, g1_bih, g1_bhh,
     s_w1, s_b1, s_w2, s_b2,
     dl_w1, dl_b1, dl_w2, dl_b2,
     di_w1, di_b1, di_w2, di_b2) = params

    def lin(x, w, b): return x @ w + b
    def mlp2(x, w1, b1, w2, b2): return lin(jnp.tanh(lin(x, w1, b1)), w2, b2)

    enc_l = mlp2(obs['lidar'], el_w1, el_b1, el_w2, el_b2)
    enc_i = mlp2(obs['imu'], ei_w1, ei_b1, ei_w2, ei_b2)
    loc_l, scale_l = enc_l[:, :LATENT], jnp.exp(enc_l[:, LATENT:])
    loc_i, scale_i = enc_i[:, :LATENT], jnp.exp(enc_i[:, LATENT:])
    recip = 1.0 / scale_l + 1.0 / scale_i
    poe_mean = (loc_l / scale_l + loc_i / scale_i) / recip
    latents = poe_mean + (1.0 / recip) * eps
    h_pre = obs['state'] @ m_w1s + latents @ m_w1l + m_b1
    h0 = lin(jnp.tanh(h_pre), m_w2, m_b2)

    def gru_cell(x, h, wih, whh, bih, bhh):
        gi, gh = lin(x, wih, bih), lin(h, whh, bhh)
        r = jax.nn.sigmoid(gi[:, 0:H] + gh[:, 0:H])
        z = jax.nn.sigmoid(gi[:, H:2 * H] + gh[:, H:2 * H])
        n = jnp.tanh(gi[:, 2 * H:3 * H] + r * gh[:, 2 * H:3 * H])
        return (1.0 - z) * n + z * h

    h_l0, h_l1, outs = h0, h0, []
    for t in range(T):
        e_t = mlp2(act[:, t], a_w1, a_b1, a_w2, a_b2)
        h_l0 = gru_cell(e_t, h_l0, g0_wih, g0_whh, g0_bih, g0_bhh)
        h_l1 = gru_cell(h_l0, h_l1, g1_wih, g1_whh, g1_bih, g1_bhh)
        outs.append(h_l1)
    out = jnp.stack(outs, axis=1)  # (B, T, H)
    return {
        'lidar': mlp2(out, dl_w1, dl_b1, dl_w2, dl_b2),
        'imu': mlp2(out, di_w1, di_b1, di_w2, di_b2),
        'state': mlp2(out, s_w1, s_b1, s_w2, s_b2),
    }


# ------------------------------------ main ----------------------------------------
if __name__ == "__main__":
    key = jax.random.PRNGKey(0)
    kp, ks, kl, ki, ka, ke = jax.random.split(key, 6)
    params = make_params(kp)
    param_slab = pack_params(params)          # one-time packing (outside hot path)
    obs = {
        'state': jax.random.normal(ks, (B, STATE_DIM), jnp.float32),
        'lidar': jax.random.normal(kl, (B, LIDAR_DIM), jnp.float32),
        'imu': jax.random.normal(ki, (B, IMU_DIM), jnp.float32),
    }
    act = jax.random.normal(ka, (B, T, ACT_DIM), jnp.float32)
    eps = jax.random.normal(ke, (B, LATENT), jnp.float32)  # rsample noise (deterministic)

    preds = world_model_forward(obs, act, eps, param_slab)
    preds = jax.tree_util.tree_map(jax.block_until_ready, preds)

    ref = reference_forward(obs, act, eps, params)
    for k in ('lidar', 'imu', 'state'):
        assert preds[k].shape == ref[k].shape, (k, preds[k].shape, ref[k].shape)
        if not jnp.allclose(preds[k], ref[k], atol=1e-3, rtol=1e-3):
            raise AssertionError(f"kernel/reference mismatch for key '{k}'")

    print("KERNEL_OK")
</pallas_src>

<mosaic_0001>
module attributes {stable_mosaic.version = 11 : i64} {
  func.func @world_model_kernel(%arg0: i32, %arg1: memref<2x6xf32, #tpu.memory_space<vmem>>, %arg2: memref<2x24xf32, #tpu.memory_space<vmem>>, %arg3: memref<2x12xf32, #tpu.memory_space<vmem>>, %arg4: memref<64x2xf32, #tpu.memory_space<vmem>>, %arg5: memref<2x8xf32, #tpu.memory_space<vmem>>, %arg6: memref<464x128xf32, #tpu.memory_space<vmem>>, %arg7: memref<64x128xf32, #tpu.memory_space<vmem>>, %arg8: memref<64x32xf32, #tpu.memory_space<vmem>>, %arg9: memref<64x32xf32, #tpu.memory_space<vmem>>) attributes {dimension_semantics = [#tpu.dimension_semantics<arbitrary>], iteration_bounds = array<i64: 1>, scalar_prefetch = 0 : i64, scratch_operands = 2 : i64, tpu.core_type = #tpu.core_type<tc>, window_params = [{pipeline_mode = #tpu.pipeline_mode<synchronous>, transform_indices = @transform_0, window_bounds = array<i64: 2, 6>}, {pipeline_mode = #tpu.pipeline_mode<synchronous>, transform_indices = @transform_1, window_bounds = array<i64: 2, 24>}, {pipeline_mode = #tpu.pipeline_mode<synchronous>, transform_indices = @transform_2, window_bounds = array<i64: 2, 12>}, {pipeline_mode = #tpu.pipeline_mode<synchronous>, transform_indices = @transform_3, window_bounds = array<i64: 64, 2>}, {pipeline_mode = #tpu.pipeline_mode<synchronous>, transform_indices = @transform_4, window_bounds = array<i64: 2, 8>}, {pipeline_mode = #tpu.pipeline_mode<synchronous>, transform_indices = @transform_5, window_bounds = array<i64: 464, 128>}, {pipeline_mode = #tpu.pipeline_mode<synchronous>, transform_indices = @transform_6, window_bounds = array<i64: 64, 128>}]} {
    %cst = arith.constant 0.000000e+00 : f32
    %0 = vector.broadcast %cst : f32 to vector<64x32xf32>
    %c0 = arith.constant 0 : index
    %c0_0 = arith.constant 0 : index
    %1 = vector.load %arg8[%c0, %c0_0] : memref<64x32xf32, #tpu.memory_space<vmem>>, vector<64x32xf32>
    tpu.vector_store %arg8[%c0, %c0_0], %0 {strides = array<i32>} : memref<64x32xf32, #tpu.memory_space<vmem>>, vector<64x32xf32>,
    %cst_1 = arith.constant 0.000000e+00 : f32
    %2 = vector.broadcast %cst_1 : f32 to vector<64x32xf32>
    %c0_2 = arith.constant 0 : index
    %c0_3 = arith.constant 0 : index
    %3 = vector.load %arg9[%c0_2, %c0_3] : memref<64x32xf32, #tpu.memory_space<vmem>>, vector<64x32xf32>
    tpu.vector_store %arg9[%c0_2, %c0_3], %2 {strides = array<i32>} : memref<64x32xf32, #tpu.memory_space<vmem>>, vector<64x32xf32>,
    %c0_4 = arith.constant 0 : index
    %c0_5 = arith.constant 0 : index
    %4 = vector.load %arg2[%c0_4, %c0_5] : memref<2x24xf32, #tpu.memory_space<vmem>>, vector<2x24xf32>
    %c0_6 = arith.constant 0 : index
    %c0_7 = arith.constant 0 : index
    %5 = vector.load %arg6[%c0_6, %c0_7] : memref<464x128xf32, #tpu.memory_space<vmem>>, vector<24x16xf32>
    %c24 = arith.constant 24 : index
    %c0_8 = arith.constant 0 : index
    %6 = vector.load %arg6[%c24, %c0_8] : memref<464x128xf32, #tpu.memory_space<vmem>>, vector<1x16xf32>
    %cst_9 = arith.constant dense<0.000000e+00> : vector<2x16xf32>
    %7 = tpu.matmul %4, %5, %cst_9 {dimension_numbers = #tpu.dot_dimension_numbers<[1], [0], [0], [1], [0, 0, 1, 1], [], []>} : vector<2x24xf32>, vector<24x16xf32>, vector<2x16xf32> -> vector<2x16xf32>
    %8 = vector.broadcast %6 : vector<1x16xf32> to vector<2x16xf32>
    %9 = arith.addf %7, %8 : vector<2x16xf32>
    %10 = math.tanh %9 : vector<2x16xf32>
    %c32 = arith.constant 32 : index
    %c0_10 = arith.constant 0 : index
    %11 = vector.load %arg6[%c32, %c0_10] : memref<464x128xf32, #tpu.memory_space<vmem>>, vector<16x16xf32>
    %c48 = arith.constant 48 : index
    %c0_11 = arith.constant 0 : index
    %12 = vector.load %arg6[%c48, %c0_11] : memref<464x128xf32, #tpu.memory_space<vmem>>, vector<1x16xf32>
    %cst_12 = arith.constant dense<0.000000e+00> : vector<2x16xf32>
    %13 = tpu.matmul %10, %11, %cst_12 {dimension_numbers = #tpu.dot_dimension_numbers<[1], [0], [0], [1], [0, 0, 1, 1], [], []>} : vector<2x16xf32>, vector<16x16xf32>, vector<2x16xf32> -> vector<2x16xf32>
    %14 = vector.broadcast %12 : vector<1x16xf32> to vector<2x16xf32>
    %15 = arith.addf %13, %14 : vector<2x16xf32>
    %c0_13 = arith.constant 0 : index
    %c0_14 = arith.constant 0 : index
    %16 = vector.load %arg3[%c0_13, %c0_14] : memref<2x12xf32, #tpu.memory_space<vmem>>, vector<2x12xf32>
    %c56 = arith.constant 56 : index
    %c0_15 = arith.constant 0 : index
    %17 = vector.load %arg6[%c56, %c0_15] : memref<464x128xf32, #tpu.memory_space<vmem>>, vector<12x16xf32>
    %c72 = arith.constant 72 : index
    %c0_16 = arith.constant 0 : index
    %18 = vector.load %arg6[%c72, %c0_16] : memref<464x128xf32, #tpu.memory_space<vmem>>, vector<1x16xf32>
    %cst_17 = arith.constant dense<0.000000e+00> : vector<2x16xf32>
    %19 = tpu.matmul %16, %17, %cst_17 {dimension_numbers = #tpu.dot_dimension_numbers<[1], [0], [0], [1], [0, 0, 1, 1], [], []>} : vector<2x12xf32>, vector<12x16xf32>, vector<2x16xf32> -> vector<2x16xf32>
    %20 = vector.broadcast %18 : vector<1x16xf32> to vector<2x16xf32>
    %21 = arith.addf %19, %20 : vector<2x16xf32>
    %22 = math.tanh %21 : vector<2x16xf32>
    %c80 = arith.constant 80 : index
    %c0_18 = arith.constant 0 : index
    %23 = vector.load %arg6[%c80, %c0_18] : memref<464x128xf32, #tpu.memory_space<vmem>>, vector<16x16xf32>
    %c96 = arith.constant 96 : index
    %c0_19 = arith.constant 0 : index
    %24 = vector.load %arg6[%c96, %c0_19] : memref<464x128xf32, #tpu.memory_space<vmem>>, vector<1x16xf32>
    %cst_20 = arith.constant dense<0.000000e+00> : vector<2x16xf32>
    %25 = tpu.matmul %22, %23, %cst_20 {dimension_numbers = #tpu.dot_dimension_numbers<[1], [0], [0], [1], [0, 0, 1, 1], [], []>} : vector<2x16xf32>, vector<16x16xf32>, vector<2x16xf32> -> vector<2x16xf32>
    %26 = vector.broadcast %24 : vector<1x16xf32> to vector<2x16xf32>
    %27 = arith.addf %25, %26 : vector<2x16xf32>
    %28 = vector.extract_strided_slice %15 {offsets = [0, 0], sizes = [2, 8], strides = [1, 1]} : vector<2x16xf32> to vector<2x8xf32>
    %29 = vector.extract_strided_slice %15 {offsets = [0, 8], sizes = [2, 8], strides = [1, 1]} : vector<2x16xf32> to vector<2x8xf32>
    %cst_21 = arith.constant 0.000000e+00 : f32
    %30 = vector.broadcast %cst_21 : f32 to vector<2x8xf32>
    %31 = arith.subf %30, %29 : vector<2x8xf32>
    %32 = math.exp %31 : vector<2x8xf32>
    %33 = vector.extract_strided_slice %27 {offsets = [0, 0], sizes = [2, 8], strides = [1, 1]} : vector<2x16xf32> to vector<2x8xf32>
    %34 = vector.extract_strided_slice %27 {offsets = [0, 8], sizes = [2, 8], strides = [1, 1]} : vector<2x16xf32> to vector<2x8xf32>
    %cst_22 = arith.constant 0.000000e+00 : f32
    %35 = vector.broadcast %cst_22 : f32 to vector<2x8xf32>
    %36 = arith.subf %35, %34 : vector<2x8xf32>
    %37 = math.exp %36 : vector<2x8xf32>
    %38 = arith.addf %32, %37 : vector<2x8xf32>
    %cst_23 = arith.constant 1.000000e+00 : f32
    %39 = vector.broadcast %cst_23 : f32 to vector<2x8xf32>
    %40 = arith.divf %39, %38 : vector<2x8xf32>
    %41 = arith.mulf %28, %32 : vector<2x8xf32>
    %42 = arith.mulf %33, %37 : vector<2x8xf32>
    %43 = arith.addf %41, %42 : vector<2x8xf32>
    %44 = arith.mulf %43, %40 : vector<2x8xf32>
    %c0_24 = arith.constant 0 : index
    %c0_25 = arith.constant 0 : index
    %45 = vector.load %arg5[%c0_24, %c0_25] : memref<2x8xf32, #tpu.memory_space<vmem>>, vector<2x8xf32>
    %46 = arith.mulf %40, %45 : vector<2x8xf32>
    %47 = arith.addf %44, %46 : vector<2x8xf32>
    %c0_26 = arith.constant 0 : index
    %c0_27 = arith.constant 0 : index
    %48 = vector.load %arg1[%c0_26, %c0_27] : memref<2x6xf32, #tpu.memory_space<vmem>>, vector<2x6xf32>
    %c104 = arith.constant 104 : index
    %c0_28 = arith.constant 0 : index
    %49 = vector.load %arg6[%c104, %c0_28] : memref<464x128xf32, #tpu.memory_space<vmem>>, vector<6x32xf32>
    %cst_29 = arith.constant dense<0.000000e+00> : vector<2x32xf32>
    %50 = tpu.matmul %48, %49, %cst_29 {dimension_numbers = #tpu.dot_dimension_numbers<[1], [0], [0], [1], [0, 0, 1, 1], [], []>} : vector<2x6xf32>, vector<6x32xf32>, vector<2x32xf32> -> vector<2x32xf32>
    %c112 = arith.constant 112 : index
    %c0_30 = arith.constant 0 : index
    %51 = vector.load %arg6[%c112, %c0_30] : memref<464x128xf32, #tpu.memory_space<vmem>>, vector<8x32xf32>
    %cst_31 = arith.constant dense<0.000000e+00> : vector<2x32xf32>
    %52 = tpu.matmul %47, %51, %cst_31 {dimension_numbers = #tpu.dot_dimension_numbers<[1], [0], [0], [1], [0, 0, 1, 1], [], []>} : vector<2x8xf32>, vector<8x32xf32>, vector<2x32xf32> -> vector<2x32xf32>
    %53 = arith.addf %50, %52 : vector<2x32xf32>
    %c120 = arith.constant 120 : index
    %c0_32 = arith.constant 0 : index
    %54 = vector.load %arg6[%c120, %c0_32] : memref<464x128xf32, #tpu.memory_space<vmem>>, vector<1x32xf32>
    %55 = vector.broadcast %54 : vector<1x32xf32> to vector<2x32xf32>
    %56 = arith.addf %53, %55 : vector<2x32xf32>
    %57 = math.tanh %56 : vector<2x32xf32>
    %c128 = arith.constant 128 : index
    %c0_33 = arith.constant 0 : index
    %58 = vector.load %arg6[%c128, %c0_33] : memref<464x128xf32, #tpu.memory_space<vmem>>, vector<32x32xf32>
    %c160 = arith.constant 160 : index
    %c0_34 = arith.constant 0 : index
    %59 = vector.load %arg6[%c160, %c0_34] : memref<464x128xf32, #tpu.memory_space<vmem>>, vector<1x32xf32>
    %cst_35 = arith.constant dense<0.000000e+00> : vector<2x32xf32>
    %60 = tpu.matmul %57, %58, %cst_35 {dimension_numbers = #tpu.dot_dimension_numbers<[1], [0], [0], [1], [0, 0, 1, 1], [], []>} : vector<2x32xf32>, vector<32x32xf32>, vector<2x32xf32> -> vector<2x32xf32>
    %61 = vector.broadcast %59 : vector<1x32xf32> to vector<2x32xf32>
    %62 = arith.addf %60, %61 : vector<2x32xf32>
    %c0_36 = arith.constant 0 : index
    %c0_37 = arith.constant 0 : index
    %63 = vector.load %arg4[%c0_36, %c0_37] : memref<64x2xf32, #tpu.memory_space<vmem>>, vector<64x2xf32>
    %c168 = arith.constant 168 : index
    %c0_38 = arith.constant 0 : index
    %64 = vector.load %arg6[%c168, %c0_38] : memref<464x128xf32, #tpu.memory_space<vmem>>, vector<2x16xf32>
    %c176 = arith.constant 176 : index
    %c0_39 = arith.constant 0 : index
    %65 = vector.load %arg6[%c176, %c0_39] : memref<464x128xf32, #tpu.memory_space<vmem>>, vector<1x16xf32>
    %cst_40 = arith.constant dense<0.000000e+00> : vector<64x16xf32>
    %66 = tpu.matmul %63, %64, %cst_40 {dimension_numbers = #tpu.dot_dimension_numbers<[1], [0], [0], [1], [0, 0, 1, 1], [], []>} : vector<64x2xf32>, vector<2x16xf32>, vector<64x16xf32> -> vector<64x16xf32>
    %67 = vector.broadcast %65 : vector<1x16xf32> to vector<64x16xf32>
    %68 = arith.addf %66, %67 : vector<64x16xf32>
    %69 = math.tanh %68 : vector<64x16xf32>
    %c184 = arith.constant 184 : index
    %c0_41 = arith.constant 0 : index
    %70 = vector.load %arg6[%c184, %c0_41] : memref<464x128xf32, #tpu.memory_space<vmem>>, vector<16x16xf32>
    %c200 = arith.constant 200 : index
    %c0_42 = arith.constant 0 : index
    %71 = vector.load %arg6[%c200, %c0_42] : memref<464x128xf32, #tpu.memory_space<vmem>>, vector<1x16xf32>
    %cst_43 = arith.constant dense<0.000000e+00> : vector<64x16xf32>
    %72 = tpu.matmul %69, %70, %cst_43 {dimension_numbers = #tpu.dot_dimension_numbers<[1], [0], [0], [1], [0, 0, 1, 1], [], []>} : vector<64x16xf32>, vector<16x16xf32>, vector<64x16xf32> -> vector<64x16xf32>
    %73 = vector.broadcast %71 : vector<1x16xf32> to vector<64x16xf32>
    %74 = arith.addf %72, %73 : vector<64x16xf32>
    %c208 = arith.constant 208 : index
    %c0_44 = arith.constant 0 : index
    %75 = vector.load %arg6[%c208, %c0_44] : memref<464x128xf32, #tpu.memory_space<vmem>>, vector<16x96xf32>
    %cst_45 = arith.constant dense<0.000000e+00> : vector<64x96xf32>
    %76 = tpu.matmul %74, %75, %cst_45 {dimension_numbers = #tpu.dot_dimension_numbers<[1], [0], [0], [1], [0, 0, 1, 1], [], []>} : vector<64x16xf32>, vector<16x96xf32>, vector<64x96xf32> -> vector<64x96xf32>
    %c224 = arith.constant 224 : index
    %c0_46 = arith.constant 0 : index
    %77 = vector.load %arg6[%c224, %c0_46] : memref<464x128xf32, #tpu.memory_space<vmem>>, vector<1x96xf32>
    %78 = vector.broadcast %77 : vector<1x96xf32> to vector<64x96xf32>
    %79 = arith.addf %76, %78 : vector<64x96xf32>
    %c232 = arith.constant 232 : index
    %c0_47 = arith.constant 0 : index
    %80 = vector.load %arg6[%c232, %c0_47] : memref<464x128xf32, #tpu.memory_space<vmem>>, vector<32x96xf32>
    %c264 = arith.constant 264 : index
    %c0_48 = arith.constant 0 : index
    %81 = vector.load %arg6[%c264, %c0_48] : memref<464x128xf32, #tpu.memory_space<vmem>>, vector<1x96xf32>
    %82 = vector.extract_strided_slice %79 {offsets = [0, 0], sizes = [2, 96], strides = [1, 1]} : vector<64x96xf32> to vector<2x96xf32>
    %cst_49 = arith.constant dense<0.000000e+00> : vector<2x96xf32>
    %83 = tpu.matmul %62, %80, %cst_49 {dimension_numbers = #tpu.dot_dimension_numbers<[1], [0], [0], [1], [0, 0, 1, 1], [], []>} : vector<2x32xf32>, vector<32x96xf32>, vector<2x96xf32> -> vector<2x96xf32>
    %84 = vector.broadcast %81 : vector<1x96xf32> to vector<2x96xf32>
    %85 = arith.addf %83, %84 : vector<2x96xf32>
    %86 = vector.extract_strided_slice %82 {offsets = [0, 0], sizes = [2, 32], strides = [1, 1]} : vector<2x96xf32> to vector<2x32xf32>
    %87 = vector.extract_strided_slice %85 {offsets = [0, 0], sizes = [2, 32], strides = [1, 1]} : vector<2x96xf32> to vector<2x32xf32>
    %88 = arith.addf %86, %87 : vector<2x32xf32>
    %cst_50 = arith.constant 5.000000e-01 : f32
    %89 = vector.broadcast %cst_50 : f32 to vector<2x32xf32>
    %90 = arith.mulf %89, %88 : vector<2x32xf32>
    %91 = math.tanh %90 : vector<2x32xf32>
    %cst_51 = arith.constant 5.000000e-01 : f32
    %92 = vector.broadcast %cst_51 : f32 to vector<2x32xf32>
    %93 = arith.mulf %92, %91 : vector<2x32xf32>
    %cst_52 = arith.constant 5.000000e-01 : f32
    %94 = vector.broadcast %cst_52 : f32 to vector<2x32xf32>
    %95 = arith.addf %93, %94 : vector<2x32xf32>
    %96 = vector.extract_strided_slice %82 {offsets = [0, 32], sizes = [2, 32], strides = [1, 1]} : vector<2x96xf32> to vector<2x32xf32>
    %97 = vector.extract_strided_slice %85 {offsets = [0, 32], sizes = [2, 32], strides = [1, 1]} : vector<2x96xf32> to vector<2x32xf32>
    %98 = arith.addf %96, %97 : vector<2x32xf32>
    %cst_53 = arith.constant 5.000000e-01 : f32
    %99 = vector.broadcast %cst_53 : f32 to vector<2x32xf32>
    %100 = arith.mulf %99, %98 : vector<2x32xf32>
    %101 = math.tanh %100 : vector<2x32xf32>
    %cst_54 = arith.constant 5.000000e-01 : f32
    %102 = vector.broadcast %cst_54 : f32 to vector<2x32xf32>
    %103 = arith.mulf %102, %101 : vector<2x32xf32>
    %cst_55 = arith.constant 5.000000e-01 : f32
    %104 = vector.broadcast %cst_55 : f32 to vector<2x32xf32>
    %105 = arith.addf %103, %104 : vector<2x32xf32>
    %106 = vector.extract_strided_slice %82 {offsets = [0, 64], sizes = [2, 32], strides = [1, 1]} : vector<2x96xf32> to vector<2x32xf32>
    %107 = vector.extract_strided_slice %85 {offsets = [0, 64], sizes = [2, 32], strides = [1, 1]} : vector<2x96xf32> to vector<2x32xf32>
    %108 = arith.mulf %95, %107 : vector<2x32xf32>
    %109 = arith.addf %106, %108 : vector<2x32xf32>
    %110 = math.tanh %109 : vector<2x32xf32>
    %cst_56 = arith.constant 1.000000e+00 : f32
    %111 = vector.broadcast %cst_56 : f32 to vector<2x32xf32>
    %112 = arith.subf %111, %105 : vector<2x32xf32>
    %113 = arith.mulf %112, %110 : vector<2x32xf32>
    %114 = arith.mulf %105, %62 : vector<2x32xf32>
    %115 = arith.addf %113, %114 : vector<2x32xf32>
    %c0_57 = arith.constant 0 : index
    %c0_58 = arith.constant 0 : index
    %116 = vector.load %arg8[%c0_57, %c0_58] : memref<64x32xf32, #tpu.memory_space<vmem>>, vector<2x32xf32>
    tpu.vector_store %arg8[%c0_57, %c0_58], %115 {strides = array<i32>} : memref<64x32xf32, #tpu.memory_space<vmem>>, vector<2x32xf32>,
    %117 = vector.extract_strided_slice %79 {offsets = [8, 0], sizes = [2, 96], strides = [1, 1]} : vector<64x96xf32> to vector<2x96xf32>
    %cst_59 = arith.constant dense<0.000000e+00> : vector<2x96xf32>
    %118 = tpu.matmul %115, %80, %cst_59 {dimension_numbers = #tpu.dot_dimension_numbers<[1], [0], [0], [1], [0, 0, 1, 1], [], []>} : vector<2x32xf32>, vector<32x96xf32>, vector<2x96xf32> -> vector<2x96xf32>
    %119 = vector.broadcast %81 : vector<1x96xf32> to vector<2x96xf32>
    %120 = arith.addf %118, %119 : vector<2x96xf32>
    %121 = vector.extract_strided_slice %117 {offsets = [0, 0], sizes = [2, 32], strides = [1, 1]} : vector<2x96xf32> to vector<2x32xf32>
    %122 = vector.extract_strided_slice %120 {offsets = [0, 0], sizes = [2, 32], strides = [1, 1]} : vector<2x96xf32> to vector<2x32xf32>
    %123 = arith.addf %121, %122 : vector<2x32xf32>
    %cst_60 = arith.constant 5.000000e-01 : f32
    %124 = vector.broadcast %cst_60 : f32 to vector<2x32xf32>
    %125 = arith.mulf %124, %123 : vector<2x32xf32>
    %126 = math.tanh %125 : vector<2x32xf32>
    %cst_61 = arith.constant 5.000000e-01 : f32
    %127 = vector.broadcast %cst_61 : f32 to vector<2x32xf32>
    %128 = arith.mulf %127, %126 : vector<2x32xf32>
    %cst_62 = arith.constant 5.000000e-01 : f32
    %129 = vector.broadcast %cst_62 : f32 to vector<2x32xf32>
    %130 = arith.addf %128, %129 : vector<2x32xf32>
    %131 = vector.extract_strided_slice %117 {offsets = [0, 32], sizes = [2, 32], strides = [1, 1]} : vector<2x96xf32> to vector<2x32xf32>
    %132 = vector.extract_strided_slice %120 {offsets = [0, 32], sizes = [2, 32], strides = [1, 1]} : vector<2x96xf32> to vector<2x32xf32>
    %133 = arith.addf %131, %132 : vector<2x32xf32>
    %cst_63 = arith.constant 5.000000e-01 : f32
    %134 = vector.broadcast %cst_63 : f32 to vector<2x32xf32>
    %135 = arith.mulf %134, %133 : vector<2x32xf32>
    %136 = math.tanh %135 : vector<2x32xf32>
    %cst_64 = arith.constant 5.000000e-01 : f32
    %137 = vector.broadcast %cst_64 : f32 to vector<2x32xf32>
    %138 = arith.mulf %137, %136 : vector<2x32xf32>
    %cst_65 = arith.constant 5.000000e-01 : f32
    %139 = vector.broadcast %cst_65 : f32 to vector<2x32xf32>
    %140 = arith.addf %138, %139 : vector<2x32xf32>
    %141 = vector.extract_strided_slice %117 {offsets = [0, 64], sizes = [2, 32], strides = [1, 1]} : vector<2x96xf32> to vector<2x32xf32>
    %142 = vector.extract_strided_slice %120 {offsets = [0, 64], sizes = [2, 32], strides = [1, 1]} : vector<2x96xf32> to vector<2x32xf32>
    %143 = arith.mulf %130, %142 : vector<2x32xf32>
    %144 = arith.addf %141, %143 : vector<2x32xf32>
    %145 = math.tanh %144 : vector<2x32xf32>
    %cst_66 = arith.constant 1.000000e+00 : f32
    %146 = vector.broadcast %cst_66 : f32 to vector<2x32xf32>
    %147 = arith.subf %146, %140 : vector<2x32xf32>
    %148 = arith.mulf %147, %145 : vector<2x32xf32>
    %149 = arith.mulf %140, %115 : vector<2x32xf32>
    %150 = arith.addf %148, %149 : vector<2x32xf32>
    %c8 = arith.constant 8 : index
    %c0_67 = arith.constant 0 : index
    %151 = vector.load %arg8[%c8, %c0_67] : memref<64x32xf32, #tpu.memory_space<vmem>>, vector<2x32xf32>
    tpu.vector_store %arg8[%c8, %c0_67], %150 {strides = array<i32>} : memref<64x32xf32, #tpu.memory_space<vmem>>, vector<2x32xf32>,
    %152 = vector.extract_strided_slice %79 {offsets = [16, 0], sizes = [2, 96], strides = [1, 1]} : vector<64x96xf32> to vector<2x96xf32>
    %cst_68 = arith.constant dense<0.000000e+00> : vector<2x96xf32>
    %153 = tpu.matmul %150, %80, %cst_68 {dimension_numbers = #tpu.dot_dimension_numbers<[1], [0], [0], [1], [0, 0, 1, 1], [], []>} : vector<2x32xf32>, vector<32x96xf32>, vector<2x96xf32> -> vector<2x96xf32>
    %154 = vector.broadcast %81 : vector<1x96xf32> to vector<2x96xf32>
    %155 = arith.addf %153, %154 : vector<2x96xf32>
    %156 = vector.extract_strided_slice %152 {offsets = [0, 0], sizes = [2, 32], strides = [1, 1]} : vector<2x96xf32> to vector<2x32xf32>
    %157 = vector.extract_strided_slice %155 {offsets = [0, 0], sizes = [2, 32], strides = [1, 1]} : vector<2x96xf32> to vector<2x32xf32>
    %158 = arith.addf %156, %157 : vector<2x32xf32>
    %cst_69 = arith.constant 5.000000e-01 : f32
    %159 = vector.broadcast %cst_69 : f32 to vector<2x32xf32>
    %160 = arith.mulf %159, %158 : vector<2x32xf32>
    %161 = math.tanh %160 : vector<2x32xf32>
    %cst_70 = arith.constant 5.000000e-01 : f32
    %162 = vector.broadcast %cst_70 : f32 to vector<2x32xf32>
    %163 = arith.mulf %162, %161 : vector<2x32xf32>
    %cst_71 = arith.constant 5.000000e-01 : f32
    %164 = vector.broadcast %cst_71 : f32 to vector<2x32xf32>
    %165 = arith.addf %163, %164 : vector<2x32xf32>
    %166 = vector.extract_strided_slice %152 {offsets = [0, 32], sizes = [2, 32], strides = [1, 1]} : vector<2x96xf32> to vector<2x32xf32>
    %167 = vector.extract_strided_slice %155 {offsets = [0, 32], sizes = [2, 32], strides = [1, 1]} : vector<2x96xf32> to vector<2x32xf32>
    %168 = arith.addf %166, %167 : vector<2x32xf32>
    %cst_72 = arith.constant 5.000000e-01 : f32
    %169 = vector.broadcast %cst_72 : f32 to vector<2x32xf32>
    %170 = arith.mulf %169, %168 : vector<2x32xf32>
    %171 = math.tanh %170 : vector<2x32xf32>
    %cst_73 = arith.constant 5.000000e-01 : f32
    %172 = vector.broadcast %cst_73 : f32 to vector<2x32xf32>
    %173 = arith.mulf %172, %171 : vector<2x32xf32>
    %cst_74 = arith.constant 5.000000e-01 : f32
    %174 = vector.broadcast %cst_74 : f32 to vector<2x32xf32>
    %175 = arith.addf %173, %174 : vector<2x32xf32>
    %176 = vector.extract_strided_slice %152 {offsets = [0, 64], sizes = [2, 32], strides = [1, 1]} : vector<2x96xf32> to vector<2x32xf32>
    %177 = vector.extract_strided_slice %155 {offsets = [0, 64], sizes = [2, 32], strides = [1, 1]} : vector<2x96xf32> to vector<2x32xf32>
    %178 = arith.mulf %165, %177 : vector<2x32xf32>
    %179 = arith.addf %176, %178 : vector<2x32xf32>
    %180 = math.tanh %179 : vector<2x32xf32>
    %cst_75 = arith.constant 1.000000e+00 : f32
    %181 = vector.broadcast %cst_75 : f32 to vector<2x32xf32>
    %182 = arith.subf %181, %175 : vector<2x32xf32>
    %183 = arith.mulf %182, %180 : vector<2x32xf32>
    %184 = arith.mulf %175, %150 : vector<2x32xf32>
    %185 = arith.addf %183, %184 : vector<2x32xf32>
    %c16 = arith.constant 16 : index
    %c0_76 = arith.constant 0 : index
    %186 = vector.load %arg8[%c16, %c0_76] : memref<64x32xf32, #tpu.memory_space<vmem>>, vector<2x32xf32>
    tpu.vector_store %arg8[%c16, %c0_76], %185 {strides = array<i32>} : memref<64x32xf32, #tpu.memory_space<vmem>>, vector<2x32xf32>,
    %187 = vector.extract_strided_slice %79 {offsets = [24, 0], sizes = [2, 96], strides = [1, 1]} : vector<64x96xf32> to vector<2x96xf32>
    %cst_77 = arith.constant dense<0.000000e+00> : vector<2x96xf32>
    %188 = tpu.matmul %185, %80, %cst_77 {dimension_numbers = #tpu.dot_dimension_numbers<[1], [0], [0], [1], [0, 0, 1, 1], [], []>} : vector<2x32xf32>, vector<32x96xf32>, vector<2x96xf32> -> vector<2x96xf32>
    %189 = vector.broadcast %81 : vector<1x96xf32> to vector<2x96xf32>
    %190 = arith.addf %188, %189 : vector<2x96xf32>
    %191 = vector.extract_strided_slice %187 {offsets = [0, 0], sizes = [2, 32], strides = [1, 1]} : vector<2x96xf32> to vector<2x32xf32>
    %192 = vector.extract_strided_slice %190 {offsets = [0, 0], sizes = [2, 32], strides = [1, 1]} : vector<2x96xf32> to vector<2x32xf32>
    %193 = arith.addf %191, %192 : vector<2x32xf32>
    %cst_78 = arith.constant 5.000000e-01 : f32
    %194 = vector.broadcast %cst_78 : f32 to vector<2x32xf32>
    %195 = arith.mulf %194, %193 : vector<2x32xf32>
    %196 = math.tanh %195 : vector<2x32xf32>
    %cst_79 = arith.constant 5.000000e-01 : f32
    %197 = vector.broadcast %cst_79 : f32 to vector<2x32xf32>
    %198 = arith.mulf %197, %196 : vector<2x32xf32>
    %cst_80 = arith.constant 5.000000e-01 : f32
    %199 = vector.broadcast %cst_80 : f32 to vector<2x32xf32>
    %200 = arith.addf %198, %199 : vector<2x32xf32>
    %201 = vector.extract_strided_slice %187 {offsets = [0, 32], sizes = [2, 32], strides = [1, 1]} : vector<2x96xf32> to vector<2x32xf32>
    %202 = vector.extract_strided_slice %190 {offsets = [0, 32], sizes = [2, 32], strides = [1, 1]} : vector<2x96xf32> to vector<2x32xf32>
    %203 = arith.addf %201, %202 : vector<2x32xf32>
    %cst_81 = arith.constant 5.000000e-01 : f32
    %204 = vector.broadcast %cst_81 : f32 to vector<2x32xf32>
    %205 = arith.mulf %204, %203 : vector<2x32xf32>
    %206 = math.tanh %205 : vector<2x32xf32>
    %cst_82 = arith.constant 5.000000e-01 : f32
    %207 = vector.broadcast %cst_82 : f32 to vector<2x32xf32>
    %208 = arith.mulf %207, %206 : vector<2x32xf32>
    %cst_83 = arith.constant 5.000000e-01 : f32
    %209 = vector.broadcast %cst_83 : f32 to vector<2x32xf32>
    %210 = arith.addf %208, %209 : vector<2x32xf32>
    %211 = vector.extract_strided_slice %187 {offsets = [0, 64], sizes = [2, 32], strides = [1, 1]} : vector<2x96xf32> to vector<2x32xf32>
    %212 = vector.extract_strided_slice %190 {offsets = [0, 64], sizes = [2, 32], strides = [1, 1]} : vector<2x96xf32> to vector<2x32xf32>
    %213 = arith.mulf %200, %212 : vector<2x32xf32>
    %214 = arith.addf %211, %213 : vector<2x32xf32>
    %215 = math.tanh %214 : vector<2x32xf32>
    %cst_84 = arith.constant 1.000000e+00 : f32
    %216 = vector.broadcast %cst_84 : f32 to vector<2x32xf32>
    %217 = arith.subf %216, %210 : vector<2x32xf32>
    %218 = arith.mulf %217, %215 : vector<2x32xf32>
    %219 = arith.mulf %210, %185 : vector<2x32xf32>
    %220 = arith.addf %218, %219 : vector<2x32xf32>
    %c24_85 = arith.constant 24 : index
    %c0_86 = arith.constant 0 : index
    %221 = vector.load %arg8[%c24_85, %c0_86] : memref<64x32xf32, #tpu.memory_space<vmem>>, vector<2x32xf32>
    tpu.vector_store %arg8[%c24_85, %c0_86], %220 {strides = array<i32>} : memref<64x32xf32, #tpu.memory_space<vmem>>, vector<2x32xf32>,
    %222 = vector.extract_strided_slice %79 {offsets = [32, 0], sizes = [2, 96], strides = [1, 1]} : vector<64x96xf32> to vector<2x96xf32>
    %cst_87 = arith.constant dense<0.000000e+00> : vector<2x96xf32>
    %223 = tpu.matmul %220, %80, %cst_87 {dimension_numbers = #tpu.dot_dimension_numbers<[1], [0], [0], [1], [0, 0, 1, 1], [], []>} : vector<2x32xf32>, vector<32x96xf32>, vector<2x96xf32> -> vector<2x96xf32>
    %224 = vector.broadcast %81 : vector<1x96xf32> to vector<2x96xf32>
    %225 = arith.addf %223, %224 : vector<2x96xf32>
    %226 = vector.extract_strided_slice %222 {offsets = [0, 0], sizes = [2, 32], strides = [1, 1]} : vector<2x96xf32> to vector<2x32xf32>
    %227 = vector.extract_strided_slice %225 {offsets = [0, 0], sizes = [2, 32], strides = [1, 1]} : vector<2x96xf32> to vector<2x32xf32>
    %228 = arith.addf %226, %227 : vector<2x32xf32>
    %cst_88 = arith.constant 5.000000e-01 : f32
    %229 = vector.broadcast %cst_88 : f32 to vector<2x32xf32>
    %230 = arith.mulf %229, %228 : vector<2x32xf32>
    %231 = math.tanh %230 : vector<2x32xf32>
    %cst_89 = arith.constant 5.000000e-01 : f32
    %232 = vector.broadcast %cst_89 : f32 to vector<2x32xf32>
    %233 = arith.mulf %232, %231 : vector<2x32xf32>
    %cst_90 = arith.constant 5.000000e-01 : f32
    %234 = vector.broadcast %cst_90 : f32 to vector<2x32xf32>
    %235 = arith.addf %233, %234 : vector<2x32xf32>
    %236 = vector.extract_strided_slice %222 {offsets = [0, 32], sizes = [2, 32], strides = [1, 1]} : vector<2x96xf32> to vector<2x32xf32>
    %237 = vector.extract_strided_slice %225 {offsets = [0, 32], sizes = [2, 32], strides = [1, 1]} : vector<2x96xf32> to vector<2x32xf32>
    %238 = arith.addf %236, %237 : vector<2x32xf32>
    %cst_91 = arith.constant 5.000000e-01 : f32
    %239 = vector.broadcast %cst_91 : f32 to vector<2x32xf32>
    %240 = arith.mulf %239, %238 : vector<2x32xf32>
    %241 = math.tanh %240 : vector<2x32xf32>
    %cst_92 = arith.constant 5.000000e-01 : f32
    %242 = vector.broadcast %cst_92 : f32 to vector<2x32xf32>
    %243 = arith.mulf %242, %241 : vector<2x32xf32>
    %cst_93 = arith.constant 5.000000e-01 : f32
    %244 = vector.broadcast %cst_93 : f32 to vector<2x32xf32>
    %245 = arith.addf %243, %244 : vector<2x32xf32>
    %246 = vector.extract_strided_slice %222 {offsets = [0, 64], sizes = [2, 32], strides = [1, 1]} : vector<2x96xf32> to vector<2x32xf32>
    %247 = vector.extract_strided_slice %225 {offsets = [0, 64], sizes = [2, 32], strides = [1, 1]} : vector<2x96xf32> to vector<2x32xf32>
    %248 = arith.mulf %235, %247 : vector<2x32xf32>
    %249 = arith.addf %246, %248 : vector<2x32xf32>
    %250 = math.tanh %249 : vector<2x32xf32>
    %cst_94 = arith.constant 1.000000e+00 : f32
    %251 = vector.broadcast %cst_94 : f32 to vector<2x32xf32>
    %252 = arith.subf %251, %245 : vector<2x32xf32>
    %253 = arith.mulf %252, %250 : vector<2x32xf32>
    %254 = arith.mulf %245, %220 : vector<2x32xf32>
    %255 = arith.addf %253, %254 : vector<2x32xf32>
    %c32_95 = arith.constant 32 : index
    %c0_96 = arith.constant 0 : index
    %256 = vector.load %arg8[%c32_95, %c0_96] : memref<64x32xf32, #tpu.memory_space<vmem>>, vector<2x32xf32>
    tpu.vector_store %arg8[%c32_95, %c0_96], %255 {strides = array<i32>} : memref<64x32xf32, #tpu.memory_space<vmem>>, vector<2x32xf32>,
    %257 = vector.extract_strided_slice %79 {offsets = [40, 0], sizes = [2, 96], strides = [1, 1]} : vector<64x96xf32> to vector<2x96xf32>
    %cst_97 = arith.constant dense<0.000000e+00> : vector<2x96xf32>
    %258 = tpu.matmul %255, %80, %cst_97 {dimension_numbers = #tpu.dot_dimension_numbers<[1], [0], [0], [1], [0, 0, 1, 1], [], []>} : vector<2x32xf32>, vector<32x96xf32>, vector<2x96xf32> -> vector<2x96xf32>
    %259 = vector.broadcast %81 : vector<1x96xf32> to vector<2x96xf32>
    %260 = arith.addf %258, %259 : vector<2x96xf32>
    %261 = vector.extract_strided_slice %257 {offsets = [0, 0], sizes = [2, 32], strides = [1, 1]} : vector<2x96xf32> to vector<2x32xf32>
    %262 = vector.extract_strided_slice %260 {offsets = [0, 0], sizes = [2, 32], strides = [1, 1]} : vector<2x96xf32> to vector<2x32xf32>
    %263 = arith.addf %261, %262 : vector<2x32xf32>
    %cst_98 = arith.constant 5.000000e-01 : f32
    %264 = vector.broadcast %cst_98 : f32 to vector<2x32xf32>
    %265 = arith.mulf %264, %263 : vector<2x32xf32>
    %266 = math.tanh %265 : vector<2x32xf32>
    %cst_99 = arith.constant 5.000000e-01 : f32
    %267 = vector.broadcast %cst_99 : f32 to vector<2x32xf32>
    %268 = arith.mulf %267, %266 : vector<2x32xf32>
    %cst_100 = arith.constant 5.000000e-01 : f32
    %269 = vector.broadcast %cst_100 : f32 to vector<2x32xf32>
    %270 = arith.addf %268, %269 : vector<2x32xf32>
    %271 = vector.extract_strided_slice %257 {offsets = [0, 32], sizes = [2, 32], strides = [1, 1]} : vector<2x96xf32> to vector<2x32xf32>
    %272 = vector.extract_strided_slice %260 {offsets = [0, 32], sizes = [2, 32], strides = [1, 1]} : vector<2x96xf32> to vector<2x32xf32>
    %273 = arith.addf %271, %272 : vector<2x32xf32>
    %cst_101 = arith.constant 5.000000e-01 : f32
    %274 = vector.broadcast %cst_101 : f32 to vector<2x32xf32>
    %275 = arith.mulf %274, %273 : vector<2x32xf32>
    %276 = math.tanh %275 : vector<2x32xf32>
    %cst_102 = arith.constant 5.000000e-01 : f32
    %277 = vector.broadcast %cst_102 : f32 to vector<2x32xf32>
    %278 = arith.mulf %277, %276 : vector<2x32xf32>
    %cst_103 = arith.constant 5.000000e-01 : f32
    %279 = vector.broadcast %cst_103 : f32 to vector<2x32xf32>
    %280 = arith.addf %278, %279 : vector<2x32xf32>
    %281 = vector.extract_strided_slice %257 {offsets = [0, 64], sizes = [2, 32], strides = [1, 1]} : vector<2x96xf32> to vector<2x32xf32>
    %282 = vector.extract_strided_slice %260 {offsets = [0, 64], sizes = [2, 32], strides = [1, 1]} : vector<2x96xf32> to vector<2x32xf32>
    %283 = arith.mulf %270, %282 : vector<2x32xf32>
    %284 = arith.addf %281, %283 : vector<2x32xf32>
    %285 = math.tanh %284 : vector<2x32xf32>
    %cst_104 = arith.constant 1.000000e+00 : f32
    %286 = vector.broadcast %cst_104 : f32 to vector<2x32xf32>
    %287 = arith.subf %286, %280 : vector<2x32xf32>
    %288 = arith.mulf %287, %285 : vector<2x32xf32>
    %289 = arith.mulf %280, %255 : vector<2x32xf32>
    %290 = arith.addf %288, %289 : vector<2x32xf32>
    %c40 = arith.constant 40 : index
    %c0_105 = arith.constant 0 : index
    %291 = vector.load %arg8[%c40, %c0_105] : memref<64x32xf32, #tpu.memory_space<vmem>>, vector<2x32xf32>
    tpu.vector_store %arg8[%c40, %c0_105], %290 {strides = array<i32>} : memref<64x32xf32, #tpu.memory_space<vmem>>, vector<2x32xf32>,
    %292 = vector.extract_strided_slice %79 {offsets = [48, 0], sizes = [2, 96], strides = [1, 1]} : vector<64x96xf32> to vector<2x96xf32>
    %cst_106 = arith.constant dense<0.000000e+00> : vector<2x96xf32>
    %293 = tpu.matmul %290, %80, %cst_106 {dimension_numbers = #tpu.dot_dimension_numbers<[1], [0], [0], [1], [0, 0, 1, 1], [], []>} : vector<2x32xf32>, vector<32x96xf32>, vector<2x96xf32> -> vector<2x96xf32>
    %294 = vector.broadcast %81 : vector<1x96xf32> to vector<2x96xf32>
    %295 = arith.addf %293, %294 : vector<2x96xf32>
    %296 = vector.extract_strided_slice %292 {offsets = [0, 0], sizes = [2, 32], strides = [1, 1]} : vector<2x96xf32> to vector<2x32xf32>
    %297 = vector.extract_strided_slice %295 {offsets = [0, 0], sizes = [2, 32], strides = [1, 1]} : vector<2x96xf32> to vector<2x32xf32>
    %298 = arith.addf %296, %297 : vector<2x32xf32>
    %cst_107 = arith.constant 5.000000e-01 : f32
    %299 = vector.broadcast %cst_107 : f32 to vector<2x32xf32>
    %300 = arith.mulf %299, %298 : vector<2x32xf32>
    %301 = math.tanh %300 : vector<2x32xf32>
    %cst_108 = arith.constant 5.000000e-01 : f32
    %302 = vector.broadcast %cst_108 : f32 to vector<2x32xf32>
    %303 = arith.mulf %302, %301 : vector<2x32xf32>
    %cst_109 = arith.constant 5.000000e-01 : f32
    %304 = vector.broadcast %cst_109 : f32 to vector<2x32xf32>
    %305 = arith.addf %303, %304 : vector<2x32xf32>
    %306 = vector.extract_strided_slice %292 {offsets = [0, 32], sizes = [2, 32], strides = [1, 1]} : vector<2x96xf32> to vector<2x32xf32>
    %307 = vector.extract_strided_slice %295 {offsets = [0, 32], sizes = [2, 32], strides = [1, 1]} : vector<2x96xf32> to vector<2x32xf32>
    %308 = arith.addf %306, %307 : vector<2x32xf32>
    %cst_110 = arith.constant 5.000000e-01 : f32
    %309 = vector.broadcast %cst_110 : f32 to vector<2x32xf32>
    %310 = arith.mulf %309, %308 : vector<2x32xf32>
    %311 = math.tanh %310 : vector<2x32xf32>
    %cst_111 = arith.constant 5.000000e-01 : f32
    %312 = vector.broadcast %cst_111 : f32 to vector<2x32xf32>
    %313 = arith.mulf %312, %311 : vector<2x32xf32>
    %cst_112 = arith.constant 5.000000e-01 : f32
    %314 = vector.broadcast %cst_112 : f32 to vector<2x32xf32>
    %315 = arith.addf %313, %314 : vector<2x32xf32>
    %316 = vector.extract_strided_slice %292 {offsets = [0, 64], sizes = [2, 32], strides = [1, 1]} : vector<2x96xf32> to vector<2x32xf32>
    %317 = vector.extract_strided_slice %295 {offsets = [0, 64], sizes = [2, 32], strides = [1, 1]} : vector<2x96xf32> to vector<2x32xf32>
    %318 = arith.mulf %305, %317 : vector<2x32xf32>
    %319 = arith.addf %316, %318 : vector<2x32xf32>
    %320 = math.tanh %319 : vector<2x32xf32>
    %cst_113 = arith.constant 1.000000e+00 : f32
    %321 = vector.broadcast %cst_113 : f32 to vector<2x32xf32>
    %322 = arith.subf %321, %315 : vector<2x32xf32>
    %323 = arith.mulf %322, %320 : vector<2x32xf32>
    %324 = arith.mulf %315, %290 : vector<2x32xf32>
    %325 = arith.addf %323, %324 : vector<2x32xf32>
    %c48_114 = arith.constant 48 : index
    %c0_115 = arith.constant 0 : index
    %326 = vector.load %arg8[%c48_114, %c0_115] : memref<64x32xf32, #tpu.memory_space<vmem>>, vector<2x32xf32>
    tpu.vector_store %arg8[%c48_114, %c0_115], %325 {strides = array<i32>} : memref<64x32xf32, #tpu.memory_space<vmem>>, vector<2x32xf32>,
    %327 = vector.extract_strided_slice %79 {offsets = [56, 0], sizes = [2, 96], strides = [1, 1]} : vector<64x96xf32> to vector<2x96xf32>
    %cst_116 = arith.constant dense<0.000000e+00> : vector<2x96xf32>
    %328 = tpu.matmul %325, %80, %cst_116 {dimension_numbers = #tpu.dot_dimension_numbers<[1], [0], [0], [1], [0, 0, 1, 1], [], []>} : vector<2x32xf32>, vector<32x96xf32>, vector<2x96xf32> -> vector<2x96xf32>
    %329 = vector.broadcast %81 : vector<1x96xf32> to vector<2x96xf32>
    %330 = arith.addf %328, %329 : vector<2x96xf32>
    %331 = vector.extract_strided_slice %327 {offsets = [0, 0], sizes = [2, 32], strides = [1, 1]} : vector<2x96xf32> to vector<2x32xf32>
    %332 = vector.extract_strided_slice %330 {offsets = [0, 0], sizes = [2, 32], strides = [1, 1]} : vector<2x96xf32> to vector<2x32xf32>
    %333 = arith.addf %331, %332 : vector<2x32xf32>
    %cst_117 = arith.constant 5.000000e-01 : f32
    %334 = vector.broadcast %cst_117 : f32 to vector<2x32xf32>
    %335 = arith.mulf %334, %333 : vector<2x32xf32>
    %336 = math.tanh %335 : vector<2x32xf32>
    %cst_118 = arith.constant 5.000000e-01 : f32
    %337 = vector.broadcast %cst_118 : f32 to vector<2x32xf32>
    %338 = arith.mulf %337, %336 : vector<2x32xf32>
    %cst_119 = arith.constant 5.000000e-01 : f32
    %339 = vector.broadcast %cst_119 : f32 to vector<2x32xf32>
    %340 = arith.addf %338, %339 : vector<2x32xf32>
    %341 = vector.extract_strided_slice %327 {offsets = [0, 32], sizes = [2, 32], strides = [1, 1]} : vector<2x96xf32> to vector<2x32xf32>
    %342 = vector.extract_strided_slice %330 {offsets = [0, 32], sizes = [2, 32], strides = [1, 1]} : vector<2x96xf32> to vector<2x32xf32>
    %343 = arith.addf %341, %342 : vector<2x32xf32>
    %cst_120 = arith.constant 5.000000e-01 : f32
    %344 = vector.broadcast %cst_120 : f32 to vector<2x32xf32>
    %345 = arith.mulf %344, %343 : vector<2x32xf32>
    %346 = math.tanh %345 : vector<2x32xf32>
    %cst_121 = arith.constant 5.000000e-01 : f32
    %347 = vector.broadcast %cst_121 : f32 to vector<2x32xf32>
    %348 = arith.mulf %347, %346 : vector<2x32xf32>
    %cst_122 = arith.constant 5.000000e-01 : f32
    %349 = vector.broadcast %cst_122 : f32 to vector<2x32xf32>
    %350 = arith.addf %348, %349 : vector<2x32xf32>
    %351 = vector.extract_strided_slice %327 {offsets = [0, 64], sizes = [2, 32], strides = [1, 1]} : vector<2x96xf32> to vector<2x32xf32>
    %352 = vector.extract_strided_slice %330 {offsets = [0, 64], sizes = [2, 32], strides = [1, 1]} : vector<2x96xf32> to vector<2x32xf32>
    %353 = arith.mulf %340, %352 : vector<2x32xf32>
    %354 = arith.addf %351, %353 : vector<2x32xf32>
    %355 = math.tanh %354 : vector<2x32xf32>
    %cst_123 = arith.constant 1.000000e+00 : f32
    %356 = vector.broadcast %cst_123 : f32 to vector<2x32xf32>
    %357 = arith.subf %356, %350 : vector<2x32xf32>
    %358 = arith.mulf %357, %355 : vector<2x32xf32>
    %359 = arith.mulf %350, %325 : vector<2x32xf32>
    %360 = arith.addf %358, %359 : vector<2x32xf32>
    %c56_124 = arith.constant 56 : index
    %c0_125 = arith.constant 0 : index
    %361 = vector.load %arg8[%c56_124, %c0_125] : memref<64x32xf32, #tpu.memory_space<vmem>>, vector<2x32xf32>
    tpu.vector_store %arg8[%c56_124, %c0_125], %360 {strides = array<i32>} : memref<64x32xf32, #tpu.memory_space<vmem>>, vector<2x32xf32>,
    %c0_126 = arith.constant 0 : index
    %c0_127 = arith.constant 0 : index
    %362 = vector.load %arg8[%c0_126, %c0_127] : memref<64x32xf32, #tpu.memory_space<vmem>>, vector<64x32xf32>
    %c272 = arith.constant 272 : index
    %c0_128 = arith.constant 0 : index
    %363 = vector.load %arg6[%c272, %c0_128] : memref<464x128xf32, #tpu.memory_space<vmem>>, vector<32x96xf32>
    %cst_129 = arith.constant dense<0.000000e+00> : vector<64x96xf32>
    %364 = tpu.matmul %362, %363, %cst_129 {dimension_numbers = #tpu.dot_dimension_numbers<[1], [0], [0], [1], [0, 0, 1, 1], [], []>} : vector<64x32xf32>, vector<32x96xf32>, vector<64x96xf32> -> vector<64x96xf32>
    %c304 = arith.constant 304 : index
    %c0_130 = arith.constant 0 : index
    %365 = vector.load %arg6[%c304, %c0_130] : memref<464x128xf32, #tpu.memory_space<vmem>>, vector<1x96xf32>
    %366 = vector.broadcast %365 : vector<1x96xf32> to vector<64x96xf32>
    %367 = arith.addf %364, %366 : vector<64x96xf32>
    %c312 = arith.constant 312 : index
    %c0_131 = arith.constant 0 : index
    %368 = vector.load %arg6[%c312, %c0_131] : memref<464x128xf32, #tpu.memory_space<vmem>>, vector<32x96xf32>
    %c344 = arith.constant 344 : index
    %c0_132 = arith.constant 0 : index
    %369 = vector.load %arg6[%c344, %c0_132] : memref<464x128xf32, #tpu.memory_space<vmem>>, vector<1x96xf32>
    %370 = vector.extract_strided_slice %367 {offsets = [0, 0], sizes = [2, 96], strides = [1, 1]} : vector<64x96xf32> to vector<2x96xf32>
    %cst_133 = arith.constant dense<0.000000e+00> : vector<2x96xf32>
    %371 = tpu.matmul %62, %368, %cst_133 {dimension_numbers = #tpu.dot_dimension_numbers<[1], [0], [0], [1], [0, 0, 1, 1], [], []>} : vector<2x32xf32>, vector<32x96xf32>, vector<2x96xf32> -> vector<2x96xf32>
    %372 = vector.broadcast %369 : vector<1x96xf32> to vector<2x96xf32>
    %373 = arith.addf %371, %372 : vector<2x96xf32>
    %374 = vector.extract_strided_slice %370 {offsets = [0, 0], sizes = [2, 32], strides = [1, 1]} : vector<2x96xf32> to vector<2x32xf32>
    %375 = vector.extract_strided_slice %373 {offsets = [0, 0], sizes = [2, 32], strides = [1, 1]} : vector<2x96xf32> to vector<2x32xf32>
    %376 = arith.addf %374, %375 : vector<2x32xf32>
    %cst_134 = arith.constant 5.000000e-01 : f32
    %377 = vector.broadcast %cst_134 : f32 to vector<2x32xf32>
    %378 = arith.mulf %377, %376 : vector<2x32xf32>
    %379 = math.tanh %378 : vector<2x32xf32>
    %cst_135 = arith.constant 5.000000e-01 : f32
    %380 = vector.broadcast %cst_135 : f32 to vector<2x32xf32>
    %381 = arith.mulf %380, %379 : vector<2x32xf32>
    %cst_136 = arith.constant 5.000000e-01 : f32
    %382 = vector.broadcast %cst_136 : f32 to vector<2x32xf32>
    %383 = arith.addf %381, %382 : vector<2x32xf32>
    %384 = vector.extract_strided_slice %370 {offsets = [0, 32], sizes = [2, 32], strides = [1, 1]} : vector<2x96xf32> to vector<2x32xf32>
    %385 = vector.extract_strided_slice %373 {offsets = [0, 32], sizes = [2, 32], strides = [1, 1]} : vector<2x96xf32> to vector<2x32xf32>
    %386 = arith.addf %384, %385 : vector<2x32xf32>
    %cst_137 = arith.constant 5.000000e-01 : f32
    %387 = vector.broadcast %cst_137 : f32 to vector<2x32xf32>
    %388 = arith.mulf %387, %386 : vector<2x32xf32>
    %389 = math.tanh %388 : vector<2x32xf32>
    %cst_138 = arith.constant 5.000000e-01 : f32
    %390 = vector.broadcast %cst_138 : f32 to vector<2x32xf32>
    %391 = arith.mulf %390, %389 : vector<2x32xf32>
    %cst_139 = arith.constant 5.000000e-01 : f32
    %392 = vector.broadcast %cst_139 : f32 to vector<2x32xf32>
    %393 = arith.addf %391, %392 : vector<2x32xf32>
    %394 = vector.extract_strided_slice %370 {offsets = [0, 64], sizes = [2, 32], strides = [1, 1]} : vector<2x96xf32> to vector<2x32xf32>
    %395 = vector.extract_strided_slice %373 {offsets = [0, 64], sizes = [2, 32], strides = [1, 1]} : vector<2x96xf32> to vector<2x32xf32>
    %396 = arith.mulf %383, %395 : vector<2x32xf32>
    %397 = arith.addf %394, %396 : vector<2x32xf32>
    %398 = math.tanh %397 : vector<2x32xf32>
    %cst_140 = arith.constant 1.000000e+00 : f32
    %399 = vector.broadcast %cst_140 : f32 to vector<2x32xf32>
    %400 = arith.subf %399, %393 : vector<2x32xf32>
    %401 = arith.mulf %400, %398 : vector<2x32xf32>
    %402 = arith.mulf %393, %62 : vector<2x32xf32>
    %403 = arith.addf %401, %402 : vector<2x32xf32>
    %c0_141 = arith.constant 0 : index
    %c0_142 = arith.constant 0 : index
    %404 = vector.load %arg9[%c0_141, %c0_142] : memref<64x32xf32, #tpu.memory_space<vmem>>, vector<2x32xf32>
    tpu.vector_store %arg9[%c0_141, %c0_142], %403 {strides = array<i32>} : memref<64x32xf32, #tpu.memory_space<vmem>>, vector<2x32xf32>,
    %405 = vector.extract_strided_slice %367 {offsets = [8, 0], sizes = [2, 96], strides = [1, 1]} : vector<64x96xf32> to vector<2x96xf32>
    %cst_143 = arith.constant dense<0.000000e+00> : vector<2x96xf32>
    %406 = tpu.matmul %403, %368, %cst_143 {dimension_numbers = #tpu.dot_dimension_numbers<[1], [0], [0], [1], [0, 0, 1, 1], [], []>} : vector<2x32xf32>, vector<32x96xf32>, vector<2x96xf32> -> vector<2x96xf32>
    %407 = vector.broadcast %369 : vector<1x96xf32> to vector<2x96xf32>
    %408 = arith.addf %406, %407 : vector<2x96xf32>
    %409 = vector.extract_strided_slice %405 {offsets = [0, 0], sizes = [2, 32], strides = [1, 1]} : vector<2x96xf32> to vector<2x32xf32>
    %410 = vector.extract_strided_slice %408 {offsets = [0, 0], sizes = [2, 32], strides = [1, 1]} : vector<2x96xf32> to vector<2x32xf32>
    %411 = arith.addf %409, %410 : vector<2x32xf32>
    %cst_144 = arith.constant 5.000000e-01 : f32
    %412 = vector.broadcast %cst_144 : f32 to vector<2x32xf32>
    %413 = arith.mulf %412, %411 : vector<2x32xf32>
    %414 = math.tanh %413 : vector<2x32xf32>
    %cst_145 = arith.constant 5.000000e-01 : f32
    %415 = vector.broadcast %cst_145 : f32 to vector<2x32xf32>
    %416 = arith.mulf %415, %414 : vector<2x32xf32>
    %cst_146 = arith.constant 5.000000e-01 : f32
    %417 = vector.broadcast %cst_146 : f32 to vector<2x32xf32>
    %418 = arith.addf %416, %417 : vector<2x32xf32>
    %419 = vector.extract_strided_slice %405 {offsets = [0, 32], sizes = [2, 32], strides = [1, 1]} : vector<2x96xf32> to vector<2x32xf32>
    %420 = vector.extract_strided_slice %408 {offsets = [0, 32], sizes = [2, 32], strides = [1, 1]} : vector<2x96xf32> to vector<2x32xf32>
    %421 = arith.addf %419, %420 : vector<2x32xf32>
    %cst_147 = arith.constant 5.000000e-01 : f32
    %422 = vector.broadcast %cst_147 : f32 to vector<2x32xf32>
    %423 = arith.mulf %422, %421 : vector<2x32xf32>
    %424 = math.tanh %423 : vector<2x32xf32>
    %cst_148 = arith.constant 5.000000e-01 : f32
    %425 = vector.broadcast %cst_148 : f32 to vector<2x32xf32>
    %426 = arith.mulf %425, %424 : vector<2x32xf32>
    %cst_149 = arith.constant 5.000000e-01 : f32
    %427 = vector.broadcast %cst_149 : f32 to vector<2x32xf32>
    %428 = arith.addf %426, %427 : vector<2x32xf32>
    %429 = vector.extract_strided_slice %405 {offsets = [0, 64], sizes = [2, 32], strides = [1, 1]} : vector<2x96xf32> to vector<2x32xf32>
    %430 = vector.extract_strided_slice %408 {offsets = [0, 64], sizes = [2, 32], strides = [1, 1]} : vector<2x96xf32> to vector<2x32xf32>
    %431 = arith.mulf %418, %430 : vector<2x32xf32>
    %432 = arith.addf %429, %431 : vector<2x32xf32>
    %433 = math.tanh %432 : vector<2x32xf32>
    %cst_150 = arith.constant 1.000000e+00 : f32
    %434 = vector.broadcast %cst_150 : f32 to vector<2x32xf32>
    %435 = arith.subf %434, %428 : vector<2x32xf32>
    %436 = arith.mulf %435, %433 : vector<2x32xf32>
    %437 = arith.mulf %428, %403 : vector<2x32xf32>
    %438 = arith.addf %436, %437 : vector<2x32xf32>
    %c8_151 = arith.constant 8 : index
    %c0_152 = arith.constant 0 : index
    %439 = vector.load %arg9[%c8_151, %c0_152] : memref<64x32xf32, #tpu.memory_space<vmem>>, vector<2x32xf32>
    tpu.vector_store %arg9[%c8_151, %c0_152], %438 {strides = array<i32>} : memref<64x32xf32, #tpu.memory_space<vmem>>, vector<2x32xf32>,
    %440 = vector.extract_strided_slice %367 {offsets = [16, 0], sizes = [2, 96], strides = [1, 1]} : vector<64x96xf32> to vector<2x96xf32>
    %cst_153 = arith.constant dense<0.000000e+00> : vector<2x96xf32>
    %441 = tpu.matmul %438, %368, %cst_153 {dimension_numbers = #tpu.dot_dimension_numbers<[1], [0], [0], [1], [0, 0, 1, 1], [], []>} : vector<2x32xf32>, vector<32x96xf32>, vector<2x96xf32> -> vector<2x96xf32>
    %442 = vector.broadcast %369 : vector<1x96xf32> to vector<2x96xf32>
    %443 = arith.addf %441, %442 : vector<2x96xf32>
    %444 = vector.extract_strided_slice %440 {offsets = [0, 0], sizes = [2, 32], strides = [1, 1]} : vector<2x96xf32> to vector<2x32xf32>
    %445 = vector.extract_strided_slice %443 {offsets = [0, 0], sizes = [2, 32], strides = [1, 1]} : vector<2x96xf32> to vector<2x32xf32>
    %446 = arith.addf %444, %445 : vector<2x32xf32>
    %cst_154 = arith.constant 5.000000e-01 : f32
    %447 = vector.broadcast %cst_154 : f32 to vector<2x32xf32>
    %448 = arith.mulf %447, %446 : vector<2x32xf32>
    %449 = math.tanh %448 : vector<2x32xf32>
    %cst_155 = arith.constant 5.000000e-01 : f32
    %450 = vector.broadcast %cst_155 : f32 to vector<2x32xf32>
    %451 = arith.mulf %450, %449 : vector<2x32xf32>
    %cst_156 = arith.constant 5.000000e-01 : f32
    %452 = vector.broadcast %cst_156 : f32 to vector<2x32xf32>
    %453 = arith.addf %451, %452 : vector<2x32xf32>
    %454 = vector.extract_strided_slice %440 {offsets = [0, 32], sizes = [2, 32], strides = [1, 1]} : vector<2x96xf32> to vector<2x32xf32>
    %455 = vector.extract_strided_slice %443 {offsets = [0, 32], sizes = [2, 32], strides = [1, 1]} : vector<2x96xf32> to vector<2x32xf32>
    %456 = arith.addf %454, %455 : vector<2x32xf32>
    %cst_157 = arith.constant 5.000000e-01 : f32
    %457 = vector.broadcast %cst_157 : f32 to vector<2x32xf32>
    %458 = arith.mulf %457, %456 : vector<2x32xf32>
    %459 = math.tanh %458 : vector<2x32xf32>
    %cst_158 = arith.constant 5.000000e-01 : f32
    %460 = vector.broadcast %cst_158 : f32 to vector<2x32xf32>
    %461 = arith.mulf %460, %459 : vector<2x32xf32>
    %cst_159 = arith.constant 5.000000e-01 : f32
    %462 = vector.broadcast %cst_159 : f32 to vector<2x32xf32>
    %463 = arith.addf %461, %462 : vector<2x32xf32>
    %464 = vector.extract_strided_slice %440 {offsets = [0, 64], sizes = [2, 32], strides = [1, 1]} : vector<2x96xf32> to vector<2x32xf32>
    %465 = vector.extract_strided_slice %443 {offsets = [0, 64], sizes = [2, 32], strides = [1, 1]} : vector<2x96xf32> to vector<2x32xf32>
    %466 = arith.mulf %453, %465 : vector<2x32xf32>
    %467 = arith.addf %464, %466 : vector<2x32xf32>
    %468 = math.tanh %467 : vector<2x32xf32>
    %cst_160 = arith.constant 1.000000e+00 : f32
    %469 = vector.broadcast %cst_160 : f32 to vector<2x32xf32>
    %470 = arith.subf %469, %463 : vector<2x32xf32>
    %471 = arith.mulf %470, %468 : vector<2x32xf32>
    %472 = arith.mulf %463, %438 : vector<2x32xf32>
    %473 = arith.addf %471, %472 : vector<2x32xf32>
    %c16_161 = arith.constant 16 : index
    %c0_162 = arith.constant 0 : index
    %474 = vector.load %arg9[%c16_161, %c0_162] : memref<64x32xf32, #tpu.memory_space<vmem>>, vector<2x32xf32>
    tpu.vector_store %arg9[%c16_161, %c0_162], %473 {strides = array<i32>} : memref<64x32xf32, #tpu.memory_space<vmem>>, vector<2x32xf32>,
    %475 = vector.extract_strided_slice %367 {offsets = [24, 0], sizes = [2, 96], strides = [1, 1]} : vector<64x96xf32> to vector<2x96xf32>
    %cst_163 = arith.constant dense<0.000000e+00> : vector<2x96xf32>
    %476 = tpu.matmul %473, %368, %cst_163 {dimension_numbers = #tpu.dot_dimension_numbers<[1], [0], [0], [1], [0, 0, 1, 1], [], []>} : vector<2x32xf32>, vector<32x96xf32>, vector<2x96xf32> -> vector<2x96xf32>
    %477 = vector.broadcast %369 : vector<1x96xf32> to vector<2x96xf32>
    %478 = arith.addf %476, %477 : vector<2x96xf32>
    %479 = vector.extract_strided_slice %475 {offsets = [0, 0], sizes = [2, 32], strides = [1, 1]} : vector<2x96xf32> to vector<2x32xf32>
    %480 = vector.extract_strided_slice %478 {offsets = [0, 0], sizes = [2, 32], strides = [1, 1]} : vector<2x96xf32> to vector<2x32xf32>
    %481 = arith.addf %479, %480 : vector<2x32xf32>
    %cst_164 = arith.constant 5.000000e-01 : f32
    %482 = vector.broadcast %cst_164 : f32 to vector<2x32xf32>
    %483 = arith.mulf %482, %481 : vector<2x32xf32>
    %484 = math.tanh %483 : vector<2x32xf32>
    %cst_165 = arith.constant 5.000000e-01 : f32
    %485 = vector.broadcast %cst_165 : f32 to vector<2x32xf32>
    %486 = arith.mulf %485, %484 : vector<2x32xf32>
    %cst_166 = arith.constant 5.000000e-01 : f32
    %487 = vector.broadcast %cst_166 : f32 to vector<2x32xf32>
    %488 = arith.addf %486, %487 : vector<2x32xf32>
    %489 = vector.extract_strided_slice %475 {offsets = [0, 32], sizes = [2, 32], strides = [1, 1]} : vector<2x96xf32> to vector<2x32xf32>
    %490 = vector.extract_strided_slice %478 {offsets = [0, 32], sizes = [2, 32], strides = [1, 1]} : vector<2x96xf32> to vector<2x32xf32>
    %491 = arith.addf %489, %490 : vector<2x32xf32>
    %cst_167 = arith.constant 5.000000e-01 : f32
    %492 = vector.broadcast %cst_167 : f32 to vector<2x32xf32>
    %493 = arith.mulf %492, %491 : vector<2x32xf32>
    %494 = math.tanh %493 : vector<2x32xf32>
    %cst_168 = arith.constant 5.000000e-01 : f32
    %495 = vector.broadcast %cst_168 : f32 to vector<2x32xf32>
    %496 = arith.mulf %495, %494 : vector<2x32xf32>
    %cst_169 = arith.constant 5.000000e-01 : f32
    %497 = vector.broadcast %cst_169 : f32 to vector<2x32xf32>
    %498 = arith.addf %496, %497 : vector<2x32xf32>
    %499 = vector.extract_strided_slice %475 {offsets = [0, 64], sizes = [2, 32], strides = [1, 1]} : vector<2x96xf32> to vector<2x32xf32>
    %500 = vector.extract_strided_slice %478 {offsets = [0, 64], sizes = [2, 32], strides = [1, 1]} : vector<2x96xf32> to vector<2x32xf32>
    %501 = arith.mulf %488, %500 : vector<2x32xf32>
    %502 = arith.addf %499, %501 : vector<2x32xf32>
    %503 = math.tanh %502 : vector<2x32xf32>
    %cst_170 = arith.constant 1.000000e+00 : f32
    %504 = vector.broadcast %cst_170 : f32 to vector<2x32xf32>
    %505 = arith.subf %504, %498 : vector<2x32xf32>
    %506 = arith.mulf %505, %503 : vector<2x32xf32>
    %507 = arith.mulf %498, %473 : vector<2x32xf32>
    %508 = arith.addf %506, %507 : vector<2x32xf32>
    %c24_171 = arith.constant 24 : index
    %c0_172 = arith.constant 0 : index
    %509 = vector.load %arg9[%c24_171, %c0_172] : memref<64x32xf32, #tpu.memory_space<vmem>>, vector<2x32xf32>
    tpu.vector_store %arg9[%c24_171, %c0_172], %508 {strides = array<i32>} : memref<64x32xf32, #tpu.memory_space<vmem>>, vector<2x32xf32>,
    %510 = vector.extract_strided_slice %367 {offsets = [32, 0], sizes = [2, 96], strides = [1, 1]} : vector<64x96xf32> to vector<2x96xf32>
    %cst_173 = arith.constant dense<0.000000e+00> : vector<2x96xf32>
    %511 = tpu.matmul %508, %368, %cst_173 {dimension_numbers = #tpu.dot_dimension_numbers<[1], [0], [0], [1], [0, 0, 1, 1], [], []>} : vector<2x32xf32>, vector<32x96xf32>, vector<2x96xf32> -> vector<2x96xf32>
    %512 = vector.broadcast %369 : vector<1x96xf32> to vector<2x96xf32>
    %513 = arith.addf %511, %512 : vector<2x96xf32>
    %514 = vector.extract_strided_slice %510 {offsets = [0, 0], sizes = [2, 32], strides = [1, 1]} : vector<2x96xf32> to vector<2x32xf32>
    %515 = vector.extract_strided_slice %513 {offsets = [0, 0], sizes = [2, 32], strides = [1, 1]} : vector<2x96xf32> to vector<2x32xf32>
    %516 = arith.addf %514, %515 : vector<2x32xf32>
    %cst_174 = arith.constant 5.000000e-01 : f32
    %517 = vector.broadcast %cst_174 : f32 to vector<2x32xf32>
    %518 = arith.mulf %517, %516 : vector<2x32xf32>
    %519 = math.tanh %518 : vector<2x32xf32>
    %cst_175 = arith.constant 5.000000e-01 : f32
    %520 = vector.broadcast %cst_175 : f32 to vector<2x32xf32>
    %521 = arith.mulf %520, %519 : vector<2x32xf32>
    %cst_176 = arith.constant 5.000000e-01 : f32
    %522 = vector.broadcast %cst_176 : f32 to vector<2x32xf32>
    %523 = arith.addf %521, %522 : vector<2x32xf32>
    %524 = vector.extract_strided_slice %510 {offsets = [0, 32], sizes = [2, 32], strides = [1, 1]} : vector<2x96xf32> to vector<2x32xf32>
    %525 = vector.extract_strided_slice %513 {offsets = [0, 32], sizes = [2, 32], strides = [1, 1]} : vector<2x96xf32> to vector<2x32xf32>
    %526 = arith.addf %524, %525 : vector<2x32xf32>
    %cst_177 = arith.constant 5.000000e-01 : f32
    %527 = vector.broadcast %cst_177 : f32 to vector<2x32xf32>
    %528 = arith.mulf %527, %526 : vector<2x32xf32>
    %529 = math.tanh %528 : vector<2x32xf32>
    %cst_178 = arith.constant 5.000000e-01 : f32
    %530 = vector.broadcast %cst_178 : f32 to vector<2x32xf32>
    %531 = arith.mulf %530, %529 : vector<2x32xf32>
    %cst_179 = arith.constant 5.000000e-01 : f32
    %532 = vector.broadcast %cst_179 : f32 to vector<2x32xf32>
    %533 = arith.addf %531, %532 : vector<2x32xf32>
    %534 = vector.extract_strided_slice %510 {offsets = [0, 64], sizes = [2, 32], strides = [1, 1]} : vector<2x96xf32> to vector<2x32xf32>
    %535 = vector.extract_strided_slice %513 {offsets = [0, 64], sizes = [2, 32], strides = [1, 1]} : vector<2x96xf32> to vector<2x32xf32>
    %536 = arith.mulf %523, %535 : vector<2x32xf32>
    %537 = arith.addf %534, %536 : vector<2x32xf32>
    %538 = math.tanh %537 : vector<2x32xf32>
    %cst_180 = arith.constant 1.000000e+00 : f32
    %539 = vector.broadcast %cst_180 : f32 to vector<2x32xf32>
    %540 = arith.subf %539, %533 : vector<2x32xf32>
    %541 = arith.mulf %540, %538 : vector<2x32xf32>
    %542 = arith.mulf %533, %508 : vector<2x32xf32>
    %543 = arith.addf %541, %542 : vector<2x32xf32>
    %c32_181 = arith.constant 32 : index
    %c0_182 = arith.constant 0 : index
    %544 = vector.load %arg9[%c32_181, %c0_182] : memref<64x32xf32, #tpu.memory_space<vmem>>, vector<2x32xf32>
    tpu.vector_store %arg9[%c32_181, %c0_182], %543 {strides = array<i32>} : memref<64x32xf32, #tpu.memory_space<vmem>>, vector<2x32xf32>,
    %545 = vector.extract_strided_slice %367 {offsets = [40, 0], sizes = [2, 96], strides = [1, 1]} : vector<64x96xf32> to vector<2x96xf32>
    %cst_183 = arith.constant dense<0.000000e+00> : vector<2x96xf32>
    %546 = tpu.matmul %543, %368, %cst_183 {dimension_numbers = #tpu.dot_dimension_numbers<[1], [0], [0], [1], [0, 0, 1, 1], [], []>} : vector<2x32xf32>, vector<32x96xf32>, vector<2x96xf32> -> vector<2x96xf32>
    %547 = vector.broadcast %369 : vector<1x96xf32> to vector<2x96xf32>
    %548 = arith.addf %546, %547 : vector<2x96xf32>
    %549 = vector.extract_strided_slice %545 {offsets = [0, 0], sizes = [2, 32], strides = [1, 1]} : vector<2x96xf32> to vector<2x32xf32>
    %550 = vector.extract_strided_slice %548 {offsets = [0, 0], sizes = [2, 32], strides = [1, 1]} : vector<2x96xf32> to vector<2x32xf32>
    %551 = arith.addf %549, %550 : vector<2x32xf32>
    %cst_184 = arith.constant 5.000000e-01 : f32
    %552 = vector.broadcast %cst_184 : f32 to vector<2x32xf32>
    %553 = arith.mulf %552, %551 : vector<2x32xf32>
    %554 = math.tanh %553 : vector<2x32xf32>
    %cst_185 = arith.constant 5.000000e-01 : f32
    %555 = vector.broadcast %cst_185 : f32 to vector<2x32xf32>
    %556 = arith.mulf %555, %554 : vector<2x32xf32>
    %cst_186 = arith.constant 5.000000e-01 : f32
    %557 = vector.broadcast %cst_186 : f32 to vector<2x32xf32>
    %558 = arith.addf %556, %557 : vector<2x32xf32>
    %559 = vector.extract_strided_slice %545 {offsets = [0, 32], sizes = [2, 32], strides = [1, 1]} : vector<2x96xf32> to vector<2x32xf32>
    %560 = vector.extract_strided_slice %548 {offsets = [0, 32], sizes = [2, 32], strides = [1, 1]} : vector<2x96xf32> to vector<2x32xf32>
    %561 = arith.addf %559, %560 : vector<2x32xf32>
    %cst_187 = arith.constant 5.000000e-01 : f32
    %562 = vector.broadcast %cst_187 : f32 to vector<2x32xf32>
    %563 = arith.mulf %562, %561 : vector<2x32xf32>
    %564 = math.tanh %563 : vector<2x32xf32>
    %cst_188 = arith.constant 5.000000e-01 : f32
    %565 = vector.broadcast %cst_188 : f32 to vector<2x32xf32>
    %566 = arith.mulf %565, %564 : vector<2x32xf32>
    %cst_189 = arith.constant 5.000000e-01 : f32
    %567 = vector.broadcast %cst_189 : f32 to vector<2x32xf32>
    %568 = arith.addf %566, %567 : vector<2x32xf32>
    %569 = vector.extract_strided_slice %545 {offsets = [0, 64], sizes = [2, 32], strides = [1, 1]} : vector<2x96xf32> to vector<2x32xf32>
    %570 = vector.extract_strided_slice %548 {offsets = [0, 64], sizes = [2, 32], strides = [1, 1]} : vector<2x96xf32> to vector<2x32xf32>
    %571 = arith.mulf %558, %570 : vector<2x32xf32>
    %572 = arith.addf %569, %571 : vector<2x32xf32>
    %573 = math.tanh %572 : vector<2x32xf32>
    %cst_190 = arith.constant 1.000000e+00 : f32
    %574 = vector.broadcast %cst_190 : f32 to vector<2x32xf32>
    %575 = arith.subf %574, %568 : vector<2x32xf32>
    %576 = arith.mulf %575, %573 : vector<2x32xf32>
    %577 = arith.mulf %568, %543 : vector<2x32xf32>
    %578 = arith.addf %576, %577 : vector<2x32xf32>
    %c40_191 = arith.constant 40 : index
    %c0_192 = arith.constant 0 : index
    %579 = vector.load %arg9[%c40_191, %c0_192] : memref<64x32xf32, #tpu.memory_space<vmem>>, vector<2x32xf32>
    tpu.vector_store %arg9[%c40_191, %c0_192], %578 {strides = array<i32>} : memref<64x32xf32, #tpu.memory_space<vmem>>, vector<2x32xf32>,
    %580 = vector.extract_strided_slice %367 {offsets = [48, 0], sizes = [2, 96], strides = [1, 1]} : vector<64x96xf32> to vector<2x96xf32>
    %cst_193 = arith.constant dense<0.000000e+00> : vector<2x96xf32>
    %581 = tpu.matmul %578, %368, %cst_193 {dimension_numbers = #tpu.dot_dimension_numbers<[1], [0], [0], [1], [0, 0, 1, 1], [], []>} : vector<2x32xf32>, vector<32x96xf32>, vector<2x96xf32> -> vector<2x96xf32>
    %582 = vector.broadcast %369 : vector<1x96xf32> to vector<2x96xf32>
    %583 = arith.addf %581, %582 : vector<2x96xf32>
    %584 = vector.extract_strided_slice %580 {offsets = [0, 0], sizes = [2, 32], strides = [1, 1]} : vector<2x96xf32> to vector<2x32xf32>
    %585 = vector.extract_strided_slice %583 {offsets = [0, 0], sizes = [2, 32], strides = [1, 1]} : vector<2x96xf32> to vector<2x32xf32>
    %586 = arith.addf %584, %585 : vector<2x32xf32>
    %cst_194 = arith.constant 5.000000e-01 : f32
    %587 = vector.broadcast %cst_194 : f32 to vector<2x32xf32>
    %588 = arith.mulf %587, %586 : vector<2x32xf32>
    %589 = math.tanh %588 : vector<2x32xf32>
    %cst_195 = arith.constant 5.000000e-01 : f32
    %590 = vector.broadcast %cst_195 : f32 to vector<2x32xf32>
    %591 = arith.mulf %590, %589 : vector<2x32xf32>
    %cst_196 = arith.constant 5.000000e-01 : f32
    %592 = vector.broadcast %cst_196 : f32 to vector<2x32xf32>
    %593 = arith.addf %591, %592 : vector<2x32xf32>
    %594 = vector.extract_strided_slice %580 {offsets = [0, 32], sizes = [2, 32], strides = [1, 1]} : vector<2x96xf32> to vector<2x32xf32>
    %595 = vector.extract_strided_slice %583 {offsets = [0, 32], sizes = [2, 32], strides = [1, 1]} : vector<2x96xf32> to vector<2x32xf32>
    %596 = arith.addf %594, %595 : vector<2x32xf32>
    %cst_197 = arith.constant 5.000000e-01 : f32
    %597 = vector.broadcast %cst_197 : f32 to vector<2x32xf32>
    %598 = arith.mulf %597, %596 : vector<2x32xf32>
    %599 = math.tanh %598 : vector<2x32xf32>
    %cst_198 = arith.constant 5.000000e-01 : f32
    %600 = vector.broadcast %cst_198 : f32 to vector<2x32xf32>
    %601 = arith.mulf %600, %599 : vector<2x32xf32>
    %cst_199 = arith.constant 5.000000e-01 : f32
    %602 = vector.broadcast %cst_199 : f32 to vector<2x32xf32>
    %603 = arith.addf %601, %602 : vector<2x32xf32>
    %604 = vector.extract_strided_slice %580 {offsets = [0, 64], sizes = [2, 32], strides = [1, 1]} : vector<2x96xf32> to vector<2x32xf32>
    %605 = vector.extract_strided_slice %583 {offsets = [0, 64], sizes = [2, 32], strides = [1, 1]} : vector<2x96xf32> to vector<2x32xf32>
    %606 = arith.mulf %593, %605 : vector<2x32xf32>
    %607 = arith.addf %604, %606 : vector<2x32xf32>
    %608 = math.tanh %607 : vector<2x32xf32>
    %cst_200 = arith.constant 1.000000e+00 : f32
    %609 = vector.broadcast %cst_200 : f32 to vector<2x32xf32>
    %610 = arith.subf %609, %603 : vector<2x32xf32>
    %611 = arith.mulf %610, %608 : vector<2x32xf32>
    %612 = arith.mulf %603, %578 : vector<2x32xf32>
    %613 = arith.addf %611, %612 : vector<2x32xf32>
    %c48_201 = arith.constant 48 : index
    %c0_202 = arith.constant 0 : index
    %614 = vector.load %arg9[%c48_201, %c0_202] : memref<64x32xf32, #tpu.memory_space<vmem>>, vector<2x32xf32>
    tpu.vector_store %arg9[%c48_201, %c0_202], %613 {strides = array<i32>} : memref<64x32xf32, #tpu.memory_space<vmem>>, vector<2x32xf32>,
    %615 = vector.extract_strided_slice %367 {offsets = [56, 0], sizes = [2, 96], strides = [1, 1]} : vector<64x96xf32> to vector<2x96xf32>
    %cst_203 = arith.constant dense<0.000000e+00> : vector<2x96xf32>
    %616 = tpu.matmul %613, %368, %cst_203 {dimension_numbers = #tpu.dot_dimension_numbers<[1], [0], [0], [1], [0, 0, 1, 1], [], []>} : vector<2x32xf32>, vector<32x96xf32>, vector<2x96xf32> -> vector<2x96xf32>
    %617 = vector.broadcast %369 : vector<1x96xf32> to vector<2x96xf32>
    %618 = arith.addf %616, %617 : vector<2x96xf32>
    %619 = vector.extract_strided_slice %615 {offsets = [0, 0], sizes = [2, 32], strides = [1, 1]} : vector<2x96xf32> to vector<2x32xf32>
    %620 = vector.extract_strided_slice %618 {offsets = [0, 0], sizes = [2, 32], strides = [1, 1]} : vector<2x96xf32> to vector<2x32xf32>
    %621 = arith.addf %619, %620 : vector<2x32xf32>
    %cst_204 = arith.constant 5.000000e-01 : f32
    %622 = vector.broadcast %cst_204 : f32 to vector<2x32xf32>
    %623 = arith.mulf %622, %621 : vector<2x32xf32>
    %624 = math.tanh %623 : vector<2x32xf32>
    %cst_205 = arith.constant 5.000000e-01 : f32
    %625 = vector.broadcast %cst_205 : f32 to vector<2x32xf32>
    %626 = arith.mulf %625, %624 : vector<2x32xf32>
    %cst_206 = arith.constant 5.000000e-01 : f32
    %627 = vector.broadcast %cst_206 : f32 to vector<2x32xf32>
    %628 = arith.addf %626, %627 : vector<2x32xf32>
    %629 = vector.extract_strided_slice %615 {offsets = [0, 32], sizes = [2, 32], strides = [1, 1]} : vector<2x96xf32> to vector<2x32xf32>
    %630 = vector.extract_strided_slice %618 {offsets = [0, 32], sizes = [2, 32], strides = [1, 1]} : vector<2x96xf32> to vector<2x32xf32>
    %631 = arith.addf %629, %630 : vector<2x32xf32>
    %cst_207 = arith.constant 5.000000e-01 : f32
    %632 = vector.broadcast %cst_207 : f32 to vector<2x32xf32>
    %633 = arith.mulf %632, %631 : vector<2x32xf32>
    %634 = math.tanh %633 : vector<2x32xf32>
    %cst_208 = arith.constant 5.000000e-01 : f32
    %635 = vector.broadcast %cst_208 : f32 to vector<2x32xf32>
    %636 = arith.mulf %635, %634 : vector<2x32xf32>
    %cst_209 = arith.constant 5.000000e-01 : f32
    %637 = vector.broadcast %cst_209 : f32 to vector<2x32xf32>
    %638 = arith.addf %636, %637 : vector<2x32xf32>
    %639 = vector.extract_strided_slice %615 {offsets = [0, 64], sizes = [2, 32], strides = [1, 1]} : vector<2x96xf32> to vector<2x32xf32>
    %640 = vector.extract_strided_slice %618 {offsets = [0, 64], sizes = [2, 32], strides = [1, 1]} : vector<2x96xf32> to vector<2x32xf32>
    %641 = arith.mulf %628, %640 : vector<2x32xf32>
    %642 = arith.addf %639, %641 : vector<2x32xf32>
    %643 = math.tanh %642 : vector<2x32xf32>
    %cst_210 = arith.constant 1.000000e+00 : f32
    %644 = vector.broadcast %cst_210 : f32 to vector<2x32xf32>
    %645 = arith.subf %644, %638 : vector<2x32xf32>
    %646 = arith.mulf %645, %643 : vector<2x32xf32>
    %647 = arith.mulf %638, %613 : vector<2x32xf32>
    %648 = arith.addf %646, %647 : vector<2x32xf32>
    %c56_211 = arith.constant 56 : index
    %c0_212 = arith.constant 0 : index
    %649 = vector.load %arg9[%c56_211, %c0_212] : memref<64x32xf32, #tpu.memory_space<vmem>>, vector<2x32xf32>
    tpu.vector_store %arg9[%c56_211, %c0_212], %648 {strides = array<i32>} : memref<64x32xf32, #tpu.memory_space<vmem>>, vector<2x32xf32>,
    %c0_213 = arith.constant 0 : index
    %c0_214 = arith.constant 0 : index
    %650 = vector.load %arg9[%c0_213, %c0_214] : memref<64x32xf32, #tpu.memory_space<vmem>>, vector<64x32xf32>
    %c352 = arith.constant 352 : index
    %c0_215 = arith.constant 0 : index
    %651 = vector.load %arg6[%c352, %c0_215] : memref<464x128xf32, #tpu.memory_space<vmem>>, vector<32x64xf32>
    %c384 = arith.constant 384 : index
    %c0_216 = arith.constant 0 : index
    %652 = vector.load %arg6[%c384, %c0_216] : memref<464x128xf32, #tpu.memory_space<vmem>>, vector<1x64xf32>
    %cst_217 = arith.constant dense<0.000000e+00> : vector<64x64xf32>
    %653 = tpu.matmul %650, %651, %cst_217 {dimension_numbers = #tpu.dot_dimension_numbers<[1], [0], [0], [1], [0, 0, 1, 1], [], []>} : vector<64x32xf32>, vector<32x64xf32>, vector<64x64xf32> -> vector<64x64xf32>
    %654 = vector.broadcast %652 : vector<1x64xf32> to vector<64x64xf32>
    %655 = arith.addf %653, %654 : vector<64x64xf32>
    %656 = math.tanh %655 : vector<64x64xf32>
    %c392 = arith.constant 392 : index
    %c0_218 = arith.constant 0 : index
    %657 = vector.load %arg6[%c392, %c0_218] : memref<464x128xf32, #tpu.memory_space<vmem>>, vector<64x128xf32>
    %c456 = arith.constant 456 : index
    %c0_219 = arith.constant 0 : index
    %658 = vector.load %arg6[%c456, %c0_219] : memref<464x128xf32, #tpu.memory_space<vmem>>, vector<1x128xf32>
    %cst_220 = arith.constant dense<0.000000e+00> : vector<64x128xf32>
    %659 = tpu.matmul %656, %657, %cst_220 {dimension_numbers = #tpu.dot_dimension_numbers<[1], [0], [0], [1], [0, 0, 1, 1], [], []>} : vector<64x64xf32>, vector<64x128xf32>, vector<64x128xf32> -> vector<64x128xf32>
    %660 = vector.broadcast %658 : vector<1x128xf32> to vector<64x128xf32>
    %661 = arith.addf %659, %660 : vector<64x128xf32>
    %c0_221 = arith.constant 0 : index
    %c0_222 = arith.constant 0 : index
    %662 = vector.load %arg7[%c0_221, %c0_222] : memref<64x128xf32, #tpu.memory_space<vmem>>, vector<64x128xf32>
    tpu.vector_store %arg7[%c0_221, %c0_222], %661 {strides = array<i32>} : memref<64x128xf32, #tpu.memory_space<vmem>>, vector<64x128xf32>,
    return
  }
  func.func @transform_0(%arg0: i32) -> (i32, i32) {
    %c0_i32 = arith.constant 0 : i32
    %c0_i32_0 = arith.constant 0 : i32
    %c0_i32_1 = arith.constant 0 : i32
    return %c0_i32, %c0_i32_0 : i32, i32
  }
  func.func @transform_1(%arg0: i32) -> (i32, i32) {
    %c0_i32 = arith.constant 0 : i32
    %c0_i32_0 = arith.constant 0 : i32
    %c0_i32_1 = arith.constant 0 : i32
    return %c0_i32, %c0_i32_0 : i32, i32
  }
  func.func @transform_2(%arg0: i32) -> (i32, i32) {
    %c0_i32 = arith.constant 0 : i32
    %c0_i32_0 = arith.constant 0 : i32
    %c0_i32_1 = arith.constant 0 : i32
    return %c0_i32, %c0_i32_0 : i32, i32
  }
  func.func @transform_3(%arg0: i32) -> (i32, i32) {
    %c0_i32 = arith.constant 0 : i32
    %c0_i32_0 = arith.constant 0 : i32
    %c0_i32_1 = arith.constant 0 : i32
    return %c0_i32, %c0_i32_0 : i32, i32
  }
  func.func @transform_4(%arg0: i32) -> (i32, i32) {
    %c0_i32 = arith.constant 0 : i32
    %c0_i32_0 = arith.constant 0 : i32
    %c0_i32_1 = arith.constant 0 : i32
    return %c0_i32, %c0_i32_0 : i32, i32
  }
  func.func @transform_5(%arg0: i32) -> (i32, i32) {
    %c0_i32 = arith.constant 0 : i32
    %c0_i32_0 = arith.constant 0 : i32
    %c0_i32_1 = arith.constant 0 : i32
    return %c0_i32, %c0_i32_0 : i32, i32
  }
  func.func @transform_6(%arg0: i32) -> (i32, i32) {
    %c0_i32 = arith.constant 0 : i32
    %c0_i32_0 = arith.constant 0 : i32
    %c0_i32_1 = arith.constant 0 : i32
    return %c0_i32, %c0_i32_0 : i32, i32
  }
}

</mosaic_0001>

<bundles_post_ra>
// kernel: tpu_custom_call.1
= control target key start
LH: loop header
LB: loop body
LE: loop exit
PB: predicated region body
PF: predicated region fallthrough
CT: control target
= control target key end

     0   :  { %11 = vsyncpa [#allocation5], 0  ;;  %s4549_s0 = inlined_call_operand.vmem [shape: f32[2,6], index: 0, kind: input, shape index: {}]   ;;  %s4550_s1 = inlined_call_operand.vmem [shape: f32[2,24], index: 1, kind: input, shape index: {}]   ;;  %s4551_s2 = inlined_call_operand.vmem [shape: f32[2,12], index: 2, kind: input, shape index: {}]   ;;  %s4552_s3 = inlined_call_operand.vmem [shape: f32[64,2], index: 3, kind: input, shape index: {}]   ;;  %s4553_s4 = inlined_call_operand.vmem [shape: f32[2,8], index: 4, kind: input, shape index: {}]   ;;  %s4554_s5 = inlined_call_operand.hbm [shape: f32[464,128], index: 5, kind: input, shape index: {}]   ;;  %s4555_s6 = inlined_call_operand.hbm [shape: f32[64,128], index: 6, kind: output, shape index: {}]  }
   0x1   :  { %12 = vsyncpa [#allocation6], 0  ;;  %s3962_s21 = smov [#allocation4]  }
   0x2   :  { %s28_s22 = sshll.u32 %s3962_s21, 4  ;;  %s29_s22 = int_to_ptr.vmem [resolvable:$true] %s28_s22 }
   0x3   :  { %s3926_s23 = scalar_lea.vmem %s29_s22, 7424  ;;  %p3931_p1 = scmp.lt.s32.totalorder %s29_s22, %s29_s22 }
   0x4   :  { %p3927_p0 = scmp.ne.s32.totalorder %s29_s22, %s3926_s23  ;;  %p3932_p2 = scmp.lt.s32.totalorder %s3926_s23, %s3926_s23 }
   0x6   :  { %p3933_p3 = por %p3932_p2, %p3931_p1 }
   0x8   :  { %p3934_p4 = pnand %p3933_p3, %p3927_p0 }
   0xa   :  { %3937 = shalt.err (!%p3934_p4)
}
   0xb   :  { %s3963_s24 = smov 128   ;;  %s3964_s25 = smov 8  }
   0xc   :  { %34 = dma.hbm_to_vmem [thread:$0]  %s4554_s5, 7424, %s29_s22, [#allocation5], %s3963_s24, %s3963_s24, %s3964_s25  }
   0xd   :  { %3958 = dma.done.wait [#allocation5], 7424  }
   0xe   :  { %3959 = vsyncadd [#allocation5], 4294959872  ;;  %v3965_v0 = vmov 0.0   ;;  %vm3966_vm0 = vmmov 0   ;;  %v58_v1 = vld [vmem:[#allocation4 + $0x10] sm:$0xff]  ;;  %v57_v2 = vld [vmem:[#allocation4 + $0x8] sm:$0xff] }
   0xf   :  { %3459 = vmatprep.subr.mxu0 %v3965_v0  ;;  %3465 = vmatprep.mubr.msk.f32.mxu0 %vm3966_vm0, %v3965_v0  ;;  %v56_v3 = vld [vmem:[#allocation4] sm:$0xff]  ;;  %vm64_vm1 = vcmask 195584   ;;  %v140_v5 = vld [vmem:[#allocation4 + $0x28] sm:$0xff]  ;;  %v3200_v7 = vld [vmem:[#allocation4 + $0x18] ss:$0 sm:$0xff]  ;;  %vm146_vm2 = vcmask 130048  }
  0x10   :  { %3468 = vmatprep.subr.mxu1 %v3965_v0  ;;  %3472 = vmatprep.mubr.msk.f32.mxu1 %vm3966_vm0, %v3965_v0  ;;  %v55_v4 = vld [vmem:[%s4550_s1] sm:$0x3]  ;;  %vm232_vm3 = vcmask 1043456   ;;  %v221_v13 = vld [vmem:[#allocation4 + $0x38] sm:$0xff]  ;;  %vm228_vm4 = vcmask 97280   ;;  %v307_v17 = vld [vmem:[#allocation4 + $0x50] sm:$0xff] }
  0x11   :  { %3460 = vmatpush3.msra.mxu0 %v58_v1  ;;  %v139_v6 = vld [vmem:[#allocation4 + $0x20] sm:$0xff]  ;;  %3469 = vmatpush3.msra.mxu1 %v140_v5  ;;  %v308_v16 = vld [vmem:[#allocation4 + $0x58] sm:$0xff]  ;;  %v3202_v18 = vld [vmem:[#allocation4 + $0x30] ss:$0 sm:$0xff]  ;;  %vm504_vm5 = vcmask 1045504   ;;  %vm500_vm6 = vcmask 48128  }
  0x12   :  { %3461 = vmatprep.subr.mxu0 %v3965_v0  ;;  %3470 = vmatprep.subr.mxu1 %v3965_v0  ;;  %v222_v11 = vld [vmem:[#allocation4 + $0x40] sm:$0xf]  ;;  %v3204_v22 = vld [vmem:[#allocation4 + $0x48] ss:$0 sm:$0xff]  ;;  %v425_v38 = vld [vmem:[#allocation4 + $0x70] sm:$0xff]  ;;  %vm426_vm7 = vcmask 64512  }
  0x13   :  { %3462 = vmatpush3.msra.mxu0 %v57_v2  ;;  %3471 = vmatpush3.msra.mxu1 %v139_v6  ;;  %v220_v14 = vld [vmem:[%s4551_s2] sm:$0x3]  ;;  %s3967_s2 = smov 120   ;;  %v424_v39 = vld [vmem:[#allocation4 + $0x68] sm:$0x3f]  ;;  %v588_v55 = vld [vmem:[#allocation4 + $0x98] sm:$0xff] }
  0x14   :  { %3463 = vmatprep.subr.mxu0 %v3965_v0  ;;  %3475 = vmatprep.subr.mxu1 %v3965_v0  ;;  %v412_v15 = vld [vmem:[%s4553_s4] sm:$0x3]  ;;  %v587_v56 = vld [vmem:[#allocation4 + $0x90] sm:$0xff]  ;;  %vm38_vm8 = vcmask 261120   ;;  %v586_v57 = vld [vmem:[#allocation4 + $0x88] sm:$0xff]  ;;  %vm706_vm9 = vcmask 1041408  }
  0x15   :  { %3464 = vmatpush3.msra.mxu0 %v56_v3  ;;  %414 = vrot.lane.b32.xlu0 %v412_v15, %s3964_s25  ;;  %v3207_v30 = vld [vmem:[#allocation4 + $0x60] ss:$0 sm:$0xff]  ;;  %39 = vst.msk [vmem:[#allocation2] sm:$0xff] %vm38_vm8, %v3965_v0  ;;  %40 = vst.msk [vmem:[#allocation2 + $0x8] sm:$0xff] %vm38_vm8, %v3965_v0  ;;  %v675_v59 = vld [vmem:[#allocation4 + $0xa8] sm:$0x3] }
  0x16   :  { %3466 = vmatmul.mubr.msk.f32.vlgmr.msra.gmra.mxu0 %vm64_vm1, %v55_v4  ;;  %3482 = vmatprep.subr.mxu0 %v3965_v0  ;;  %v423_v40 = vld [vmem:[%s4549_s0] sm:$0x3]  ;;  %41 = vst.msk [vmem:[#allocation2 + $0x10] sm:$0xff] %vm38_vm8, %v3965_v0  ;;  %42 = vst.msk [vmem:[#allocation2 + $0x18] sm:$0xff] %vm38_vm8, %v3965_v0  ;;  %v3212_v61 = vld [vmem:[#allocation4 + $0x78] ss:$0 sm:$0xff] }
  0x17   :  { %3486 = vmatprep.mubr.msk.f32.mxu0 %vm3966_vm0, %v3965_v0  ;;  %3483 = vmatpush3.msra.mxu0 %v308_v16  ;;  %43 = vst.msk [vmem:[#allocation2 + $0x20] sm:$0xff] %vm38_vm8, %v3965_v0  ;;  %44 = vst.msk [vmem:[#allocation2 + $0x28] sm:$0xff] %vm38_vm8, %v3965_v0  ;;  %v585_v58 = vld [vmem:[#allocation4 + $0x80] sm:$0xff]  ;;  %vm681_vm10 = vcmask 15360   ;;  %v668_v4 = vld [vmem:[%s4552_s3 + $0x8] sm:$0xff]  ;;  %s3969_s26 = smov 32  }
  0x18   :  { %3484 = vmatprep.subr.mxu0 %v3965_v0  ;;  %45 = vst.msk [vmem:[#allocation2 + $0x30] sm:$0xff] %vm38_vm8, %v3965_v0  ;;  %46 = vst.msk [vmem:[#allocation2 + $0x38] sm:$0xff] %vm38_vm8, %v3965_v0  ;;  %v667_v2 = vld [vmem:[%s4552_s3] sm:$0xff]  ;;  %v669_v5 = vld [vmem:[%s4552_s3 + $0x10] sm:$0xff]  ;;  %s3970_s27 = smov 96   ;;  %vm1208_vm11 = vcmask 254976  }
  0x19   :  { %3485 = vmatpush3.msra.mxu0 %v307_v17  ;;  %47 = vst.msk [vmem:[#allocation3] sm:$0xff] %vm38_vm8, %v3965_v0  ;;  %48 = vst.msk [vmem:[#allocation3 + $0x8] sm:$0xff] %vm38_vm8, %v3965_v0  ;;  %v670_v6 = vld [vmem:[%s4552_s3 + $0x18] sm:$0xff]  ;;  %v3215_v17 = vld [vmem:[#allocation4 + $0xb0] ss:$0 sm:$0xff]  ;;  %vm3045_vm12 = vcmask 523264  }
  0x1a   :  { %3494 = vmatprep.subr.mxu0 %v3965_v0  ;;  %49 = vst.msk [vmem:[#allocation3 + $0x10] sm:$0xff] %vm38_vm8, %v3965_v0  ;;  %50 = vst.msk [vmem:[#allocation3 + $0x18] sm:$0xff] %vm38_vm8, %v3965_v0  ;;  %s3971_s5 = smov [#allocation7]  }
  0x1b   :  { %51 = vst.msk [vmem:[#allocation3 + $0x20] sm:$0xff] %vm38_vm8, %v3965_v0  ;;  %52 = vst.msk [vmem:[#allocation3 + $0x28] sm:$0xff] %vm38_vm8, %v3965_v0  ;;  %s3188_s28 = sshll.u32 %s3971_s5, 4  ;;  %s3189_s28 = int_to_ptr.vmem [resolvable:$true] %s3188_s28 }
  0x1c   :  { %53 = vst.msk [vmem:[#allocation3 + $0x30] sm:$0xff] %vm38_vm8, %v3965_v0  ;;  %54 = vst.msk [vmem:[#allocation3 + $0x38] sm:$0xff] %vm38_vm8, %v3965_v0  ;;  %s3938_s1 = scalar_lea.vmem %s3189_s28, 1024  ;;  %p3943_p6 = scmp.lt.s32.totalorder %s3189_s28, %s3189_s28 }
  0x1d   :  { %p3939_p5 = scmp.ne.s32.totalorder %s3189_s28, %s3938_s1  ;;  %p3944_p7 = scmp.lt.s32.totalorder %s3938_s1, %s3938_s1 }
  0x1f   :  { %p3945_p8 = por %p3944_p7, %p3943_p6 }
  0x21   :  { %p3946_p9 = pnand %p3945_p8, %p3939_p5 }
  0x87   :  { %v415_v42 = vpop.permute.xlu0 %414 }
  0xd6   :  { %v134_v8 = vpop.f32.mrf.mxu0 }
  0xd7   :  { %v135_v9 = vadd.f32 %v3200_v7, %v134_v8  ;;  %v671_v7 = vld [vmem:[%s4552_s3 + $0x20] sm:$0xff]  ;;  %v672_v8 = vld [vmem:[%s4552_s3 + $0x28] sm:$0xff] }
  0xd8   :  { %v3467_v10 = vpop.f32.mrf.mxu0 }
  0xd9   :  { %3810 = vtanh.f32 %v135_v9  ;;  %v673_v9 = vld [vmem:[%s4552_s3 + $0x30] sm:$0xff]  ;;  %v674_v10 = vld [vmem:[%s4552_s3 + $0x38] sm:$0xff]  ;;  %s3968_s3 = smov 64  }
  0xe6   :  { %v3811_v12 = vpop.eup %3810 }
  0xe7   :  { %3473 = vmatmul.mubr.msk.f32.vlgmr.msra.gmra.mxu1 %vm146_vm2, %v3811_v12  ;;  %v823_v12 = vld [vmem:[#allocation4 + $0xb8] sm:$0xff] }
  0xe8   :  { %3476 = vmatpush3.msk.msra.mxu1 %vm232_vm3, %v222_v11  ;;  %3479 = vmatprep.mubr.msk.f32.mxu1 %vm3966_vm0, %v3965_v0  ;;  %v824_v11 = vld [vmem:[#allocation4 + $0xc0] sm:$0xff] }
  0xe9   :  { %3477 = vmatprep.subr.mxu1 %v3965_v0 }
  0xea   :  { %3478 = vmatpush3.msra.mxu1 %v221_v13  ;;  %v960_v13 = vld [vmem:[#allocation4 + $0xd8] sm:$0xff] }
  0xeb   :  { %3480 = vmatmul.mubr.msk.f32.vlgmr.msra.gmra.mxu1 %vm228_vm4, %v220_v14  ;;  %3489 = vmatprep.subr.mxu1 %v3965_v0  ;;  %v959_v14 = vld [vmem:[#allocation4 + $0xd0] sm:$0xff] }
  0xec   :  { %3491 = vmatprep.mubr.msk.f32.mxu1 %vm3966_vm0, %v3965_v0  ;;  %3490 = vmatpush3.msra.mxu1 %v425_v38 }
  0xed   :  { %3524 = vmatprep.subr.mxu1 %v824_v11 }
 0x1a7   :  { %v216_v19 = vpop.f32.mrf.mxu1 }
 0x1a8   :  { %v217_v20 = vadd.f32 %v3202_v18, %v216_v19 }
 0x1a9   :  { %v3474_v21 = vpop.f32.mrf.mxu1 }
 0x1aa   :  { %v387_v23 = vsub.f32 0.0, %v217_v20 }
 0x1ab   :  { %v302_v24 = vpop.f32.mrf.mxu1 }
 0x1ac   :  { %v388_v25 = vmul.f32 1.442695, %v387_v23  ;;  %v303_v26 = vadd.f32 %v3204_v22, %v302_v24 }
 0x1ad   :  { %v3481_v27 = vpop.f32.mrf.mxu1 }
 0x1ae   :  { %3812 = vpow2.f32 %v388_v25 }
 0x1af   :  { %3814 = vtanh.f32 %v303_v26 }
 0x1bb   :  { %v3813_v28 = vpop.eup %3812 }
 0x1bc   :  { %v3815_v29 = vpop.eup %3814  ;;  %397 = vrot.lane.b32.xlu0 %v3813_v28, %s3967_s2 }
 0x1bd   :  { %3487 = vmatmul.mubr.msk.f32.vlgmr.msra.gmra.mxu0 %vm146_vm2, %v3815_v29 }
 0x1be   :  { %3496 = vmatprep.mubr.msk.f32.mxu0 %vm3966_vm0, %v3965_v0  ;;  %3495 = vmatpush3.msk.msra.mxu0 %vm504_vm5, %v424_v39 }
 0x1bf   :  { %3499 = vmatprep.subr.mxu0 %v3965_v0 }
 0x1c1   :  { %3497 = vmatmul.mubr.msk.f32.vlgmr.msra.gmra.mxu0 %vm500_vm6, %v423_v40  ;;  %v4132_v40 = vld [vmem:[#allocation4 + $0xf0] sm:$0xff] }
 0x1c2   :  { %3507 = vmatprep.mubr.msk.f32.mxu0 %vm3966_vm0, %v3965_v0  ;;  %3500 = vmatpush3.msra.mxu0 %v588_v55 }
 0x1c3   :  { %3501 = vmatprep.subr.mxu0 %v3965_v0 }
 0x1c4   :  { %3502 = vmatpush3.msra.mxu0 %v587_v56 }
 0x1c5   :  { %3503 = vmatprep.subr.mxu0 %v3965_v0 }
 0x1c6   :  { %3504 = vmatpush3.msra.mxu0 %v586_v57 }
 0x1c7   :  { %3505 = vmatprep.subr.mxu0 %v3965_v0 }
 0x1c8   :  { %3506 = vmatpush3.msra.mxu0 %v585_v58 }
 0x1c9   :  { %3510 = vmatprep.subr.msk.mxu0 %vm706_vm9, %v675_v59 }
 0x22e   :  { %v398_v45 = vpop.permute.xlu0 %397 }
 0x22f   :  { %v400_v47 = vmul.f32 %v398_v45, %v217_v20 }
 0x27d   :  { %v383_v31 = vpop.f32.mrf.mxu0 }
 0x27e   :  { %v384_v32 = vadd.f32 %v3207_v30, %v383_v31 }
 0x27f   :  { %v3488_v33 = vpop.f32.mrf.mxu0 }
 0x280   :  { %v390_v34 = vsub.f32 0.0, %v384_v32 }
 0x281   :  { %v574_v53 = vpop.f32.mrf.mxu0 }
 0x282   :  { %v391_v35 = vmul.f32 1.442695, %v390_v34 }
 0x283   :  { %v3498_v54 = vpop.f32.mrf.mxu0 }
 0x284   :  { %3816 = vpow2.f32 %v391_v35  ;;  %v4124_v35 = vld [vmem:[#allocation4 + $0x100] sm:$0xff] }
 0x291   :  { %v3817_v36 = vpop.eup %3816 }
 0x292   :  { %v393_v37 = vadd.f32 %v3817_v36, %v3813_v28  ;;  %402 = vrot.lane.b32.xlu1 %v3817_v36, %s3967_s2 }
 0x294   :  { %3818 = vrcp.f32 %v393_v37  ;;  %v4128_v37 = vld [vmem:[#allocation4 + $0xf8] sm:$0xff] }
 0x2a1   :  { %v3819_v41 = vpop.eup %3818 }
 0x2a2   :  { %408 = vrot.lane.b32.xlu1 %v3819_v41, %s3967_s2  ;;  %v417_v43 = vmul.f32 %v3819_v41, %v415_v42  ;;  %v4138_v41 = vld [vmem:[#allocation4 + $0xe8] sm:$0xff] }
 0x2a4   :  { %419 = vrot.lane.b32.xlu0 %v417_v43, %s3967_s2 }
 0x304   :  { %v403_v44 = vpop.permute.xlu1 %402 }
 0x305   :  { %v405_v46 = vmul.f32 %v403_v44, %v384_v32 }
 0x307   :  { %v406_v48 = vadd.f32 %v405_v46, %v400_v47  ;;  %v3213_v46 = vld [vmem:[#allocation4 + $0xa0] ss:$0 sm:$0xff] }
 0x314   :  { %v409_v49 = vpop.permute.xlu1 %408 }
 0x315   :  { %v411_v50 = vmul.f32 %v409_v49, %v406_v48  ;;  %v3225_v49 = vld [vmem:[#allocation4 + $0xc8] ss:$0 sm:$0xff] }
 0x316   :  { %v420_v51 = vpop.permute.xlu0 %419 }
 0x317   :  { %v422_v52 = vadd.f32 %v420_v51, %v411_v50 }
 0x319   :  { %3492 = vmatmul.mubr.msk.f32.vlgmr.msra.gmra.mxu1 %vm426_vm7, %v422_v52 }
 0x31a   :  { %3525 = vmatpush3.msra.mxu1 %v824_v11 }
 0x31b   :  { %3526 = vmatprep.subr.mxu1 %v823_v12 }
 0x31c   :  { %3527 = vmatpush3.msra.mxu1 %v823_v12 }
 0x31d   :  { %3556 = vmatprep.subr.mxu1 %v3965_v0 }
 0x3d9   :  { %v496_v60 = vpop.f32.mrf.mxu1 }
 0x3da   :  { %v575_v62 = vadd.f32 %v574_v53, %v496_v60 }
 0x3db   :  { %v3493_v63 = vpop.f32.mrf.mxu1 }
 0x3dc   :  { %v583_v1 = vadd.f32 %v3212_v61, %v575_v62 }
 0x3de   :  { %3820 = vtanh.f32 %v583_v1  ;;  %v4176_v1 = vld [vmem:[#allocation4 + $0x108] ss:$0 sm:$0xff] }
 0x3eb   :  { %v3821_v3 = vpop.eup %3820 }
 0x3ec   :  { %3508 = vmatmul.mubr.msk.f32.vlgmr.msra.gmra.mxu0 %vm38_vm8, %v3821_v3 }
 0x3ed   :  { %3511 = vmatpush3.msk.msra.mxu0 %vm706_vm9, %v675_v59  ;;  %3512 = vmatprep.mubr.msk.f32.mxu0 %vm681_vm10, %v667_v2 }
 0x3ee   :  { %3540 = vmatprep.subr.mxu0 %v960_v13 }
 0x3f0   :  { %3513 = vmatmul.mubr.msk.f32.vlgmr.msra.gmra.mxu0 %vm681_vm10, %v668_v4 }
 0x3f1   :  { %3515 = vmatprep.mubr.msk.f32.mxu0 %vm681_vm10, %v669_v5  ;;  %3541 = vmatpush3.msra.mxu0 %v960_v13 }
 0x3f2   :  { %3542 = vmatprep.subr.mxu0 %v959_v14 }
 0x3f3   :  { %3543 = vmatpush3.msra.mxu0 %v959_v14 }
 0x3f4   :  { %3516 = vmatmul.mubr.msk.f32.gmra.mxu0 %vm681_vm10, %v670_v6  ;;  %3578 = vmatprep.subr.mxu0 %v3965_v0  ;;  %v4186_v6 = vld [vmem:[#allocation4 + $0xe0] ss:$0 sm:$0xff] }
 0x3f5   :  { %3518 = vmatprep.mubr.msk.f32.mxu0 %vm681_vm10, %v671_v7 }
 0x3f8   :  { %3519 = vmatmul.mubr.msk.f32.gmra.mxu0 %vm681_vm10, %v672_v8 }
 0x3f9   :  { %3521 = vmatprep.mubr.msk.f32.mxu0 %vm681_vm10, %v673_v9 }
 0x3fc   :  { %3522 = vmatmul.mubr.msk.f32.gmra.mxu0 %vm681_vm10, %v674_v10 }
 0x4ac   :  { %v663_v15 = vpop.f32.mrf.mxu0 }
 0x4ad   :  { %v4150_v47 = vadd.f32 %v3213_v46, %v663_v15 }
 0x4ae   :  { %v3509_v16 = vpop.f32.mrf.mxu0 }
 0x4b0   :  { %v3514_v18 = vpop.f32.mrf.mxu0 }
 0x4b1   :  { %v782_v19 = vadd.f32 %v3514_v18, %v3215_v17 }
 0x4b2   :  { %v776_v20 = vpop.f32.mrf.mxu0 }
 0x4b3   :  { %v777_v21 = vadd.f32 %v3215_v17, %v776_v20 }
 0x4b4   :  { %v3517_v22 = vpop.f32.mrf.mxu0 }
 0x4b5   :  { %3822 = vtanh.f32 %v777_v21  ;;  %v792_v23 = vadd.f32 %v3517_v22, %v3215_v17 }
 0x4b6   :  { %3824 = vtanh.f32 %v782_v19  ;;  %v786_v24 = vpop.f32.mrf.mxu0 }
 0x4b7   :  { %v787_v25 = vadd.f32 %v3215_v17, %v786_v24  ;;  %3826 = vtanh.f32 %v792_v23 }
 0x4b8   :  { %v3520_v26 = vpop.f32.mrf.mxu0 }
 0x4b9   :  { %3828 = vtanh.f32 %v787_v25  ;;  %v802_v27 = vadd.f32 %v3520_v26, %v3215_v17 }
 0x4ba   :  { %v796_v28 = vpop.f32.mrf.mxu0 }
 0x4bb   :  { %v797_v29 = vadd.f32 %v3215_v17, %v796_v28  ;;  %3830 = vtanh.f32 %v802_v27 }
 0x4bc   :  { %v3523_v30 = vpop.f32.mrf.mxu0 }
 0x4bd   :  { %3832 = vtanh.f32 %v797_v29  ;;  %v812_v31 = vadd.f32 %v3523_v30, %v3215_v17 }
 0x4be   :  { %v806_v32 = vpop.f32.mrf.mxu0 }
 0x4bf   :  { %v807_v33 = vadd.f32 %v3215_v17, %v806_v32  ;;  %3834 = vtanh.f32 %v812_v31 }
 0x4c1   :  { %3836 = vtanh.f32 %v807_v33 }
 0x4c2   :  { %v3823_v34 = vpop.eup %3822 }
 0x4c3   :  { %v3825_v36 = vpop.eup %3824  ;;  %3528 = vmatprep.mubr.msk.f32.mxu1 %vm146_vm2, %v3823_v34 }
 0x4c4   :  { %3529 = vmatmul.mubr.msk.f32.vlgmr.msra.gmra.mxu1 %vm146_vm2, %v3825_v36  ;;  %v3827_v38 = vpop.eup %3826 }
 0x4c5   :  { %3557 = vmatpush3.msra.mxu1 %v4124_v35 }
 0x4c6   :  { %v3829_v39 = vpop.eup %3828  ;;  %3558 = vmatprep.subr.mxu1 %v3965_v0 }
 0x4c7   :  { %3531 = vmatprep.mubr.msk.f32.mxu1 %vm146_vm2, %v3829_v39  ;;  %3559 = vmatpush3.msra.mxu1 %v4128_v37 }
 0x4c8   :  { %3532 = vmatmul.mubr.msk.f32.gmra.mxu1 %vm146_vm2, %v3827_v38  ;;  %3560 = vmatprep.subr.mxu1 %v3965_v0  ;;  %v3831_v42 = vpop.eup %3830 }
 0x4c9   :  { %3561 = vmatpush3.msra.mxu1 %v4132_v40 }
 0x4ca   :  { %v3833_v43 = vpop.eup %3832  ;;  %3562 = vmatprep.subr.mxu1 %v3965_v0 }
 0x4cb   :  { %3534 = vmatprep.mubr.msk.f32.mxu1 %vm146_vm2, %v3833_v43  ;;  %3563 = vmatpush3.msra.mxu1 %v4138_v41 }
 0x4cc   :  { %3535 = vmatmul.mubr.msk.f32.gmra.mxu1 %vm146_vm2, %v3831_v42  ;;  %3567 = vmatprep.subr.mxu1 %v3965_v0  ;;  %v3835_v44 = vpop.eup %3834 }
 0x4ce   :  { %v3837_v45 = vpop.eup %3836 }
 0x4cf   :  { %3537 = vmatprep.mubr.msk.f32.mxu1 %vm146_vm2, %v3837_v45 }
 0x4d0   :  { %3538 = vmatmul.mubr.msk.f32.gmra.mxu1 %vm146_vm2, %v3835_v44 }
 0x4d1   :  { %3564 = vmatprep.mubr.msk.f32.mxu1 %vm3966_vm0, %v3965_v0 }
 0x4d4   :  { %3565 = vmatmul.mubr.msk.f32.vlgmr.msra.gmra.mxu1 %vm38_vm8, %v4150_v47 }
 0x4d5   :  { %3568 = vmatpush3.msra.mxu1 %v4124_v35  ;;  %3575 = vmatprep.mubr.msk.f32.mxu1 %vm3966_vm0, %v3965_v0 }
 0x4d6   :  { %3569 = vmatprep.subr.mxu1 %v3965_v0 }
 0x4d7   :  { %3570 = vmatpush3.msra.mxu1 %v4128_v37 }
 0x4d8   :  { %3571 = vmatprep.subr.mxu1 %v3965_v0 }
 0x4d9   :  { %3572 = vmatpush3.msra.mxu1 %v4132_v40 }
 0x4da   :  { %3573 = vmatprep.subr.mxu1 %v3965_v0 }
 0x4db   :  { %3574 = vmatpush3.msra.mxu1 %v4138_v41 }
 0x4dc   :  { %3589 = vmatprep.subr.mxu1 %v3965_v0 }
 0x584   :  { %v3530_v48 = vpop.f32.mrf.mxu1 }
 0x585   :  { %v926_v52 = vadd.f32 %v3530_v48, %v3225_v49 }
 0x586   :  { %v920_v50 = vpop.f32.mrf.mxu1 }
 0x587   :  { %v921_v51 = vadd.f32 %v3225_v49, %v920_v50 }
 0x588   :  { %v3533_v53 = vpop.f32.mrf.mxu1 }
 0x589   :  { %3544 = vmatprep.mubr.msk.f32.mxu0 %vm146_vm2, %v921_v51  ;;  %v936_v54 = vadd.f32 %v3533_v53, %v3225_v49 }
 0x58a   :  { %v930_v55 = vpop.f32.mrf.mxu1  ;;  %3545 = vmatmul.mubr.msk.f32.vlgmr.msra.gmra.mxu0 %vm146_vm2, %v926_v52 }
 0x58b   :  { %v931_v56 = vadd.f32 %v3225_v49, %v930_v55  ;;  %3579 = vmatpush3.msra.mxu0 %v4124_v35 }
 0x58c   :  { %v3536_v57 = vpop.f32.mrf.mxu1  ;;  %3580 = vmatprep.subr.mxu0 %v3965_v0 }
 0x58d   :  { %3547 = vmatprep.mubr.msk.f32.mxu0 %vm146_vm2, %v931_v56  ;;  %3581 = vmatpush3.msra.mxu0 %v4128_v37  ;;  %v946_v58 = vadd.f32 %v3536_v57, %v3225_v49 }
 0x58e   :  { %v940_v59 = vpop.f32.mrf.mxu1  ;;  %3548 = vmatmul.mubr.msk.f32.gmra.mxu0 %vm146_vm2, %v936_v54  ;;  %3582 = vmatprep.subr.mxu0 %v3965_v0 }
 0x58f   :  { %v941_v60 = vadd.f32 %v3225_v49, %v940_v59  ;;  %3583 = vmatpush3.msra.mxu0 %v4132_v40 }
 0x590   :  { %v3539_v61 = vpop.f32.mrf.mxu1  ;;  %3584 = vmatprep.subr.mxu0 %v3965_v0 }
 0x591   :  { %3550 = vmatprep.mubr.msk.f32.mxu0 %vm146_vm2, %v941_v60  ;;  %3585 = vmatpush3.msra.mxu0 %v4138_v41  ;;  %v956_v62 = vadd.f32 %v3539_v61, %v3225_v49 }
 0x592   :  { %v950_v63 = vpop.f32.mrf.mxu1  ;;  %3551 = vmatmul.mubr.msk.f32.gmra.mxu0 %vm146_vm2, %v946_v58  ;;  %3600 = vmatprep.subr.mxu0 %v3965_v0 }
 0x593   :  { %v951_v2 = vadd.f32 %v3225_v49, %v950_v63 }
 0x594   :  { %v1173_v3 = vpop.f32.mrf.mxu1 }
 0x595   :  { %v1174_v4 = vadd.f32 %v4176_v1, %v1173_v3  ;;  %3553 = vmatprep.mubr.msk.f32.mxu0 %vm146_vm2, %v951_v2 }
 0x596   :  { %v3566_v5 = vpop.f32.mrf.mxu1  ;;  %3554 = vmatmul.mubr.msk.f32.gmra.mxu0 %vm146_vm2, %v956_v62 }
 0x597   :  { %1183 = vrot.lane.b32.xlu1 %v1174_v4, %s3968_s3  ;;  %3586 = vmatprep.mubr.msk.f32.mxu0 %vm3966_vm0, %v3965_v0 }
 0x609   :  { %v1184_v26 = vpop.permute.xlu1 %1183 }
 0x64a   :  { %v3546_v7 = vpop.f32.mrf.mxu0 }
 0x64b   :  { %v4189_v8 = vadd.f32 %v3546_v7, %v4186_v6 }
 0x64c   :  { %v1056_v9 = vpop.f32.mrf.mxu0 }
 0x64d   :  { %v1057_v10 = vadd.f32 %v4186_v6, %v1056_v9 }
 0x64e   :  { %v3549_v11 = vpop.f32.mrf.mxu0 }
 0x64f   :  { %v1177_v12 = vadd.f32 %v1174_v4, %v1057_v10  ;;  %v4193_v13 = vadd.f32 %v3549_v11, %v4186_v6 }
 0x650   :  { %v1066_v14 = vpop.f32.mrf.mxu0 }
 0x651   :  { %v1178_v15 = vmul.f32 0.5, %v1177_v12  ;;  %v4196_v16 = vadd.f32 %v4186_v6, %v1066_v14 }
 0x652   :  { %v3552_v17 = vpop.f32.mrf.mxu0 }
 0x653   :  { %3838 = vtanh.f32 %v1178_v15  ;;  %v4199_v18 = vadd.f32 %v3552_v17, %v4186_v6 }
 0x654   :  { %v1076_v19 = vpop.f32.mrf.mxu0 }
 0x655   :  { %v4202_v20 = vadd.f32 %v4186_v6, %v1076_v19 }
 0x656   :  { %v3555_v21 = vpop.f32.mrf.mxu0 }
 0x657   :  { %v4205_v22 = vadd.f32 %v3555_v21, %v4186_v6 }
 0x658   :  { %v4245_v62 = vpop.f32.mrf.mxu0 }
 0x660   :  { %v3839_v23 = vpop.eup %3838 }
 0x661   :  { %v1180_v24 = vmul.f32 0.5, %v3839_v23 }
 0x663   :  { %v1181_v25 = vadd.f32 0.5, %v1180_v24 }
 0x665   :  { %v1186_v27 = vmul.f32 %v1184_v26, %v1181_v25  ;;  %v1193_v32 = vsub.f32 1.0, %v1181_v25 }
 0x667   :  { %1188 = vrot.lane.b32.xlu0 %v1186_v27, %s3968_s3 }
 0x66b   :  { %1199 = vrot.lane.b32.xlu0 %v4150_v47, %s3969_s26 }
 0x6d9   :  { %v1189_v28 = vpop.permute.xlu0 %1188 }
 0x6da   :  { %v1191_v29 = vadd.f32 %v1189_v28, %v1057_v10 }
 0x6dc   :  { %3840 = vtanh.f32 %v1191_v29 }
 0x6dd   :  { %v4210_v31 = vpop.permute.xlu0 %1199 }
 0x6de   :  { %v1202_v34 = vmul.f32 %v4210_v31, %v1181_v25 }
 0x6e9   :  { %v3841_v30 = vpop.eup %3840 }
 0x6ea   :  { %1195 = vrot.lane.b32.xlu1 %v3841_v30, %s3970_s27 }
 0x75c   :  { %v1196_v33 = vpop.permute.xlu1 %1195 }
 0x75d   :  { %v1198_v36 = vmul.f32 %v1196_v33, %v1193_v32 }
 0x75f   :  { %v1203_v38 = vadd.f32 %v1202_v34, %v1198_v36 }
 0x761   :  { %1205 = vrot.lane.b32.xlu1 %v1203_v38, %s3970_s27 }
 0x7d3   :  { %v1206_v39 = vpop.permute.xlu1 %1205 }
 0x7d4   :  { %1209 = vst.msk [vmem:[#allocation2] sm:$0x3] %vm1208_vm11, %v1206_v39  ;;  %3576 = vmatmul.mubr.msk.f32.vlgmr.msra.gmra.mxu1 %vm38_vm8, %v1206_v39 }
 0x7d5   :  { %3590 = vmatpush3.msra.mxu1 %v4124_v35  ;;  %3597 = vmatprep.mubr.msk.f32.mxu1 %vm3966_vm0, %v3965_v0 }
 0x7d6   :  { %3591 = vmatprep.subr.mxu1 %v3965_v0 }
 0x7d7   :  { %3592 = vmatpush3.msra.mxu1 %v4128_v37 }
 0x7d8   :  { %3593 = vmatprep.subr.mxu1 %v3965_v0 }
 0x7d9   :  { %3594 = vmatpush3.msra.mxu1 %v4132_v40 }
 0x7da   :  { %3595 = vmatprep.subr.mxu1 %v3965_v0 }
 0x7db   :  { %3596 = vmatpush3.msra.mxu1 %v4138_v41 }
 0x7dc   :  { %3611 = vmatprep.subr.mxu1 %v3965_v0 }
 0x894   :  { %v1278_v42 = vpop.f32.mrf.mxu1 }
 0x895   :  { %v1279_v43 = vadd.f32 %v4176_v1, %v1278_v42 }
 0x896   :  { %v3577_v44 = vpop.f32.mrf.mxu1 }
 0x897   :  { %1288 = vrot.lane.b32.xlu0 %v1279_v43, %s3968_s3  ;;  %v1282_v45 = vadd.f32 %v1279_v43, %v4189_v8 }
 0x899   :  { %v1283_v46 = vmul.f32 0.5, %v1282_v45 }
 0x89b   :  { %3842 = vtanh.f32 %v1283_v46 }
 0x8a8   :  { %v3843_v48 = vpop.eup %3842 }
 0x8a9   :  { %v1285_v49 = vmul.f32 0.5, %v3843_v48 }
 0x8ab   :  { %v1286_v50 = vadd.f32 0.5, %v1285_v49 }
 0x8ad   :  { %v1298_v56 = vsub.f32 1.0, %v1286_v50  ;;  %v1304_v58 = vmul.f32 %v1286_v50, %v1203_v38 }
 0x909   :  { %v1289_v51 = vpop.permute.xlu0 %1288 }
 0x90a   :  { %v1291_v52 = vmul.f32 %v1289_v51, %v1286_v50 }
 0x90c   :  { %1293 = vrot.lane.b32.xlu1 %v1291_v52, %s3968_s3 }
 0x97e   :  { %v1294_v53 = vpop.permute.xlu1 %1293 }
 0x97f   :  { %v1296_v54 = vadd.f32 %v1294_v53, %v4189_v8 }
 0x981   :  { %3844 = vtanh.f32 %v1296_v54 }
 0x98e   :  { %v3845_v55 = vpop.eup %3844 }
 0x98f   :  { %1300 = vrot.lane.b32.xlu0 %v3845_v55, %s3970_s27 }
 0xa01   :  { %v1301_v57 = vpop.permute.xlu0 %1300 }
 0xa02   :  { %v1303_v59 = vmul.f32 %v1301_v57, %v1298_v56 }
 0xa04   :  { %v1305_v60 = vadd.f32 %v1304_v58, %v1303_v59 }
 0xa06   :  { %1307 = vrot.lane.b32.xlu1 %v1305_v60, %s3970_s27 }
 0xa78   :  { %v1308_v61 = vpop.permute.xlu1 %1307 }
 0xa79   :  { %1310 = vst.msk [vmem:[#allocation2 + $0x8] sm:$0x3] %vm1208_vm11, %v1308_v61  ;;  %3587 = vmatmul.mubr.msk.f32.vlgmr.msra.gmra.mxu0 %vm38_vm8, %v1308_v61 }
 0xa7a   :  { %3601 = vmatpush3.msra.mxu0 %v4124_v35  ;;  %3608 = vmatprep.mubr.msk.f32.mxu0 %vm3966_vm0, %v3965_v0 }
 0xa7b   :  { %3602 = vmatprep.subr.mxu0 %v3965_v0 }
 0xa7c   :  { %3603 = vmatpush3.msra.mxu0 %v4128_v37 }
 0xa7d   :  { %3604 = vmatprep.subr.mxu0 %v3965_v0 }
 0xa7e   :  { %3605 = vmatpush3.msra.mxu0 %v4132_v40 }
 0xa7f   :  { %3606 = vmatprep.subr.mxu0 %v3965_v0 }
 0xa80   :  { %3607 = vmatpush3.msra.mxu0 %v4138_v41 }
 0xa81   :  { %3622 = vmatprep.subr.mxu0 %v3965_v0 }
 0xb39   :  { %v1379_v63 = vpop.f32.mrf.mxu0 }
 0xb3a   :  { %v1380_v2 = vadd.f32 %v4176_v1, %v1379_v63 }
 0xb3b   :  { %v3588_v3 = vpop.f32.mrf.mxu0 }
 0xb3c   :  { %1389 = vrot.lane.b32.xlu0 %v1380_v2, %s3968_s3  ;;  %v1383_v4 = vadd.f32 %v1380_v2, %v4196_v16 }
 0xb3e   :  { %v1384_v5 = vmul.f32 0.5, %v1383_v4 }
 0xb40   :  { %3846 = vtanh.f32 %v1384_v5 }
 0xb4d   :  { %v3847_v7 = vpop.eup %3846 }
 0xb4e   :  { %v1386_v8 = vmul.f32 0.5, %v3847_v7 }
 0xb50   :  { %v1387_v9 = vadd.f32 0.5, %v1386_v8 }
 0xb52   :  { %v1399_v17 = vsub.f32 1.0, %v1387_v9  ;;  %v1405_v21 = vmul.f32 %v1387_v9, %v1305_v60 }
 0xbae   :  { %v1390_v10 = vpop.permute.xlu0 %1389 }
 0xbaf   :  { %v1392_v11 = vmul.f32 %v1390_v10, %v1387_v9 }
 0xbb1   :  { %1394 = vrot.lane.b32.xlu1 %v1392_v11, %s3968_s3 }
 0xc23   :  { %v1395_v12 = vpop.permute.xlu1 %1394 }
 0xc24   :  { %v1397_v14 = vadd.f32 %v1395_v12, %v4196_v16 }
 0xc26   :  { %3848 = vtanh.f32 %v1397_v14 }
 0xc33   :  { %v3849_v15 = vpop.eup %3848 }
 0xc34   :  { %1401 = vrot.lane.b32.xlu0 %v3849_v15, %s3970_s27 }
 0xca6   :  { %v1402_v19 = vpop.permute.xlu0 %1401 }
 0xca7   :  { %v1404_v23 = vmul.f32 %v1402_v19, %v1399_v17  ;;  %v1928_v17 = vld [vmem:[#allocation4 + $0x128] sm:$0xff] }
 0xca9   :  { %v1406_v24 = vadd.f32 %v1405_v21, %v1404_v23 }
 0xcab   :  { %1408 = vrot.lane.b32.xlu1 %v1406_v24, %s3970_s27 }
 0xd1d   :  { %v1409_v25 = vpop.permute.xlu1 %1408 }
 0xd1e   :  { %1411 = vst.msk [vmem:[#allocation2 + $0x10] sm:$0x3] %vm1208_vm11, %v1409_v25  ;;  %3598 = vmatmul.mubr.msk.f32.vlgmr.msra.gmra.mxu1 %vm38_vm8, %v1409_v25 }
 0xd1f   :  { %3612 = vmatpush3.msra.mxu1 %v4124_v35  ;;  %3619 = vmatprep.mubr.msk.f32.mxu1 %vm3966_vm0, %v3965_v0 }
 0xd20   :  { %3613 = vmatprep.subr.mxu1 %v3965_v0 }
 0xd21   :  { %3614 = vmatpush3.msra.mxu1 %v4128_v37 }
 0xd22   :  { %3615 = vmatprep.subr.mxu1 %v3965_v0 }
 0xd23   :  { %3616 = vmatpush3.msra.mxu1 %v4132_v40 }
 0xd24   :  { %3617 = vmatprep.subr.mxu1 %v3965_v0 }
 0xd25   :  { %3618 = vmatpush3.msra.mxu1 %v4138_v41 }
 0xd26   :  { %3633 = vmatprep.subr.mxu1 %v3965_v0 }
 0xdde   :  { %v1480_v16 = vpop.f32.mrf.mxu1 }
 0xddf   :  { %v1481_v26 = vadd.f32 %v4176_v1, %v1480_v16 }
 0xde0   :  { %v3599_v27 = vpop.f32.mrf.mxu1 }
 0xde1   :  { %1490 = vrot.lane.b32.xlu0 %v1481_v26, %s3968_s3  ;;  %v1484_v28 = vadd.f32 %v1481_v26, %v4193_v13  ;;  %v1927_v27 = vld [vmem:[#allocation4 + $0x120] sm:$0xff] }
 0xde3   :  { %v1485_v29 = vmul.f32 0.5, %v1484_v28  ;;  %v1926_v28 = vld [vmem:[#allocation4 + $0x118] sm:$0xff] }
 0xde5   :  { %3850 = vtanh.f32 %v1485_v29  ;;  %v1925_v29 = vld [vmem:[#allocation4 + $0x110] sm:$0xff] }
 0xdf2   :  { %v3851_v30 = vpop.eup %3850 }
 0xdf3   :  { %v1487_v32 = vmul.f32 0.5, %v3851_v30  ;;  %v1918_v30 = vld [vmem:[#allocation2 + $0x8] sm:$0xff] }
 0xdf5   :  { %v1488_v33 = vadd.f32 0.5, %v1487_v32  ;;  %v1919_v32 = vld [vmem:[#allocation2 + $0x10] sm:$0xff] }
 0xdf7   :  { %v1500_v43 = vsub.f32 1.0, %v1488_v33  ;;  %v1506_v45 = vmul.f32 %v1488_v33, %v1406_v24 }
 0xe53   :  { %v1491_v34 = vpop.permute.xlu0 %1490 }
 0xe54   :  { %v1493_v36 = vmul.f32 %v1491_v34, %v1488_v33 }
 0xe56   :  { %1495 = vrot.lane.b32.xlu1 %v1493_v36, %s3968_s3 }
 0xec8   :  { %v1496_v38 = vpop.permute.xlu1 %1495 }
 0xec9   :  { %v1498_v39 = vadd.f32 %v1496_v38, %v4193_v13 }
 0xecb   :  { %3852 = vtanh.f32 %v1498_v39 }
 0xed8   :  { %v3853_v42 = vpop.eup %3852 }
 0xed9   :  { %1502 = vrot.lane.b32.xlu0 %v3853_v42, %s3970_s27 }
 0xf4b   :  { %v1503_v44 = vpop.permute.xlu0 %1502 }
 0xf4c   :  { %v1505_v46 = vmul.f32 %v1503_v44, %v1500_v43  ;;  %v1087_v43 = vadd.f32 %v4186_v6, %v4245_v62  ;;  %v4328_v6 = vld [vmem:[#allocation4 + $0x148] sm:$0xff]  ;;  %v4332_v62 = vld [vmem:[#allocation4 + $0x140] sm:$0xff] }
 0xf4e   :  { %v1507_v48 = vadd.f32 %v1506_v45, %v1505_v46 }
 0xf50   :  { %1509 = vrot.lane.b32.xlu1 %v1507_v48, %s3970_s27 }
 0xfc2   :  { %v1510_v49 = vpop.permute.xlu1 %1509 }
 0xfc3   :  { %1512 = vst.msk [vmem:[#allocation2 + $0x18] sm:$0x3] %vm1208_vm11, %v1510_v49  ;;  %3609 = vmatmul.mubr.msk.f32.vlgmr.msra.gmra.mxu0 %vm38_vm8, %v1510_v49 }
 0xfc4   :  { %3623 = vmatpush3.msra.mxu0 %v4124_v35  ;;  %3630 = vmatprep.mubr.msk.f32.mxu0 %vm3966_vm0, %v3965_v0 }
 0xfc5   :  { %3624 = vmatprep.subr.mxu0 %v3965_v0 }
 0xfc6   :  { %3625 = vmatpush3.msra.mxu0 %v4128_v37 }
 0xfc7   :  { %3626 = vmatprep.subr.mxu0 %v3965_v0 }
 0xfc8   :  { %3627 = vmatpush3.msra.mxu0 %v4132_v40 }
 0xfc9   :  { %3628 = vmatprep.subr.mxu0 %v3965_v0 }
 0xfca   :  { %3629 = vmatpush3.msra.mxu0 %v4138_v41  ;;  %v1920_v33 = vld [vmem:[#allocation2 + $0x18] sm:$0xff] }
 0xfcb   :  { %3644 = vmatprep.subr.mxu0 %v1928_v17 }
0x1083   :  { %v1581_v13 = vpop.f32.mrf.mxu0 }
0x1084   :  { %v1582_v50 = vadd.f32 %v4176_v1, %v1581_v13 }
0x1085   :  { %v3610_v51 = vpop.f32.mrf.mxu0 }
0x1086   :  { %1591 = vrot.lane.b32.xlu0 %v1582_v50, %s3968_s3  ;;  %v1585_v52 = vadd.f32 %v1582_v50, %v4202_v20 }
0x1088   :  { %v1586_v53 = vmul.f32 0.5, %v1585_v52 }
0x108a   :  { %3854 = vtanh.f32 %v1586_v53 }
0x1097   :  { %v3855_v54 = vpop.eup %3854 }
0x1098   :  { %v1588_v55 = vmul.f32 0.5, %v3855_v54  ;;  %v4325_v54 = vld [vmem:[#allocation4 + $0x150] sm:$0xff] }
0x109a   :  { %v1589_v56 = vadd.f32 0.5, %v1588_v55  ;;  %v4336_v55 = vld [vmem:[#allocation4 + $0x138] sm:$0xff] }
0x109c   :  { %v1601_v63 = vsub.f32 1.0, %v1589_v56  ;;  %v1607_v3 = vmul.f32 %v1589_v56, %v1507_v48 }
0x10f8   :  { %v1592_v57 = vpop.permute.xlu0 %1591 }
0x10f9   :  { %v1594_v58 = vmul.f32 %v1592_v57, %v1589_v56 }
0x10fb   :  { %1596 = vrot.lane.b32.xlu1 %v1594_v58, %s3968_s3 }
0x116d   :  { %v1597_v59 = vpop.permute.xlu1 %1596 }
0x116e   :  { %v1599_v60 = vadd.f32 %v1597_v59, %v4202_v20 }
0x1170   :  { %3856 = vtanh.f32 %v1599_v60 }
0x117d   :  { %v3857_v61 = vpop.eup %3856 }
0x117e   :  { %1603 = vrot.lane.b32.xlu0 %v3857_v61, %s3970_s27 }
0x11f0   :  { %v1604_v2 = vpop.permute.xlu0 %1603 }
0x11f1   :  { %v1606_v4 = vmul.f32 %v1604_v2, %v1601_v63 }
0x11f3   :  { %v1608_v5 = vadd.f32 %v1607_v3, %v1606_v4  ;;  %v4370_v3 = vld [vmem:[#allocation4 + $0x158] ss:$0 sm:$0xff] }
0x11f5   :  { %1610 = vrot.lane.b32.xlu1 %v1608_v5, %s3970_s27 }
0x1267   :  { %v1611_v7 = vpop.permute.xlu1 %1610 }
0x1268   :  { %1613 = vst.msk [vmem:[#allocation2 + $0x20] sm:$0x3] %vm1208_vm11, %v1611_v7  ;;  %3620 = vmatmul.mubr.msk.f32.vlgmr.msra.gmra.mxu1 %vm38_vm8, %v1611_v7 }
0x1269   :  { %3634 = vmatpush3.msra.mxu1 %v4124_v35  ;;  %3641 = vmatprep.mubr.msk.f32.mxu1 %vm3966_vm0, %v3965_v0 }
0x126a   :  { %3635 = vmatprep.subr.mxu1 %v3965_v0 }
0x126b   :  { %3636 = vmatpush3.msra.mxu1 %v4128_v37 }
0x126c   :  { %3637 = vmatprep.subr.mxu1 %v3965_v0 }
0x126d   :  { %3638 = vmatpush3.msra.mxu1 %v4132_v40 }
0x126e   :  { %3639 = vmatprep.subr.mxu1 %v3965_v0 }
0x126f   :  { %3640 = vmatpush3.msra.mxu1 %v4138_v41  ;;  %v1921_v34 = vld [vmem:[#allocation2 + $0x20] sm:$0xff] }
0x1270   :  { %3664 = vmatprep.subr.mxu1 %v3965_v0 }
0x1328   :  { %v1682_v20 = vpop.f32.mrf.mxu1 }
0x1329   :  { %v1683_v35 = vadd.f32 %v4176_v1, %v1682_v20 }
0x132a   :  { %v3621_v8 = vpop.f32.mrf.mxu1 }
0x132b   :  { %1692 = vrot.lane.b32.xlu0 %v1683_v35, %s3968_s3  ;;  %v1686_v9 = vadd.f32 %v1683_v35, %v4199_v18  ;;  %v4376_v8 = vld [vmem:[#allocation4 + $0x130] ss:$0 sm:$0xff] }
0x132d   :  { %v1687_v10 = vmul.f32 0.5, %v1686_v9 }
0x132f   :  { %3858 = vtanh.f32 %v1687_v10 }
0x133c   :  { %v3859_v37 = vpop.eup %3858 }
0x133d   :  { %v1689_v11 = vmul.f32 0.5, %v3859_v37 }
0x133f   :  { %v1690_v12 = vadd.f32 0.5, %v1689_v11 }
0x1341   :  { %v1702_v21 = vsub.f32 1.0, %v1690_v12  ;;  %v1708_v24 = vmul.f32 %v1690_v12, %v1608_v5 }
0x139d   :  { %v1693_v40 = vpop.permute.xlu0 %1692 }
0x139e   :  { %v1695_v14 = vmul.f32 %v1693_v40, %v1690_v12 }
0x13a0   :  { %1697 = vrot.lane.b32.xlu1 %v1695_v14, %s3968_s3 }
0x1412   :  { %v1698_v41 = vpop.permute.xlu1 %1697 }
0x1413   :  { %v1700_v15 = vadd.f32 %v1698_v41, %v4199_v18  ;;  %v1917_v18 = vld [vmem:[#allocation2] sm:$0xff] }
0x1415   :  { %3860 = vtanh.f32 %v1700_v15 }
0x1422   :  { %v3861_v19 = vpop.eup %3860 }
0x1423   :  { %1704 = vrot.lane.b32.xlu0 %v3861_v19, %s3970_s27 }
0x1495   :  { %v1705_v23 = vpop.permute.xlu0 %1704 }
0x1496   :  { %v1707_v25 = vmul.f32 %v1705_v23, %v1702_v21 }
0x1498   :  { %v1709_v16 = vadd.f32 %v1708_v24, %v1707_v25 }
0x149a   :  { %1711 = vrot.lane.b32.xlu1 %v1709_v16, %s3970_s27 }
0x150c   :  { %v1712_v26 = vpop.permute.xlu1 %1711 }
0x150d   :  { %1714 = vst.msk [vmem:[#allocation2 + $0x28] sm:$0x3] %vm1208_vm11, %v1712_v26  ;;  %3631 = vmatmul.mubr.msk.f32.vlgmr.msra.gmra.mxu0 %vm38_vm8, %v1712_v26 }
0x150e   :  { %3645 = vmatpush3.msra.mxu0 %v1928_v17  ;;  %3652 = vmatprep.mubr.msk.f32.mxu0 %vm38_vm8, %v1917_v18 }
0x150f   :  { %3646 = vmatprep.subr.mxu0 %v1927_v27 }
0x1510   :  { %3647 = vmatpush3.msra.mxu0 %v1927_v27 }
0x1511   :  { %3648 = vmatprep.subr.mxu0 %v1926_v28 }
0x1512   :  { %3649 = vmatpush3.msra.mxu0 %v1926_v28 }
0x1513   :  { %3650 = vmatprep.subr.mxu0 %v1925_v29 }
0x1514   :  { %3651 = vmatpush3.msra.mxu0 %v1925_v29  ;;  %v1922_v36 = vld [vmem:[#allocation2 + $0x28] sm:$0xff] }
0x1515   :  { %3653 = vmatmul.mubr.msk.f32.vlgmr.msra.gmra.mxu0 %vm38_vm8, %v1918_v30  ;;  %3686 = vmatprep.subr.mxu0 %v3965_v0 }
0x1516   :  { %3655 = vmatprep.mubr.msk.f32.mxu0 %vm38_vm8, %v1919_v32  ;;  %3687 = vmatpush3.msra.mxu0 %v4325_v54 }
0x1517   :  { %3688 = vmatprep.subr.mxu0 %v3965_v0 }
0x1518   :  { %3689 = vmatpush3.msra.mxu0 %v4328_v6 }
0x1519   :  { %3656 = vmatmul.mubr.msk.f32.gmra.mxu0 %vm38_vm8, %v1920_v33  ;;  %3690 = vmatprep.subr.mxu0 %v3965_v0 }
0x151a   :  { %3658 = vmatprep.mubr.msk.f32.mxu0 %vm38_vm8, %v1921_v34  ;;  %3691 = vmatpush3.msra.mxu0 %v4332_v62 }
0x151b   :  { %3692 = vmatprep.subr.mxu0 %v3965_v0 }
0x151c   :  { %3693 = vmatpush3.msra.mxu0 %v4336_v55 }
0x151d   :  { %3659 = vmatmul.mubr.msk.f32.gmra.mxu0 %vm38_vm8, %v1922_v36  ;;  %3708 = vmatprep.subr.mxu0 %v3965_v0 }
0x15cd   :  { %v1783_v38 = vpop.f32.mrf.mxu0 }
0x15ce   :  { %v1784_v39 = vadd.f32 %v4176_v1, %v1783_v38 }
0x15cf   :  { %v3632_v42 = vpop.f32.mrf.mxu0 }
0x15d0   :  { %1793 = vrot.lane.b32.xlu0 %v1784_v39, %s3968_s3  ;;  %v1787_v44 = vadd.f32 %v1784_v39, %v1087_v43 }
0x15d2   :  { %v1788_v45 = vmul.f32 0.5, %v1787_v44 }
0x15d4   :  { %3862 = vtanh.f32 %v1788_v45 }
0x15d5   :  { %v4374_v20 = vpop.f32.mrf.mxu0 }
0x15d7   :  { %v2024_v35 = vpop.f32.mrf.mxu0 }
0x15d8   :  { %v2025_v9 = vadd.f32 %v4376_v8, %v2024_v35 }
0x15e1   :  { %v3863_v46 = vpop.eup %3862 }
0x15e2   :  { %v1790_v48 = vmul.f32 0.5, %v3863_v46 }
0x15e4   :  { %v1791_v49 = vadd.f32 0.5, %v1790_v48 }
0x15e6   :  { %v1803_v56 = vsub.f32 1.0, %v1791_v49  ;;  %v1809_v58 = vmul.f32 %v1791_v49, %v1709_v16 }
0x1642   :  { %v1794_v13 = vpop.permute.xlu0 %1793 }
0x1643   :  { %v1796_v50 = vmul.f32 %v1794_v13, %v1791_v49  ;;  %v2030_v13 = vadd.f32 %v4374_v20, %v4376_v8  ;;  %v3657_v20 = vpop.f32.mrf.mxu0 }
0x1645   :  { %1798 = vrot.lane.b32.xlu1 %v1796_v50, %s3968_s3  ;;  %v2034_v35 = vpop.f32.mrf.mxu0 }
0x16b7   :  { %v1799_v51 = vpop.permute.xlu1 %1798 }
0x16b8   :  { %v1801_v52 = vadd.f32 %v1799_v51, %v1087_v43 }
0x16ba   :  { %3864 = vtanh.f32 %v1801_v52 }
0x16c7   :  { %v3865_v53 = vpop.eup %3864 }
0x16c8   :  { %1805 = vrot.lane.b32.xlu0 %v3865_v53, %s3970_s27 }
0x173a   :  { %v1806_v57 = vpop.permute.xlu0 %1805 }
0x173b   :  { %v1808_v59 = vmul.f32 %v1806_v57, %v1803_v56 }
0x173d   :  { %v4341_v60 = vadd.f32 %v1809_v58, %v1808_v59 }
0x173f   :  { %1812 = vrot.lane.b32.xlu1 %v4341_v60, %s3970_s27 }
0x17b1   :  { %v1813_v61 = vpop.permute.xlu1 %1812 }
0x17b2   :  { %1815 = vst.msk [vmem:[#allocation2 + $0x30] sm:$0x3] %vm1208_vm11, %v1813_v61  ;;  %3642 = vmatmul.mubr.msk.f32.vlgmr.msra.gmra.mxu1 %vm38_vm8, %v1813_v61 }
0x17b3   :  { %3665 = vmatpush3.msra.mxu1 %v4325_v54  ;;  %3672 = vmatprep.mubr.msk.f32.mxu1 %vm3966_vm0, %v3965_v0 }
0x17b4   :  { %3666 = vmatprep.subr.mxu1 %v3965_v0 }
0x17b5   :  { %3667 = vmatpush3.msra.mxu1 %v4328_v6 }
0x17b6   :  { %3668 = vmatprep.subr.mxu1 %v3965_v0 }
0x17b7   :  { %3669 = vmatpush3.msra.mxu1 %v4332_v62 }
0x17b8   :  { %3670 = vmatprep.subr.mxu1 %v3965_v0 }
0x17b9   :  { %3671 = vmatpush3.msra.mxu1 %v4336_v55  ;;  %v1923_v63 = vld [vmem:[#allocation2 + $0x30] sm:$0xff] }
0x17ba   :  { %3673 = vmatmul.mubr.msk.f32.vlgmr.msra.gmra.mxu1 %vm38_vm8, %v4150_v47  ;;  %3661 = vmatprep.mubr.msk.f32.mxu0 %vm38_vm8, %v1923_v63 }
0x17bb   :  { %3675 = vmatprep.subr.mxu1 %v3965_v0  ;;  %3683 = vmatprep.mubr.msk.f32.mxu1 %vm3966_vm0, %v3965_v0 }
0x17bc   :  { %3676 = vmatpush3.msra.mxu1 %v4325_v54 }
0x17bd   :  { %3677 = vmatprep.subr.mxu1 %v3965_v0 }
0x17be   :  { %3678 = vmatpush3.msra.mxu1 %v4328_v6 }
0x17bf   :  { %3679 = vmatprep.subr.mxu1 %v3965_v0 }
0x17c0   :  { %3680 = vmatpush3.msra.mxu1 %v4332_v62 }
0x17c1   :  { %3681 = vmatprep.subr.mxu1 %v3965_v0 }
0x17c2   :  { %3682 = vmatpush3.msra.mxu1 %v4336_v55 }
0x17c3   :  { %3697 = vmatprep.subr.mxu1 %v3965_v0 }
0x1872   :  { %v1884_v47 = vpop.f32.mrf.mxu1 }
0x1873   :  { %v1885_v21 = vadd.f32 %v4176_v1, %v1884_v47 }
0x1874   :  { %v3643_v2 = vpop.f32.mrf.mxu1 }
0x1875   :  { %v1888_v23 = vadd.f32 %v1885_v21, %v4205_v22 }
0x1877   :  { %v1889_v24 = vmul.f32 0.5, %v1888_v23 }
0x187a   :  { %v2138_v4 = vpop.f32.mrf.mxu1 }
0x187b   :  { %v2139_v5 = vadd.f32 %v4370_v3, %v2138_v4 }
0x187c   :  { %v3674_v7 = vpop.f32.mrf.mxu1 }
0x187d   :  { %2148 = vrot.lane.b32.xlu0 %v2139_v5, %s3968_s3  ;;  %v2142_v10 = vadd.f32 %v2139_v5, %v2025_v9 }
0x187f   :  { %v2143_v37 = vmul.f32 0.5, %v2142_v10 }
0x1881   :  { %3866 = vtanh.f32 %v2143_v37 }
0x188e   :  { %v3867_v11 = vpop.eup %3866 }
0x188f   :  { %v2145_v12 = vmul.f32 0.5, %v3867_v11 }
0x1891   :  { %v2146_v40 = vadd.f32 0.5, %v2145_v12 }
0x1893   :  { %v2158_v16 = vsub.f32 1.0, %v2146_v40  ;;  %v2164_v18 = vmul.f32 %v2146_v40, %v4210_v31 }
0x18ef   :  { %v2149_v14 = vpop.permute.xlu0 %2148 }
0x18f0   :  { %v2151_v41 = vmul.f32 %v2149_v14, %v2146_v40 }
0x18f2   :  { %2153 = vrot.lane.b32.xlu1 %v2151_v41, %s3968_s3  ;;  %v2035_v41 = vadd.f32 %v4376_v8, %v2034_v35 }
0x1964   :  { %v2154_v15 = vpop.permute.xlu1 %2153 }
0x1965   :  { %v2156_v17 = vadd.f32 %v2154_v15, %v2025_v9  ;;  %v4426_v9 = vpop.f32.mrf.mxu0 }
0x1967   :  { %3868 = vtanh.f32 %v2156_v17  ;;  %v4428_v10 = vpop.f32.mrf.mxu0 }
0x1968   :  { %3870 = vtanh.f32 %v1889_v24 }
0x1974   :  { %v3869_v19 = vpop.eup %3868 }
0x1975   :  { %2160 = vrot.lane.b32.xlu0 %v3869_v19, %s3970_s27  ;;  %v3871_v25 = vpop.eup %3870 }
0x1976   :  { %v1891_v26 = vmul.f32 0.5, %v3871_v25 }
0x1978   :  { %v1892_v30 = vadd.f32 0.5, %v1891_v26 }
0x1979   :  { %1894 = vrot.lane.b32.xlu0 %v1885_v21, %s3968_s3 }
0x197a   :  { %v1904_v38 = vsub.f32 1.0, %v1892_v30  ;;  %v1910_v39 = vmul.f32 %v1892_v30, %v4341_v60 }
0x19e7   :  { %v2161_v27 = vpop.permute.xlu0 %2160 }
0x19e8   :  { %v2163_v28 = vmul.f32 %v2161_v27, %v2158_v16 }
0x19ea   :  { %v2165_v29 = vadd.f32 %v2164_v18, %v2163_v28 }
0x19eb   :  { %v1895_v32 = vpop.permute.xlu0 %1894 }
0x19ec   :  { %v1897_v33 = vmul.f32 %v1895_v32, %v1892_v30  ;;  %2167 = vrot.lane.b32.xlu1 %v2165_v29, %s3970_s27 }
0x19ee   :  { %1899 = vrot.lane.b32.xlu0 %v1897_v33, %s3968_s3 }
0x1a5e   :  { %v2168_v1 = vpop.permute.xlu1 %2167 }
0x1a5f   :  { %2170 = vst.msk [vmem:[#allocation3] sm:$0x3] %vm1208_vm11, %v2168_v1  ;;  %3684 = vmatmul.mubr.msk.f32.vlgmr.msra.gmra.mxu1 %vm38_vm8, %v2168_v1 }
0x1a60   :  { %v1900_v34 = vpop.permute.xlu0 %1899  ;;  %3698 = vmatpush3.msra.mxu1 %v4325_v54  ;;  %3705 = vmatprep.mubr.msk.f32.mxu1 %vm3966_vm0, %v3965_v0 }
0x1a61   :  { %v1902_v31 = vadd.f32 %v1900_v34, %v4205_v22  ;;  %3699 = vmatprep.subr.mxu1 %v3965_v0 }
0x1a62   :  { %3700 = vmatpush3.msra.mxu1 %v4328_v6 }
0x1a63   :  { %3872 = vtanh.f32 %v1902_v31  ;;  %3701 = vmatprep.subr.mxu1 %v3965_v0 }
0x1a64   :  { %3702 = vmatpush3.msra.mxu1 %v4332_v62 }
0x1a65   :  { %3703 = vmatprep.subr.mxu1 %v3965_v0 }
0x1a66   :  { %3704 = vmatpush3.msra.mxu1 %v4336_v55 }
0x1a67   :  { %3719 = vmatprep.subr.mxu1 %v3965_v0 }
0x1a70   :  { %v3873_v36 = vpop.eup %3872 }
0x1a71   :  { %1906 = vrot.lane.b32.xlu0 %v3873_v36, %s3970_s27  ;;  %v2040_v36 = vadd.f32 %v3657_v20, %v4376_v8 }
0x1ae3   :  { %v1907_v22 = vpop.permute.xlu0 %1906 }
0x1ae4   :  { %v1909_v42 = vmul.f32 %v1907_v22, %v1904_v38 }
0x1ae6   :  { %v1911_v43 = vadd.f32 %v1910_v39, %v1909_v42 }
0x1ae8   :  { %1913 = vrot.lane.b32.xlu0 %v1911_v43, %s3970_s27 }
0x1b1f   :  { %v2239_v44 = vpop.f32.mrf.mxu1 }
0x1b20   :  { %v2240_v45 = vadd.f32 %v4370_v3, %v2239_v44 }
0x1b21   :  { %v3685_v46 = vpop.f32.mrf.mxu1 }
0x1b22   :  { %2249 = vrot.lane.b32.xlu1 %v2240_v45, %s3968_s3  ;;  %v2243_v50 = vadd.f32 %v2240_v45, %v2030_v13 }
0x1b24   :  { %v2244_v51 = vmul.f32 0.5, %v2243_v50 }
0x1b26   :  { %3874 = vtanh.f32 %v2244_v51 }
0x1b33   :  { %v3875_v52 = vpop.eup %3874 }
0x1b34   :  { %v2246_v53 = vmul.f32 0.5, %v3875_v52 }
0x1b36   :  { %v2247_v56 = vadd.f32 0.5, %v2246_v53 }
0x1b38   :  { %v2259_v63 = vsub.f32 1.0, %v2247_v56  ;;  %v2265_v2 = vmul.f32 %v2247_v56, %v2165_v29 }
0x1b5a   :  { %v1914_v48 = vpop.permute.xlu0 %1913 }
0x1b5b   :  { %1916 = vst.msk [vmem:[#allocation2 + $0x38] sm:$0x3] %vm1208_vm11, %v1914_v48 }
0x1b62   :  { %v1924_v49 = vld [vmem:[#allocation2 + $0x38] sm:$0xff] }
0x1b63   :  { %3662 = vmatmul.mubr.msk.f32.gmra.mxu0 %vm38_vm8, %v1924_v49 }
0x1b64   :  { %3694 = vmatprep.mubr.msk.f32.mxu0 %vm3966_vm0, %v3965_v0 }
0x1b94   :  { %v2250_v57 = vpop.permute.xlu1 %2249 }
0x1b95   :  { %v2252_v58 = vmul.f32 %v2250_v57, %v2247_v56 }
0x1b97   :  { %2254 = vrot.lane.b32.xlu1 %v2252_v58, %s3968_s3 }
0x1c09   :  { %v2255_v59 = vpop.permute.xlu1 %2254 }
0x1c0a   :  { %v2257_v60 = vadd.f32 %v2255_v59, %v2030_v13 }
0x1c0c   :  { %3876 = vtanh.f32 %v2257_v60  ;;  %v2045_v60 = vadd.f32 %v4376_v8, %v4428_v10 }
0x1c19   :  { %v3877_v61 = vpop.eup %3876 }
0x1c1a   :  { %2261 = vrot.lane.b32.xlu1 %v3877_v61, %s3970_s27 }
0x1c23   :  { %v4430_v37 = vpop.f32.mrf.mxu0 }
0x1c25   :  { %v4432_v11 = vpop.f32.mrf.mxu0 }
0x1c8c   :  { %v2262_v47 = vpop.permute.xlu1 %2261 }
0x1c8d   :  { %v2264_v4 = vmul.f32 %v2262_v47, %v2259_v63 }
0x1c8f   :  { %v2266_v5 = vadd.f32 %v2265_v2, %v2264_v4 }
0x1c91   :  { %2268 = vrot.lane.b32.xlu1 %v2266_v5, %s3970_s27 }
0x1d03   :  { %v2269_v7 = vpop.permute.xlu1 %2268 }
0x1d04   :  { %2271 = vst.msk [vmem:[#allocation3 + $0x8] sm:$0x3] %vm1208_vm11, %v2269_v7  ;;  %3695 = vmatmul.mubr.msk.f32.vlgmr.msra.gmra.mxu0 %vm38_vm8, %v2269_v7 }
0x1d05   :  { %3709 = vmatpush3.msra.mxu0 %v4325_v54  ;;  %3716 = vmatprep.mubr.msk.f32.mxu0 %vm3966_vm0, %v3965_v0 }
0x1d06   :  { %3710 = vmatprep.subr.mxu0 %v3965_v0 }
0x1d07   :  { %3711 = vmatpush3.msra.mxu0 %v4328_v6 }
0x1d08   :  { %3712 = vmatprep.subr.mxu0 %v3965_v0 }
0x1d09   :  { %3713 = vmatpush3.msra.mxu0 %v4332_v62 }
0x1d0a   :  { %3714 = vmatprep.subr.mxu0 %v3965_v0 }
0x1d0b   :  { %3715 = vmatpush3.msra.mxu0 %v4336_v55 }
0x1d0c   :  { %3730 = vmatprep.subr.mxu0 %v3965_v0 }
0x1dc4   :  { %v2340_v12 = vpop.f32.mrf.mxu0 }
0x1dc5   :  { %v2341_v40 = vadd.f32 %v4370_v3, %v2340_v12 }
0x1dc6   :  { %v3696_v14 = vpop.f32.mrf.mxu0 }
0x1dc7   :  { %2350 = vrot.lane.b32.xlu0 %v2341_v40, %s3968_s3  ;;  %v2344_v15 = vadd.f32 %v2341_v40, %v2035_v41 }
0x1dc9   :  { %v2345_v17 = vmul.f32 0.5, %v2344_v15 }
0x1dcb   :  { %3878 = vtanh.f32 %v2345_v17 }
0x1dd8   :  { %v3879_v19 = vpop.eup %3878 }
0x1dd9   :  { %v2347_v21 = vmul.f32 0.5, %v3879_v19 }
0x1ddb   :  { %v2348_v23 = vadd.f32 0.5, %v2347_v21 }
0x1ddd   :  { %v2360_v18 = vsub.f32 1.0, %v2348_v23  ;;  %v2366_v29 = vmul.f32 %v2348_v23, %v2266_v5 }
0x1e39   :  { %v2351_v24 = vpop.permute.xlu0 %2350 }
0x1e3a   :  { %v2353_v25 = vmul.f32 %v2351_v24, %v2348_v23 }
0x1e3c   :  { %2355 = vrot.lane.b32.xlu1 %v2353_v25, %s3968_s3 }
0x1eae   :  { %v2356_v16 = vpop.permute.xlu1 %2355 }
0x1eaf   :  { %v2358_v26 = vadd.f32 %v2356_v16, %v2035_v41 }
0x1eb1   :  { %3880 = vtanh.f32 %v2358_v26 }
0x1ebe   :  { %v3881_v27 = vpop.eup %3880 }
0x1ebf   :  { %2362 = vrot.lane.b32.xlu0 %v3881_v27, %s3970_s27 }
0x1f31   :  { %v2363_v28 = vpop.permute.xlu0 %2362 }
0x1f32   :  { %v2365_v30 = vmul.f32 %v2363_v28, %v2360_v18  ;;  %v2889_v18 = vld [vmem:[#allocation4 + $0x178] sm:$0xff] }
0x1f34   :  { %v2367_v32 = vadd.f32 %v2366_v29, %v2365_v30 }
0x1f36   :  { %2369 = vrot.lane.b32.xlu1 %v2367_v32, %s3970_s27 }
0x1fa8   :  { %v2370_v33 = vpop.permute.xlu1 %2369 }
0x1fa9   :  { %2372 = vst.msk [vmem:[#allocation3 + $0x10] sm:$0x3] %vm1208_vm11, %v2370_v33  ;;  %3706 = vmatmul.mubr.msk.f32.vlgmr.msra.gmra.mxu1 %vm38_vm8, %v2370_v33 }
0x1faa   :  { %3720 = vmatpush3.msra.mxu1 %v4325_v54  ;;  %3727 = vmatprep.mubr.msk.f32.mxu1 %vm3966_vm0, %v3965_v0 }
0x1fab   :  { %3721 = vmatprep.subr.mxu1 %v3965_v0 }
0x1fac   :  { %3722 = vmatpush3.msra.mxu1 %v4328_v6 }
0x1fad   :  { %3723 = vmatprep.subr.mxu1 %v3965_v0 }
0x1fae   :  { %3724 = vmatpush3.msra.mxu1 %v4332_v62 }
0x1faf   :  { %3725 = vmatprep.subr.mxu1 %v3965_v0 }
0x1fb0   :  { %3726 = vmatpush3.msra.mxu1 %v4336_v55 }
0x1fb1   :  { %3741 = vmatprep.subr.mxu1 %v3965_v0 }
0x2069   :  { %v2441_v1 = vpop.f32.mrf.mxu1 }
0x206a   :  { %v2442_v34 = vadd.f32 %v4370_v3, %v2441_v1 }
0x206b   :  { %v3707_v31 = vpop.f32.mrf.mxu1 }
0x206c   :  { %2451 = vrot.lane.b32.xlu0 %v2442_v34, %s3968_s3  ;;  %v2445_v38 = vadd.f32 %v2442_v34, %v2040_v36  ;;  %v2888_v34 = vld [vmem:[#allocation4 + $0x170] sm:$0xff]  ;;  %v2878_v31 = vld [vmem:[#allocation3] sm:$0xff] }
0x206e   :  { %v2446_v22 = vmul.f32 0.5, %v2445_v38  ;;  %v2886_v38 = vld [vmem:[#allocation4 + $0x160] sm:$0xff] }
0x2070   :  { %3882 = vtanh.f32 %v2446_v22  ;;  %v2879_v22 = vld [vmem:[#allocation3 + $0x8] sm:$0xff] }
0x207d   :  { %v3883_v39 = vpop.eup %3882 }
0x207e   :  { %v2448_v42 = vmul.f32 0.5, %v3883_v39  ;;  %v2880_v39 = vld [vmem:[#allocation3 + $0x10] sm:$0xff] }
0x2080   :  { %v2449_v43 = vadd.f32 0.5, %v2448_v42 }
0x2082   :  { %v2461_v13 = vsub.f32 1.0, %v2449_v43  ;;  %v2467_v51 = vmul.f32 %v2449_v43, %v2367_v32 }
0x20de   :  { %v2452_v44 = vpop.permute.xlu0 %2451 }
0x20df   :  { %v2454_v45 = vmul.f32 %v2452_v44, %v2449_v43 }
0x20e1   :  { %2456 = vrot.lane.b32.xlu1 %v2454_v45, %s3968_s3 }
0x2153   :  { %v2457_v46 = vpop.permute.xlu1 %2456 }
0x2154   :  { %v2459_v48 = vadd.f32 %v2457_v46, %v2040_v36  ;;  %v2887_v36 = vld [vmem:[#allocation4 + $0x168] sm:$0xff] }
0x2156   :  { %3884 = vtanh.f32 %v2459_v48 }
0x2163   :  { %v3885_v49 = vpop.eup %3884 }
0x2164   :  { %2463 = vrot.lane.b32.xlu0 %v3885_v49, %s3970_s27  ;;  %v2055_v49 = vadd.f32 %v4376_v8, %v4432_v11 }
0x21d6   :  { %v2464_v50 = vpop.permute.xlu0 %2463 }
0x21d7   :  { %v2466_v52 = vmul.f32 %v2464_v50, %v2461_v13 }
0x21d9   :  { %v2468_v53 = vadd.f32 %v2467_v51, %v2466_v52 }
0x21db   :  { %2470 = vrot.lane.b32.xlu1 %v2468_v53, %s3970_s27 }
0x224d   :  { %v2471_v56 = vpop.permute.xlu1 %2470 }
0x224e   :  { %2473 = vst.msk [vmem:[#allocation3 + $0x18] sm:$0x3] %vm1208_vm11, %v2471_v56  ;;  %3717 = vmatmul.mubr.msk.f32.vlgmr.msra.gmra.mxu0 %vm38_vm8, %v2471_v56 }
0x224f   :  { %3731 = vmatpush3.msra.mxu0 %v4325_v54  ;;  %3738 = vmatprep.mubr.msk.f32.mxu0 %vm3966_vm0, %v3965_v0 }
0x2250   :  { %3732 = vmatprep.subr.mxu0 %v3965_v0 }
0x2251   :  { %3733 = vmatpush3.msra.mxu0 %v4328_v6 }
0x2252   :  { %3734 = vmatprep.subr.mxu0 %v3965_v0 }
0x2253   :  { %3735 = vmatpush3.msra.mxu0 %v4332_v62 }
0x2254   :  { %3736 = vmatprep.subr.mxu0 %v3965_v0 }
0x2255   :  { %3737 = vmatpush3.msra.mxu0 %v4336_v55  ;;  %v2881_v42 = vld [vmem:[#allocation3 + $0x18] sm:$0xff] }
0x2256   :  { %3752 = vmatprep.subr.mxu0 %v2889_v18 }
0x230e   :  { %v2542_v57 = vpop.f32.mrf.mxu0 }
0x230f   :  { %v2543_v58 = vadd.f32 %v4370_v3, %v2542_v57 }
0x2310   :  { %v3718_v59 = vpop.f32.mrf.mxu0 }
0x2311   :  { %2552 = vrot.lane.b32.xlu0 %v2543_v58, %s3968_s3  ;;  %v2546_v61 = vadd.f32 %v2543_v58, %v2045_v60 }
0x2313   :  { %v2547_v63 = vmul.f32 0.5, %v2546_v61 }
0x2315   :  { %3886 = vtanh.f32 %v2547_v63 }
0x2322   :  { %v3887_v47 = vpop.eup %3886 }
0x2323   :  { %v2549_v2 = vmul.f32 0.5, %v3887_v47 }
0x2325   :  { %v2550_v4 = vadd.f32 0.5, %v2549_v2 }
0x2327   :  { %v2562_v40 = vsub.f32 1.0, %v2550_v4  ;;  %v2568_v41 = vmul.f32 %v2550_v4, %v2468_v53 }
0x2383   :  { %v2553_v5 = vpop.permute.xlu0 %2552 }
0x2384   :  { %v2555_v7 = vmul.f32 %v2553_v5, %v2550_v4 }
0x2386   :  { %2557 = vrot.lane.b32.xlu1 %v2555_v7, %s3968_s3 }
0x23f8   :  { %v2558_v20 = vpop.permute.xlu1 %2557 }
0x23f9   :  { %v2560_v35 = vadd.f32 %v2558_v20, %v2045_v60  ;;  %v3039_v60 = vld [vmem:[#allocation4 + $0x1c0] sm:$0xff] }
0x23fa   :  { %v4512_v20 = vld [vmem:[#allocation4 + $0x180] ss:$0 sm:$0xff] }
0x23fb   :  { %3888 = vtanh.f32 %v2560_v35 }
0x2408   :  { %v3889_v12 = vpop.eup %3888 }
0x2409   :  { %2564 = vrot.lane.b32.xlu0 %v3889_v12, %s3970_s27 }
0x247b   :  { %v2565_v14 = vpop.permute.xlu0 %2564 }
0x247c   :  { %v2567_v10 = vmul.f32 %v2565_v14, %v2562_v40 }
0x247e   :  { %v2569_v15 = vadd.f32 %v2568_v41, %v2567_v10 }
0x2480   :  { %2571 = vrot.lane.b32.xlu1 %v2569_v15, %s3970_s27 }
0x24f2   :  { %v2572_v17 = vpop.permute.xlu1 %2571 }
0x24f3   :  { %2574 = vst.msk [vmem:[#allocation3 + $0x20] sm:$0x3] %vm1208_vm11, %v2572_v17  ;;  %3728 = vmatmul.mubr.msk.f32.vlgmr.msra.gmra.mxu1 %vm38_vm8, %v2572_v17  ;;  %v3038_v17 = vld [vmem:[#allocation4 + $0x1b8] sm:$0xff] }
0x24f4   :  { %3742 = vmatpush3.msra.mxu1 %v4325_v54  ;;  %3749 = vmatprep.mubr.msk.f32.mxu1 %vm3966_vm0, %v3965_v0  ;;  %v2050_v54 = vadd.f32 %v4426_v9, %v4376_v8 }
0x24f5   :  { %3743 = vmatprep.subr.mxu1 %v3965_v0 }
0x24f6   :  { %3744 = vmatpush3.msra.mxu1 %v4328_v6 }
0x24f7   :  { %3745 = vmatprep.subr.mxu1 %v3965_v0 }
0x24f8   :  { %3746 = vmatpush3.msra.mxu1 %v4332_v62 }
0x24f9   :  { %3747 = vmatprep.subr.mxu1 %v3965_v0 }
0x24fa   :  { %3748 = vmatpush3.msra.mxu1 %v4336_v55  ;;  %v2882_v43 = vld [vmem:[#allocation3 + $0x20] sm:$0xff] }
0x24fb   :  { %3772 = vmatprep.subr.mxu1 %v3039_v60 }
0x25b3   :  { %v2643_v19 = vpop.f32.mrf.mxu1 }
0x25b4   :  { %v2644_v21 = vadd.f32 %v4370_v3, %v2643_v19 }
0x25b5   :  { %v3729_v23 = vpop.f32.mrf.mxu1 }
0x25b6   :  { %2653 = vrot.lane.b32.xlu0 %v2644_v21, %s3968_s3  ;;  %v2647_v24 = vadd.f32 %v2644_v21, %v2050_v54  ;;  %v3037_v23 = vld [vmem:[#allocation4 + $0x1b0] sm:$0xff] }
0x25b8   :  { %v2648_v25 = vmul.f32 0.5, %v2647_v24 }
0x25ba   :  { %3890 = vtanh.f32 %v2648_v25  ;;  %v3036_v25 = vld [vmem:[#allocation4 + $0x1a8] sm:$0xff] }
0x25c7   :  { %v3891_v6 = vpop.eup %3890 }
0x25c8   :  { %v2650_v16 = vmul.f32 0.5, %v3891_v6  ;;  %v3035_v6 = vld [vmem:[#allocation4 + $0x1a0] sm:$0xff] }
0x25ca   :  { %v2651_v26 = vadd.f32 0.5, %v2650_v16 }
0x25cc   :  { %v2663_v29 = vsub.f32 1.0, %v2651_v26  ;;  %v2669_v30 = vmul.f32 %v2651_v26, %v2569_v15 }
0x2628   :  { %v2654_v62 = vpop.permute.xlu0 %2653 }
0x2629   :  { %v2656_v27 = vmul.f32 %v2654_v62, %v2651_v26  ;;  %v3034_v62 = vld [vmem:[#allocation4 + $0x198] sm:$0xff] }
0x262b   :  { %2658 = vrot.lane.b32.xlu1 %v2656_v27, %s3968_s3  ;;  %v3033_v27 = vld [vmem:[#allocation4 + $0x190] sm:$0xff] }
0x269d   :  { %v2659_v0 = vpop.permute.xlu1 %2658 }
0x269e   :  { %v2661_v55 = vadd.f32 %v2659_v0, %v2050_v54  ;;  %v3032_v0 = vld [vmem:[#allocation4 + $0x188] sm:$0xff] }
0x26a0   :  { %3892 = vtanh.f32 %v2661_v55 }
0x26ad   :  { %v3893_v28 = vpop.eup %3892 }
0x26ae   :  { %2665 = vrot.lane.b32.xlu0 %v3893_v28, %s3970_s27 }
0x2720   :  { %v2666_v9 = vpop.permute.xlu0 %2665 }
0x2721   :  { %v2668_v32 = vmul.f32 %v2666_v9, %v2663_v29 }
0x2723   :  { %v2670_v33 = vadd.f32 %v2669_v30, %v2668_v32 }
0x2725   :  { %2672 = vrot.lane.b32.xlu1 %v2670_v33, %s3970_s27 }
0x2797   :  { %v2673_v1 = vpop.permute.xlu1 %2672 }
0x2798   :  { %2675 = vst.msk [vmem:[#allocation3 + $0x28] sm:$0x3] %vm1208_vm11, %v2673_v1  ;;  %3739 = vmatmul.mubr.msk.f32.vlgmr.msra.gmra.mxu0 %vm38_vm8, %v2673_v1  ;;  %v3279_v1 = vld [vmem:[#allocation4 + $0x1c8] ss:$0 sm:$0xff] }
0x2799   :  { %3753 = vmatpush3.msra.mxu0 %v2889_v18  ;;  %3760 = vmatprep.mubr.msk.f32.mxu0 %vm38_vm8, %v2878_v31 }
0x279a   :  { %3754 = vmatprep.subr.mxu0 %v2888_v34 }
0x279b   :  { %3755 = vmatpush3.msra.mxu0 %v2888_v34 }
0x279c   :  { %3756 = vmatprep.subr.mxu0 %v2887_v36 }
0x279d   :  { %3757 = vmatpush3.msra.mxu0 %v2887_v36 }
0x279e   :  { %3758 = vmatprep.subr.mxu0 %v2886_v38 }
0x279f   :  { %3759 = vmatpush3.msra.mxu0 %v2886_v38  ;;  %v2883_v44 = vld [vmem:[#allocation3 + $0x28] sm:$0xff] }
0x27a0   :  { %3761 = vmatmul.mubr.msk.f32.vlgmr.msra.gmra.mxu0 %vm38_vm8, %v2879_v22 }
0x27a1   :  { %3763 = vmatprep.mubr.msk.f32.mxu0 %vm38_vm8, %v2880_v39 }
0x27a4   :  { %3764 = vmatmul.mubr.msk.f32.gmra.mxu0 %vm38_vm8, %v2881_v42 }
0x27a5   :  { %3766 = vmatprep.mubr.msk.f32.mxu0 %vm38_vm8, %v2882_v43 }
0x27a8   :  { %3767 = vmatmul.mubr.msk.f32.gmra.mxu0 %vm38_vm8, %v2883_v44 }
0x2858   :  { %v2744_v45 = vpop.f32.mrf.mxu0 }
0x2859   :  { %v2745_v46 = vadd.f32 %v4370_v3, %v2744_v45 }
0x285a   :  { %v3740_v48 = vpop.f32.mrf.mxu0 }
0x285b   :  { %2754 = vrot.lane.b32.xlu0 %v2745_v46, %s3968_s3  ;;  %v2748_v13 = vadd.f32 %v2745_v46, %v2055_v49  ;;  %v2060_v48 = vadd.f32 %v4430_v37, %v4376_v8 }
0x285d   :  { %v2749_v50 = vmul.f32 0.5, %v2748_v13 }
0x285f   :  { %3894 = vtanh.f32 %v2749_v50 }
0x2860   :  { %v3762_v5 = vpop.f32.mrf.mxu0 }
0x2861   :  { %v2991_v41 = vadd.f32 %v3762_v5, %v4512_v20 }
0x2862   :  { %v2985_v7 = vpop.f32.mrf.mxu0 }
0x2863   :  { %v2986_v35 = vadd.f32 %v4512_v20, %v2985_v7 }
0x2864   :  { %v3765_v12 = vpop.f32.mrf.mxu0 }
0x2865   :  { %v3001_v54 = vadd.f32 %v3765_v12, %v4512_v20 }
0x2866   :  { %v2995_v40 = vpop.f32.mrf.mxu0 }
0x2867   :  { %v2996_v10 = vadd.f32 %v4512_v20, %v2995_v40 }
0x2868   :  { %v3768_v14 = vpop.f32.mrf.mxu0 }
0x2869   :  { %v3011_v16 = vadd.f32 %v3768_v14, %v4512_v20 }
0x286a   :  { %v3005_v21 = vpop.f32.mrf.mxu0 }
0x286b   :  { %v3006_v24 = vadd.f32 %v4512_v20, %v3005_v21 }
0x286c   :  { %v3895_v51 = vpop.eup %3894 }
0x286d   :  { %v2751_v52 = vmul.f32 0.5, %v3895_v51 }
0x286f   :  { %v2752_v53 = vadd.f32 0.5, %v2751_v52 }
0x2871   :  { %v2764_v63 = vsub.f32 1.0, %v2752_v53  ;;  %v2770_v47 = vmul.f32 %v2752_v53, %v2670_v33 }
0x28cd   :  { %v2755_v56 = vpop.permute.xlu0 %2754 }
0x28ce   :  { %v2757_v57 = vmul.f32 %v2755_v56, %v2752_v53 }
0x28d0   :  { %2759 = vrot.lane.b32.xlu1 %v2757_v57, %s3968_s3 }
0x2942   :  { %v2760_v58 = vpop.permute.xlu1 %2759 }
0x2943   :  { %v2762_v59 = vadd.f32 %v2760_v58, %v2055_v49 }
0x2945   :  { %3896 = vtanh.f32 %v2762_v59 }
0x2946   :  { %3898 = vtanh.f32 %v2986_v35 }
0x2947   :  { %3900 = vtanh.f32 %v2991_v41 }
0x2948   :  { %3902 = vtanh.f32 %v2996_v10 }
0x2949   :  { %3904 = vtanh.f32 %v3001_v54 }
0x294a   :  { %3906 = vtanh.f32 %v3006_v24 }
0x294b   :  { %3908 = vtanh.f32 %v3011_v16 }
0x2952   :  { %v3897_v61 = vpop.eup %3896 }
0x2953   :  { %2766 = vrot.lane.b32.xlu0 %v3897_v61, %s3970_s27  ;;  %v3899_v19 = vpop.eup %3898 }
0x2954   :  { %v3901_v55 = vpop.eup %3900 }
0x2955   :  { %v3903_v18 = vpop.eup %3902 }
0x2956   :  { %v3905_v28 = vpop.eup %3904 }
0x2957   :  { %v3907_v29 = vpop.eup %3906 }
0x2958   :  { %v3909_v9 = vpop.eup %3908 }
0x29c5   :  { %v2767_v11 = vpop.permute.xlu0 %2766 }
0x29c6   :  { %v2769_v2 = vmul.f32 %v2767_v11, %v2764_v63 }
0x29c8   :  { %v4508_v4 = vadd.f32 %v2770_v47, %v2769_v2 }
0x29ca   :  { %2773 = vrot.lane.b32.xlu1 %v4508_v4, %s3970_s27 }
0x2a3c   :  { %v2774_v15 = vpop.permute.xlu1 %2773 }
0x2a3d   :  { %2776 = vst.msk [vmem:[#allocation3 + $0x30] sm:$0x3] %vm1208_vm11, %v2774_v15  ;;  %3750 = vmatmul.mubr.msk.f32.vlgmr.msra.gmra.mxu1 %vm38_vm8, %v2774_v15 }
0x2a3e   :  { %3773 = vmatpush3.msra.mxu1 %v3039_v60  ;;  %3788 = vmatprep.mubr.msk.f32.mxu1 %vm3045_vm12, %v3899_v19 }
0x2a3f   :  { %3774 = vmatprep.subr.mxu1 %v3038_v17 }
0x2a40   :  { %3775 = vmatpush3.msra.mxu1 %v3038_v17 }
0x2a41   :  { %3776 = vmatprep.subr.mxu1 %v3037_v23 }
0x2a42   :  { %3777 = vmatpush3.msra.mxu1 %v3037_v23 }
0x2a43   :  { %3778 = vmatprep.subr.mxu1 %v3036_v25 }
0x2a44   :  { %3779 = vmatpush3.msra.mxu1 %v3036_v25  ;;  %v2884_v26 = vld [vmem:[#allocation3 + $0x30] sm:$0xff] }
0x2a45   :  { %3780 = vmatprep.subr.mxu1 %v3035_v6  ;;  %3769 = vmatprep.mubr.msk.f32.mxu0 %vm38_vm8, %v2884_v26 }
0x2a46   :  { %3781 = vmatpush3.msra.mxu1 %v3035_v6 }
0x2a47   :  { %3782 = vmatprep.subr.mxu1 %v3034_v62 }
0x2a48   :  { %3783 = vmatpush3.msra.mxu1 %v3034_v62 }
0x2a49   :  { %3784 = vmatprep.subr.mxu1 %v3033_v27 }
0x2a4a   :  { %3785 = vmatpush3.msra.mxu1 %v3033_v27 }
0x2a4b   :  { %3786 = vmatprep.subr.mxu1 %v3032_v0 }
0x2a4c   :  { %3787 = vmatpush3.msra.mxu1 %v3032_v0 }
0x2a4d   :  { %3789 = vmatmul.mubr.msk.f32.vlgmr.msra.gmra.mxu1 %vm3045_vm12, %v3901_v55 }
0x2a4e   :  { %3791 = vmatprep.mubr.msk.f32.mxu1 %vm3045_vm12, %v3903_v18 }
0x2a51   :  { %3792 = vmatmul.mubr.msk.f32.gmra.mxu1 %vm3045_vm12, %v3905_v28 }
0x2a52   :  { %3794 = vmatprep.mubr.msk.f32.mxu1 %vm3045_vm12, %v3907_v29 }
0x2a55   :  { %3795 = vmatmul.mubr.msk.f32.gmra.mxu1 %vm3045_vm12, %v3909_v9 }
0x2afd   :  { %v2845_v30 = vpop.f32.mrf.mxu1 }
0x2afe   :  { %v2846_v32 = vadd.f32 %v4370_v3, %v2845_v30 }
0x2aff   :  { %v3751_v33 = vpop.f32.mrf.mxu1 }
0x2b00   :  { %2855 = vrot.lane.b32.xlu0 %v2846_v32, %s3968_s3  ;;  %v2849_v49 = vadd.f32 %v2846_v32, %v2060_v48 }
0x2b02   :  { %v2850_v13 = vmul.f32 0.5, %v2849_v49 }
0x2b04   :  { %3910 = vtanh.f32 %v2850_v13 }
0x2b0d   :  { %v3790_v34 = vpop.f32.mrf.mxu1 }
0x2b0e   :  { %v3142_v31 = vadd.f32 %v3790_v34, %v3279_v1 }
0x2b0f   :  { %v3136_v36 = vpop.f32.mrf.mxu1 }
0x2b10   :  { %3176 = vst [vmem:[#allocation7 + $0x8] sm:$0xff] %v3142_v31  ;;  %v3137_v38 = vadd.f32 %v3279_v1, %v3136_v36 }
0x2b11   :  { %v3793_v22 = vpop.f32.mrf.mxu1  ;;  %v3911_v50 = vpop.eup %3910 }
0x2b12   :  { %3175 = vst [vmem:[#allocation7] sm:$0xff] %v3137_v38  ;;  %v3152_v39 = vadd.f32 %v3793_v22, %v3279_v1  ;;  %v2852_v51 = vmul.f32 0.5, %v3911_v50 }
0x2b13   :  { %v3146_v42 = vpop.f32.mrf.mxu1 }
0x2b14   :  { %3178 = vst [vmem:[#allocation7 + $0x18] sm:$0xff] %v3152_v39  ;;  %v3147_v43 = vadd.f32 %v3279_v1, %v3146_v42  ;;  %v2853_v52 = vadd.f32 0.5, %v2852_v51 }
0x2b15   :  { %v3796_v44 = vpop.f32.mrf.mxu1 }
0x2b16   :  { %3177 = vst [vmem:[#allocation7 + $0x10] sm:$0xff] %v3147_v43  ;;  %v3162_v45 = vadd.f32 %v3796_v44, %v3279_v1  ;;  %v2865_v60 = vsub.f32 1.0, %v2853_v52  ;;  %v2871_v8 = vmul.f32 %v2853_v52, %v4508_v4 }
0x2b17   :  { %v3156_v46 = vpop.f32.mrf.mxu1 }
0x2b18   :  { %3180 = vst [vmem:[#allocation7 + $0x28] sm:$0xff] %v3162_v45  ;;  %v3157_v3 = vadd.f32 %v3279_v1, %v3156_v46 }
0x2b1a   :  { %3179 = vst [vmem:[#allocation7 + $0x20] sm:$0xff] %v3157_v3 }
0x2b72   :  { %v2856_v53 = vpop.permute.xlu0 %2855 }
0x2b73   :  { %v2858_v56 = vmul.f32 %v2856_v53, %v2853_v52 }
0x2b75   :  { %2860 = vrot.lane.b32.xlu1 %v2858_v56, %s3968_s3 }
0x2be7   :  { %v2861_v57 = vpop.permute.xlu1 %2860 }
0x2be8   :  { %v2863_v58 = vadd.f32 %v2861_v57, %v2060_v48 }
0x2bea   :  { %3912 = vtanh.f32 %v2863_v58 }
0x2bf7   :  { %v3913_v59 = vpop.eup %3912 }
0x2bf8   :  { %2867 = vrot.lane.b32.xlu0 %v3913_v59, %s3970_s27 }
0x2c6a   :  { %v2868_v61 = vpop.permute.xlu0 %2867 }
0x2c6b   :  { %v2870_v37 = vmul.f32 %v2868_v61, %v2865_v60 }
0x2c6d   :  { %v2872_v63 = vadd.f32 %v2871_v8, %v2870_v37 }
0x2c6f   :  { %2874 = vrot.lane.b32.xlu1 %v2872_v63, %s3970_s27 }
0x2ce1   :  { %v2875_v11 = vpop.permute.xlu1 %2874 }
0x2ce2   :  { %2877 = vst.msk [vmem:[#allocation3 + $0x38] sm:$0x3] %vm1208_vm11, %v2875_v11 }
0x2ce9   :  { %v2885_v47 = vld [vmem:[#allocation3 + $0x38] sm:$0xff] }
0x2cea   :  { %3770 = vmatmul.mubr.msk.f32.gmra.mxu0 %vm38_vm8, %v2885_v47 }
0x2daa   :  { %v3771_v2 = vpop.f32.mrf.mxu0 }
0x2dab   :  { %v3021_v5 = vadd.f32 %v3771_v2, %v4512_v20 }
0x2dac   :  { %v3015_v7 = vpop.f32.mrf.mxu0 }
0x2dad   :  { %v3016_v35 = vadd.f32 %v4512_v20, %v3015_v7 }
0x2daf   :  { %3914 = vtanh.f32 %v3016_v35 }
0x2db0   :  { %3916 = vtanh.f32 %v3021_v5 }
0x2dbc   :  { %v3915_v12 = vpop.eup %3914 }
0x2dbd   :  { %v3917_v4 = vpop.eup %3916  ;;  %3797 = vmatprep.mubr.msk.f32.mxu1 %vm3045_vm12, %v3915_v12 }
0x2dbe   :  { %3798 = vmatmul.mubr.msk.f32.gmra.mxu1 %vm3045_vm12, %v3917_v4 }
0x2e7e   :  { %v3799_v40 = vpop.f32.mrf.mxu1 }
0x2e7f   :  { %v3172_v14 = vadd.f32 %v3799_v40, %v3279_v1 }
0x2e80   :  { %v3166_v41 = vpop.f32.mrf.mxu1 }
0x2e81   :  { %3182 = vst [vmem:[#allocation7 + $0x38] sm:$0xff] %v3172_v14  ;;  %v3167_v10 = vadd.f32 %v3279_v1, %v3166_v41 }
0x2e83   :  { %3181 = vst [vmem:[#allocation7 + $0x30] sm:$0xff] %v3167_v10 }
0x2e84   :  { %3949 = shalt.err (!%p3946_p9)
}
0x2e85   :  { %3194 = dma.vmem_to_hbm [thread:$0]  %s3189_s28, 1024, %s4555_s6, [#allocation6], %s3963_s24, %s3963_s24, %s3964_s25  }
0x2e86   :  { %3960 = dma.done.wait [#allocation6], 1024  }
0x2e87   :  { %3961 = vsyncadd [#allocation6], 4294966272 }
0x2e88   :  { %3198 = vsyncpa [#allocation5], 1 }
0x2e89   :  { %3199 = vsyncpa [#allocation6], 1 }

</bundles_post_ra>
